<compile_context>
chip_gen: v5e
topology: v5e:2x2
jax: 0.10.0
libtpu: 0.0.40
codegen_flags: <defaults>
</compile_context>

<pallas_src>
import functools

import jax
import jax.numpy as jnp
from jax import lax
from jax.experimental import pallas as pl
from jax.experimental.pallas import tpu as pltpu


# ----------------------------------------------------------------------------
# In-kernel helpers
# ----------------------------------------------------------------------------
def _gn_swish(x3, gamma, beta, mask, n_per_group, eps, use_mask):
    """GroupNorm (affine) + SiLU on a (bt, hw, C) f32 slab.  Stats stay f32."""
    bt = x3.shape[0]
    s1 = jnp.sum(x3, axis=1)                           # (bt, C)
    s2 = jnp.sum(x3 * x3, axis=1)                      # (bt, C)
    if use_mask:
        # One stats matmul for both moments; mask is the (C, C) group indicator.
        s = jnp.concatenate([s1, s2], axis=0)          # (2*bt, C)
        gs = jnp.dot(s, mask, preferred_element_type=jnp.float32,
                     precision=lax.Precision.HIGHEST)  # keep 0/1-mask dot exact
        gs1, gs2 = gs[:bt], gs[bt:]
    else:                                              # C == groups -> identity mask
        gs1, gs2 = s1, s2
    inv_n = 1.0 / n_per_group
    mean = gs1 * inv_n                                 # (bt, C)
    var = gs2 * inv_n - mean * mean
    inv = lax.rsqrt(var + eps)
    y = (x3 - mean[:, None, :]) * inv[:, None, :] * gamma + beta
    return y * jax.nn.sigmoid(y)                       # swish / SiLU


def _zero_pad_border(pad_ref, bt, h, w, c):
    """Zero only the 1-pixel halo of the (bt, h+2, w+2, c) conv scratch."""
    z_row = jnp.zeros((bt, 1, w + 2, c), jnp.float32)
    z_col = jnp.zeros((bt, h + 2, 1, c), jnp.float32)
    pad_ref[:, pl.ds(0, 1), :, :] = z_row
    pad_ref[:, pl.ds(h + 1, 1), :, :] = z_row
    pad_ref[:, :, pl.ds(0, 1), :] = z_col
    pad_ref[:, :, pl.ds(w + 1, 1), :] = z_col


def _conv3x3_im2col(pad_ref, col_ref, w_ref, bias, bt, h, w, c):
    """3x3 stride-1 conv: one pass of the 9 shifted taps into the im2col
    scratch, then a single bf16 MXU matmul with f32 accumulation."""
    hw = h * w
    for kh in range(3):
        for kw in range(3):
            t = kh * 3 + kw
            tap = pad_ref[:, pl.ds(kh, h), pl.ds(kw, w), :]      # (bt, h, w, c)
            col_ref[:, t * c:(t + 1) * c] = tap.reshape(bt * hw, c)
    acc = jnp.dot(col_ref[...].astype(jnp.bfloat16), w_ref[...],
                  preferred_element_type=jnp.float32)            # (bt*hw, cout)
    return acc + bias


# ----------------------------------------------------------------------------
# Fused ResnetBlock kernel (one batch tile per grid step)
# ----------------------------------------------------------------------------
def _resnet_block_kernel(
    x_ref, tadd_ref,
    g1_ref, be1_ref, m1_ref, w1_ref, b1_ref,
    g2_ref, be2_ref, m2_ref, w2_ref, b2_ref,
    ws_ref, bs_ref,
    o_ref,
    pad1_ref, pad2_ref, col1_ref, col2_ref,
    *, bt, h, w, cin, cout, groups, eps, shortcut):
    hw = h * w

    # Zero only the halo; interiors are fully overwritten every step.
    _zero_pad_border(pad1_ref, bt, h, w, cin)
    _zero_pad_border(pad2_ref, bt, h, w, cout)

    x = x_ref[...].astype(jnp.float32)                 # (bt, h, w, cin)
    x3 = x.reshape(bt, hw, cin)

    # ---- norm1 + swish ------------------------------------------------------
    h1 = _gn_swish(x3, g1_ref[...], be1_ref[...], m1_ref[...],
                   float(hw * (cin // groups)), eps, use_mask=(cin != groups))

    # ---- conv1 (3x3, pad=1) : im2col + single bf16 MXU matmul ---------------
    pad1_ref[:, pl.ds(1, h), pl.ds(1, w), :] = h1.reshape(bt, h, w, cin)
    acc = _conv3x3_im2col(pad1_ref, col1_ref, w1_ref, b1_ref[...],
                          bt, h, w, cin)               # (bt*hw, cout) f32
    acc = acc.reshape(bt, hw, cout)

    # ---- + temb_proj(swish(temb))  (projection hoisted into wrapper) --------
    acc = acc + tadd_ref[...]                          # (bt, 1, cout) broadcast

    # ---- norm2 + swish ------------------------------------------------------
    h2 = _gn_swish(acc, g2_ref[...], be2_ref[...], m2_ref[...],
                   float(hw * (cout // groups)), eps, use_mask=(cout != groups))
    # TODO(synk): dropout is identity (eval mode); training-mode dropout via
    #             pltpu.prng_seed + stateful_bernoulli not implemented.

    # ---- conv2 (3x3, pad=1) -------------------------------------------------
    pad2_ref[:, pl.ds(1, h), pl.ds(1, w), :] = h2.reshape(bt, h, w, cout)
    acc2 = _conv3x3_im2col(pad2_ref, col2_ref, w2_ref, b2_ref[...],
                           bt, h, w, cout)
    acc2 = acc2.reshape(bt, hw, cout)

    # ---- shortcut -----------------------------------------------------------
    if shortcut == "identity":
        xs = x3                                        # cin == cout
    elif shortcut == "nin":                            # 1x1 conv
        xs = (jnp.dot(x3.reshape(bt * hw, cin).astype(jnp.bfloat16), ws_ref[...],
                      preferred_element_type=jnp.float32)
              + bs_ref[...]).reshape(bt, hw, cout)
    else:                                              # "conv": 3x3 conv on x
        pad1_ref[:, pl.ds(1, h), pl.ds(1, w), :] = x   # halo still zero
        xs = _conv3x3_im2col(pad1_ref, col1_ref, ws_ref, bs_ref[...],
                             bt, h, w, cin).reshape(bt, hw, cout)

    out = acc2 + xs                                    # (bt, hw, cout) f32
    o_ref[...] = out.reshape(bt, h, w, cout).astype(o_ref.dtype)


# ----------------------------------------------------------------------------
# Wrapper
# ----------------------------------------------------------------------------
def _group_mask(c, groups):
    gid = jnp.arange(c) // (c // groups)
    return (gid[:, None] == gid[None, :]).astype(jnp.float32)


def _pick_batch_tile(n, hw, target_m=256):
    """Largest divisor of n that keeps M=bt*hw near target and >=2 grid steps."""
    bt = max(1, min(n, target_m // max(hw, 1)))
    if n > 1:                       # keep >=2 work items so both v7x TCs get work
        bt = max(1, min(bt, n // 2))
    while n % bt:
        bt -= 1
    return bt


def resnet_block(x_nchw, temb, params, *, num_groups=32, eps=1e-6,
                 conv_shortcut=False):
    n, cin, hh, ww = x_nchw.shape
    cout = params["conv1_w"].shape[0]
    x = jnp.transpose(x_nchw, (0, 2, 3, 1))            # NCHW -> NHWC (C on lanes)

    def w3x3(w_oihw):                                  # (O,I,3,3) -> (9*I, O) bf16
        o, i = w_oihw.shape[0], w_oihw.shape[1]
        return jnp.transpose(w_oihw, (2, 3, 1, 0)).reshape(9 * i, o).astype(jnp.bfloat16)

    w1 = w3x3(params["conv1_w"])
    b1 = params["conv1_b"].reshape(1, cout).astype(jnp.float32)
    w2 = w3x3(params["conv2_w"])
    b2 = params["conv2_b"].reshape(1, cout).astype(jnp.float32)
    g1 = params["norm1_g"].reshape(1, cin).astype(jnp.float32)
    be1 = params["norm1_b"].reshape(1, cin).astype(jnp.float32)
    g2 = params["norm2_g"].reshape(1, cout).astype(jnp.float32)
    be2 = params["norm2_b"].reshape(1, cout).astype(jnp.float32)
    m1 = _group_mask(cin, num_groups)
    m2 = _group_mask(cout, num_groups)

    # temb projection hoisted out of the kernel: one well-shaped XLA matmul.
    if temb is not None:
        t = temb.astype(jnp.float32)
        t = t * jax.nn.sigmoid(t)
        tadd = t @ params["temb_w"].astype(jnp.float32).T \
               + params["temb_b"].astype(jnp.float32)
    else:
        tadd = jnp.zeros((n, cout), jnp.float32)
    tadd3 = tadd.reshape(n, 1, cout)

    if cin == cout:
        shortcut = "identity"
        ws = jnp.zeros((cin, cout), jnp.bfloat16)      # unused
        bs = jnp.zeros((1, cout), jnp.float32)
    elif conv_shortcut:
        shortcut = "conv"
        ws = w3x3(params["shortcut_w"])
        bs = params["shortcut_b"].reshape(1, cout).astype(jnp.float32)
    else:
        shortcut = "nin"
        ws = jnp.transpose(params["shortcut_w"][:, :, 0, 0], (1, 0)).astype(jnp.bfloat16)
        bs = params["shortcut_b"].reshape(1, cout).astype(jnp.float32)

    bt = _pick_batch_tile(n, hh * ww)
    grid = (n // bt,)

    kernel = functools.partial(
        _resnet_block_kernel, bt=bt, h=hh, w=ww, cin=cin, cout=cout,
        groups=num_groups, eps=eps, shortcut=shortcut)

    def const(arr):                                    # whole array, fixed block
        shape = tuple(arr.shape)
        return pl.BlockSpec(shape, lambda i, _n=len(shape): (0,) * _n)

    grid_spec = pltpu.PrefetchScalarGridSpec(
        num_scalar_prefetch=0,
        grid=grid,
        in_specs=[
            pl.BlockSpec((bt, hh, ww, cin), lambda i: (i, 0, 0, 0)),
            pl.BlockSpec((bt, 1, cout), lambda i: (i, 0, 0)),
            const(g1), const(be1), const(m1), const(w1), const(b1),
            const(g2), const(be2), const(m2), const(w2), const(b2),
            const(ws), const(bs),
        ],
        out_specs=pl.BlockSpec((bt, hh, ww, cout), lambda i: (i, 0, 0, 0)),
        scratch_shapes=[
            pltpu.VMEM((bt, hh + 2, ww + 2, cin), jnp.float32),
            pltpu.VMEM((bt, hh + 2, ww + 2, cout), jnp.float32),
            pltpu.VMEM((bt * hh * ww, 9 * cin), jnp.float32),
            pltpu.VMEM((bt * hh * ww, 9 * cout), jnp.float32),
        ])

    # Cost hint for XLA's scheduler.
    conv_flops = 2 * n * hh * ww * 9 * (cin * cout + cout * cout)
    if shortcut == "nin":
        conv_flops += 2 * n * hh * ww * cin * cout
    elif shortcut == "conv":
        conv_flops += 2 * n * hh * ww * 9 * cin * cout
    cost = pl.CostEstimate(
        flops=int(conv_flops),
        transcendentals=int(n * hh * ww * (cin + cout)),
        bytes_accessed=int(4 * x.size + 4 * n * hh * ww * cout
                           + 2 * (w1.size + w2.size + ws.size)
                           + 4 * (m1.size + m2.size)))

    # Explicit VMEM budget (blocks double-buffered + scratches), capped for v7x.
    block_bytes = (2 * bt * hh * ww * (cin + cout) * 4
                   + 2 * (w1.size + w2.size + ws.size)
                   + 4 * (m1.size + m2.size)
                   + bt * (hh + 2) * (ww + 2) * (cin + cout) * 4
                   + bt * hh * ww * 9 * (cin + cout) * 4)
    vmem_limit = int(min(64 * 2**20, max(16 * 2**20, 4 * block_bytes)))

    out = pl.pallas_call(
        kernel,
        out_shape=jax.ShapeDtypeStruct((n, hh, ww, cout), x.dtype),
        grid_spec=grid_spec,
        compiler_params=pltpu.CompilerParams(
            dimension_semantics=("parallel",),
            vmem_limit_bytes=vmem_limit),
        cost_estimate=cost,
    )(x, tadd3, g1, be1, m1, w1, b1, g2, be2, m2, w2, b2, ws, bs)

    return jnp.transpose(out, (0, 3, 1, 2))            # NHWC -> NCHW


# ----------------------------------------------------------------------------
# Deterministic parameter init (mirrors the PyTorch module's tensor shapes)
# ----------------------------------------------------------------------------
def init_params(key, cin, cout, temb_channels, conv_shortcut=False):
    ks = jax.random.split(key, 12)

    def conv_w(k, o, i, s):
        return jax.random.normal(k, (o, i, s, s), jnp.float32) * (0.3 / (i * s * s) ** 0.5)

    p = {
        "norm1_g": 1.0 + 0.05 * jax.random.normal(ks[0], (cin,), jnp.float32),
        "norm1_b": 0.05 * jax.random.normal(ks[1], (cin,), jnp.float32),
        "conv1_w": conv_w(ks[2], cout, cin, 3),
        "conv1_b": 0.05 * jax.random.normal(ks[3], (cout,), jnp.float32),
        "temb_w": jax.random.normal(ks[4], (cout, temb_channels), jnp.float32)
                  * (0.3 / temb_channels ** 0.5),
        "temb_b": 0.05 * jax.random.normal(ks[5], (cout,), jnp.float32),
        "norm2_g": 1.0 + 0.05 * jax.random.normal(ks[6], (cout,), jnp.float32),
        "norm2_b": 0.05 * jax.random.normal(ks[7], (cout,), jnp.float32),
        "conv2_w": conv_w(ks[8], cout, cout, 3),
        "conv2_b": 0.05 * jax.random.normal(ks[9], (cout,), jnp.float32),
    }
    if cin != cout:
        p["shortcut_w"] = conv_w(ks[10], cout, cin, 3 if conv_shortcut else 1)
        p["shortcut_b"] = 0.05 * jax.random.normal(ks[11], (cout,), jnp.float32)
    return p


# ----------------------------------------------------------------------------
# Pure-JAX reference (mirrors the PyTorch forward; verification only)
# ----------------------------------------------------------------------------
def _ref_resnet_block(x, temb, p, *, num_groups=32, eps=1e-6, conv_shortcut=False):
    def gn(v, gamma, beta):
        n, c, hh, ww = v.shape
        vg = v.reshape(n, num_groups, (c // num_groups) * hh * ww)
        mean = vg.mean(axis=-1, keepdims=True)
        var = vg.var(axis=-1, keepdims=True)
        vn = ((vg - mean) / jnp.sqrt(var + eps)).reshape(n, c, hh, ww)
        return vn * gamma[None, :, None, None] + beta[None, :, None, None]

    def swish(v):
        return v * jax.nn.sigmoid(v)

    def conv(v, w, b, pad):
        return lax.conv_general_dilated(
            v, w, (1, 1), [(pad, pad), (pad, pad)],
            dimension_numbers=("NCHW", "OIHW", "NCHW"),
            precision=lax.Precision.HIGHEST) + b[None, :, None, None]

    cin = x.shape[1]
    cout = p["conv1_w"].shape[0]
    h = swish(gn(x, p["norm1_g"], p["norm1_b"]))
    h = conv(h, p["conv1_w"], p["conv1_b"], 1)
    if temb is not None:
        h = h + (swish(temb) @ p["temb_w"].T + p["temb_b"])[:, :, None, None]
    h = swish(gn(h, p["norm2_g"], p["norm2_b"]))
    h = conv(h, p["conv2_w"], p["conv2_b"], 1)
    if cin != cout:
        xs = conv(x, p["shortcut_w"], p["shortcut_b"], 1 if conv_shortcut else 0)
    else:
        xs = x
    return xs + h


if __name__ == "__main__":
    key = jax.random.PRNGKey(0)
    kx, kt, kp1, kp2, kp3 = jax.random.split(key, 5)

    N, H, W, TC, G = 4, 8, 8, 64, 32
    CIN, COUT = 32, 64

    x = jax.random.normal(kx, (N, CIN, H, W), jnp.float32)
    temb = jax.random.normal(kt, (N, TC), jnp.float32)

    def check(y, y_ref, name):
        assert y.shape == y_ref.shape, (name, y.shape, y_ref.shape)
        err = float(jnp.max(jnp.abs(y - y_ref)))
        # bf16 MXU operands with f32 accumulation -> loose-but-meaningful bound.
        assert err < 8e-2, (name, err)

    # Config A: cin != cout -> 1x1 nin shortcut, temb present.
    pA = init_params(kp1, CIN, COUT, TC, conv_shortcut=False)
    yA = jax.block_until_ready(resnet_block(x, temb, pA, num_groups=G))
    check(yA, _ref_resnet_block(x, temb, pA, num_groups=G), "nin")

    # Config B: cin == cout -> identity shortcut, no temb.
    pB = init_params(kp2, CIN, CIN, TC)
    yB = jax.block_until_ready(resnet_block(x, None, pB, num_groups=G))
    check(yB, _ref_resnet_block(x, None, pB, num_groups=G), "identity")

    # Config C: cin != cout with 3x3 conv shortcut.
    pC = init_params(kp3, CIN, COUT, TC, conv_shortcut=True)
    yC = jax.block_until_ready(
        resnet_block(x, temb, pC, num_groups=G, conv_shortcut=True))
    check(yC, _ref_resnet_block(x, temb, pC, num_groups=G, conv_shortcut=True),
          "conv")

    print("KERNEL_OK")
</pallas_src>

<mosaic_0001>
module attributes {stable_mosaic.version = 11 : i64} {
  func.func @_resnet_block_kernel(%arg0: i32, %arg1: memref<2x8x8x32xf32, #tpu.memory_space<vmem>>, %arg2: memref<2x1x64xf32, #tpu.memory_space<vmem>>, %arg3: memref<1x32xf32, #tpu.memory_space<vmem>>, %arg4: memref<1x32xf32, #tpu.memory_space<vmem>>, %arg5: memref<32x32xf32, #tpu.memory_space<vmem>>, %arg6: memref<288x64xbf16, #tpu.memory_space<vmem>>, %arg7: memref<1x64xf32, #tpu.memory_space<vmem>>, %arg8: memref<1x64xf32, #tpu.memory_space<vmem>>, %arg9: memref<1x64xf32, #tpu.memory_space<vmem>>, %arg10: memref<64x64xf32, #tpu.memory_space<vmem>>, %arg11: memref<576x64xbf16, #tpu.memory_space<vmem>>, %arg12: memref<1x64xf32, #tpu.memory_space<vmem>>, %arg13: memref<32x64xbf16, #tpu.memory_space<vmem>>, %arg14: memref<1x64xf32, #tpu.memory_space<vmem>>, %arg15: memref<2x8x8x64xf32, #tpu.memory_space<vmem>>, %arg16: memref<2x10x10x32xf32, #tpu.memory_space<vmem>>, %arg17: memref<2x10x10x64xf32, #tpu.memory_space<vmem>>, %arg18: memref<128x288xf32, #tpu.memory_space<vmem>>, %arg19: memref<128x576xf32, #tpu.memory_space<vmem>>) attributes {dimension_semantics = [#tpu.dimension_semantics<parallel>], iteration_bounds = array<i64: 2>, scalar_prefetch = 0 : i64, scratch_operands = 4 : i64, tpu.core_type = #tpu.core_type<tc>, window_params = [{transform_indices = @transform_0, window_bounds = array<i64: 2, 8, 8, 32>}, {transform_indices = @transform_1, window_bounds = array<i64: 2, 1, 64>}, {pipeline_mode = #tpu.pipeline_mode<synchronous>, transform_indices = @transform_2, window_bounds = array<i64: 1, 32>}, {pipeline_mode = #tpu.pipeline_mode<synchronous>, transform_indices = @transform_3, window_bounds = array<i64: 1, 32>}, {pipeline_mode = #tpu.pipeline_mode<synchronous>, transform_indices = @transform_4, window_bounds = array<i64: 32, 32>}, {pipeline_mode = #tpu.pipeline_mode<synchronous>, transform_indices = @transform_5, window_bounds = array<i64: 288, 64>}, {pipeline_mode = #tpu.pipeline_mode<synchronous>, transform_indices = @transform_6, window_bounds = array<i64: 1, 64>}, {pipeline_mode = #tpu.pipeline_mode<synchronous>, transform_indices = @transform_7, window_bounds = array<i64: 1, 64>}, {pipeline_mode = #tpu.pipeline_mode<synchronous>, transform_indices = @transform_8, window_bounds = array<i64: 1, 64>}, {pipeline_mode = #tpu.pipeline_mode<synchronous>, transform_indices = @transform_9, window_bounds = array<i64: 64, 64>}, {pipeline_mode = #tpu.pipeline_mode<synchronous>, transform_indices = @transform_10, window_bounds = array<i64: 576, 64>}, {pipeline_mode = #tpu.pipeline_mode<synchronous>, transform_indices = @transform_11, window_bounds = array<i64: 1, 64>}, {pipeline_mode = #tpu.pipeline_mode<synchronous>, transform_indices = @transform_12, window_bounds = array<i64: 32, 64>}, {pipeline_mode = #tpu.pipeline_mode<synchronous>, transform_indices = @transform_13, window_bounds = array<i64: 1, 64>}, {transform_indices = @transform_14, window_bounds = array<i64: 2, 8, 8, 64>}]} {
    %cst = arith.constant 0.000000e+00 : f32
    %0 = vector.broadcast %cst : f32 to vector<2x1x10x32xf32>
    %cst_0 = arith.constant 0.000000e+00 : f32
    %1 = vector.broadcast %cst_0 : f32 to vector<2x10x1x32xf32>
    %c0 = arith.constant 0 : index
    %c0_1 = arith.constant 0 : index
    %c0_2 = arith.constant 0 : index
    %c0_3 = arith.constant 0 : index
    %2 = vector.load %arg16[%c0, %c0_1, %c0_2, %c0_3] : memref<2x10x10x32xf32, #tpu.memory_space<vmem>>, vector<2x1x10x32xf32>
    tpu.vector_store %arg16[%c0, %c0_1, %c0_2, %c0_3], %0 {strides = array<i32>} : memref<2x10x10x32xf32, #tpu.memory_space<vmem>>, vector<2x1x10x32xf32>,
    %c0_4 = arith.constant 0 : index
    %c9 = arith.constant 9 : index
    %c0_5 = arith.constant 0 : index
    %c0_6 = arith.constant 0 : index
    %3 = vector.load %arg16[%c0_4, %c9, %c0_5, %c0_6] : memref<2x10x10x32xf32, #tpu.memory_space<vmem>>, vector<2x1x10x32xf32>
    tpu.vector_store %arg16[%c0_4, %c9, %c0_5, %c0_6], %0 {strides = array<i32>} : memref<2x10x10x32xf32, #tpu.memory_space<vmem>>, vector<2x1x10x32xf32>,
    %c0_7 = arith.constant 0 : index
    %c0_8 = arith.constant 0 : index
    %c0_9 = arith.constant 0 : index
    %c0_10 = arith.constant 0 : index
    %4 = vector.load %arg16[%c0_7, %c0_8, %c0_9, %c0_10] : memref<2x10x10x32xf32, #tpu.memory_space<vmem>>, vector<2x10x1x32xf32>
    tpu.vector_store %arg16[%c0_7, %c0_8, %c0_9, %c0_10], %1 {strides = array<i32>} : memref<2x10x10x32xf32, #tpu.memory_space<vmem>>, vector<2x10x1x32xf32>,
    %c0_11 = arith.constant 0 : index
    %c0_12 = arith.constant 0 : index
    %c9_13 = arith.constant 9 : index
    %c0_14 = arith.constant 0 : index
    %5 = vector.load %arg16[%c0_11, %c0_12, %c9_13, %c0_14] : memref<2x10x10x32xf32, #tpu.memory_space<vmem>>, vector<2x10x1x32xf32>
    tpu.vector_store %arg16[%c0_11, %c0_12, %c9_13, %c0_14], %1 {strides = array<i32>} : memref<2x10x10x32xf32, #tpu.memory_space<vmem>>, vector<2x10x1x32xf32>,
    %cst_15 = arith.constant 0.000000e+00 : f32
    %6 = vector.broadcast %cst_15 : f32 to vector<2x1x10x64xf32>
    %cst_16 = arith.constant 0.000000e+00 : f32
    %7 = vector.broadcast %cst_16 : f32 to vector<2x10x1x64xf32>
    %c0_17 = arith.constant 0 : index
    %c0_18 = arith.constant 0 : index
    %c0_19 = arith.constant 0 : index
    %c0_20 = arith.constant 0 : index
    %8 = vector.load %arg17[%c0_17, %c0_18, %c0_19, %c0_20] : memref<2x10x10x64xf32, #tpu.memory_space<vmem>>, vector<2x1x10x64xf32>
    tpu.vector_store %arg17[%c0_17, %c0_18, %c0_19, %c0_20], %6 {strides = array<i32>} : memref<2x10x10x64xf32, #tpu.memory_space<vmem>>, vector<2x1x10x64xf32>,
    %c0_21 = arith.constant 0 : index
    %c9_22 = arith.constant 9 : index
    %c0_23 = arith.constant 0 : index
    %c0_24 = arith.constant 0 : index
    %9 = vector.load %arg17[%c0_21, %c9_22, %c0_23, %c0_24] : memref<2x10x10x64xf32, #tpu.memory_space<vmem>>, vector<2x1x10x64xf32>
    tpu.vector_store %arg17[%c0_21, %c9_22, %c0_23, %c0_24], %6 {strides = array<i32>} : memref<2x10x10x64xf32, #tpu.memory_space<vmem>>, vector<2x1x10x64xf32>,
    %c0_25 = arith.constant 0 : index
    %c0_26 = arith.constant 0 : index
    %c0_27 = arith.constant 0 : index
    %c0_28 = arith.constant 0 : index
    %10 = vector.load %arg17[%c0_25, %c0_26, %c0_27, %c0_28] : memref<2x10x10x64xf32, #tpu.memory_space<vmem>>, vector<2x10x1x64xf32>
    tpu.vector_store %arg17[%c0_25, %c0_26, %c0_27, %c0_28], %7 {strides = array<i32>} : memref<2x10x10x64xf32, #tpu.memory_space<vmem>>, vector<2x10x1x64xf32>,
    %c0_29 = arith.constant 0 : index
    %c0_30 = arith.constant 0 : index
    %c9_31 = arith.constant 9 : index
    %c0_32 = arith.constant 0 : index
    %11 = vector.load %arg17[%c0_29, %c0_30, %c9_31, %c0_32] : memref<2x10x10x64xf32, #tpu.memory_space<vmem>>, vector<2x10x1x64xf32>
    tpu.vector_store %arg17[%c0_29, %c0_30, %c9_31, %c0_32], %7 {strides = array<i32>} : memref<2x10x10x64xf32, #tpu.memory_space<vmem>>, vector<2x10x1x64xf32>,
    %c0_33 = arith.constant 0 : index
    %c0_34 = arith.constant 0 : index
    %c0_35 = arith.constant 0 : index
    %c0_36 = arith.constant 0 : index
    %12 = vector.load %arg1[%c0_33, %c0_34, %c0_35, %c0_36] : memref<2x8x8x32xf32, #tpu.memory_space<vmem>>, vector<2x8x8x32xf32>
    %13 = vector.shape_cast %12 : vector<2x8x8x32xf32> to vector<2x64x32xf32>
    %c0_37 = arith.constant 0 : index
    %c0_38 = arith.constant 0 : index
    %14 = vector.load %arg3[%c0_37, %c0_38] : memref<1x32xf32, #tpu.memory_space<vmem>>, vector<1x32xf32>
    %c0_39 = arith.constant 0 : index
    %c0_40 = arith.constant 0 : index
    %15 = vector.load %arg4[%c0_39, %c0_40] : memref<1x32xf32, #tpu.memory_space<vmem>>, vector<1x32xf32>
    %cst_41 = arith.constant dense<0.000000e+00> : vector<2x32xf32>
    %16 = vector.multi_reduction <add>, %13, %cst_41 [1] : vector<2x64x32xf32> to vector<2x32xf32>
    %17 = arith.mulf %13, %13 : vector<2x64x32xf32>
    %cst_42 = arith.constant dense<0.000000e+00> : vector<2x32xf32>
    %18 = vector.multi_reduction <add>, %17, %cst_42 [1] : vector<2x64x32xf32> to vector<2x32xf32>
    %cst_43 = arith.constant 1.562500e-02 : f32
    %19 = vector.broadcast %cst_43 : f32 to vector<2x32xf32>
    %20 = arith.mulf %16, %19 : vector<2x32xf32>
    %cst_44 = arith.constant 1.562500e-02 : f32
    %21 = vector.broadcast %cst_44 : f32 to vector<2x32xf32>
    %22 = arith.mulf %18, %21 : vector<2x32xf32>
    %23 = arith.mulf %20, %20 : vector<2x32xf32>
    %24 = arith.subf %22, %23 : vector<2x32xf32>
    %cst_45 = arith.constant 9.99999997E-7 : f32
    %25 = vector.broadcast %cst_45 : f32 to vector<2x32xf32>
    %26 = arith.addf %24, %25 : vector<2x32xf32>
    %27 = math.rsqrt %26 : vector<2x32xf32>
    %28 = vector.shape_cast %20 : vector<2x32xf32> to vector<2x1x32xf32>
    %29 = vector.broadcast %28 : vector<2x1x32xf32> to vector<2x64x32xf32>
    %30 = arith.subf %13, %29 : vector<2x64x32xf32>
    %31 = vector.shape_cast %27 : vector<2x32xf32> to vector<2x1x32xf32>
    %32 = vector.broadcast %31 : vector<2x1x32xf32> to vector<2x64x32xf32>
    %33 = arith.mulf %30, %32 : vector<2x64x32xf32>
    %34 = vector.shape_cast %14 : vector<1x32xf32> to vector<1x1x32xf32>
    %35 = vector.broadcast %34 : vector<1x1x32xf32> to vector<2x64x32xf32>
    %36 = arith.mulf %33, %35 : vector<2x64x32xf32>
    %37 = vector.shape_cast %15 : vector<1x32xf32> to vector<1x1x32xf32>
    %38 = vector.broadcast %37 : vector<1x1x32xf32> to vector<2x64x32xf32>
    %39 = arith.addf %36, %38 : vector<2x64x32xf32>
    %40 = arith.negf %39 : vector<2x64x32xf32>
    %41 = math.exp %40 : vector<2x64x32xf32>
    %cst_46 = arith.constant 1.000000e+00 : f32
    %42 = vector.broadcast %cst_46 : f32 to vector<2x64x32xf32>
    %43 = arith.addf %42, %41 : vector<2x64x32xf32>
    %44 = arith.divf %42, %43 : vector<2x64x32xf32>
    %45 = arith.mulf %39, %44 : vector<2x64x32xf32>
    %46 = vector.shape_cast %45 : vector<2x64x32xf32> to vector<2x8x8x32xf32>
    %c0_47 = arith.constant 0 : index
    %c1 = arith.constant 1 : index
    %c1_48 = arith.constant 1 : index
    %c0_49 = arith.constant 0 : index
    %47 = vector.load %arg16[%c0_47, %c1, %c1_48, %c0_49] : memref<2x10x10x32xf32, #tpu.memory_space<vmem>>, vector<2x8x8x32xf32>
    tpu.vector_store %arg16[%c0_47, %c1, %c1_48, %c0_49], %46 {strides = array<i32>} : memref<2x10x10x32xf32, #tpu.memory_space<vmem>>, vector<2x8x8x32xf32>,
    %c0_50 = arith.constant 0 : index
    %c0_51 = arith.constant 0 : index
    %48 = vector.load %arg7[%c0_50, %c0_51] : memref<1x64xf32, #tpu.memory_space<vmem>>, vector<1x64xf32>
    %c0_52 = arith.constant 0 : index
    %c0_53 = arith.constant 0 : index
    %c0_54 = arith.constant 0 : index
    %c0_55 = arith.constant 0 : index
    %49 = vector.load %arg16[%c0_52, %c0_53, %c0_54, %c0_55] : memref<2x10x10x32xf32, #tpu.memory_space<vmem>>, vector<2x8x8x32xf32>
    %50 = vector.shape_cast %49 : vector<2x8x8x32xf32> to vector<128x32xf32>
    %c0_56 = arith.constant 0 : index
    %c0_57 = arith.constant 0 : index
    %51 = vector.load %arg18[%c0_56, %c0_57] : memref<128x288xf32, #tpu.memory_space<vmem>>, vector<128x32xf32>
    tpu.vector_store %arg18[%c0_56, %c0_57], %50 {strides = array<i32>} : memref<128x288xf32, #tpu.memory_space<vmem>>, vector<128x32xf32>,
    %c0_58 = arith.constant 0 : index
    %c0_59 = arith.constant 0 : index
    %c1_60 = arith.constant 1 : index
    %c0_61 = arith.constant 0 : index
    %52 = vector.load %arg16[%c0_58, %c0_59, %c1_60, %c0_61] : memref<2x10x10x32xf32, #tpu.memory_space<vmem>>, vector<2x8x8x32xf32>
    %53 = vector.shape_cast %52 : vector<2x8x8x32xf32> to vector<128x32xf32>
    %c0_62 = arith.constant 0 : index
    %c32 = arith.constant 32 : index
    %54 = vector.load %arg18[%c0_62, %c32] : memref<128x288xf32, #tpu.memory_space<vmem>>, vector<128x32xf32>
    tpu.vector_store %arg18[%c0_62, %c32], %53 {strides = array<i32>} : memref<128x288xf32, #tpu.memory_space<vmem>>, vector<128x32xf32>,
    %c0_63 = arith.constant 0 : index
    %c0_64 = arith.constant 0 : index
    %c2 = arith.constant 2 : index
    %c0_65 = arith.constant 0 : index
    %55 = vector.load %arg16[%c0_63, %c0_64, %c2, %c0_65] : memref<2x10x10x32xf32, #tpu.memory_space<vmem>>, vector<2x8x8x32xf32>
    %56 = vector.shape_cast %55 : vector<2x8x8x32xf32> to vector<128x32xf32>
    %c0_66 = arith.constant 0 : index
    %c64 = arith.constant 64 : index
    %57 = vector.load %arg18[%c0_66, %c64] : memref<128x288xf32, #tpu.memory_space<vmem>>, vector<128x32xf32>
    tpu.vector_store %arg18[%c0_66, %c64], %56 {strides = array<i32>} : memref<128x288xf32, #tpu.memory_space<vmem>>, vector<128x32xf32>,
    %c0_67 = arith.constant 0 : index
    %c1_68 = arith.constant 1 : index
    %c0_69 = arith.constant 0 : index
    %c0_70 = arith.constant 0 : index
    %58 = vector.load %arg16[%c0_67, %c1_68, %c0_69, %c0_70] : memref<2x10x10x32xf32, #tpu.memory_space<vmem>>, vector<2x8x8x32xf32>
    %59 = vector.shape_cast %58 : vector<2x8x8x32xf32> to vector<128x32xf32>
    %c0_71 = arith.constant 0 : index
    %c96 = arith.constant 96 : index
    %60 = vector.load %arg18[%c0_71, %c96] : memref<128x288xf32, #tpu.memory_space<vmem>>, vector<128x32xf32>
    tpu.vector_store %arg18[%c0_71, %c96], %59 {strides = array<i32>} : memref<128x288xf32, #tpu.memory_space<vmem>>, vector<128x32xf32>,
    %c0_72 = arith.constant 0 : index
    %c1_73 = arith.constant 1 : index
    %c1_74 = arith.constant 1 : index
    %c0_75 = arith.constant 0 : index
    %61 = vector.load %arg16[%c0_72, %c1_73, %c1_74, %c0_75] : memref<2x10x10x32xf32, #tpu.memory_space<vmem>>, vector<2x8x8x32xf32>
    %62 = vector.shape_cast %61 : vector<2x8x8x32xf32> to vector<128x32xf32>
    %c0_76 = arith.constant 0 : index
    %c128 = arith.constant 128 : index
    %63 = vector.load %arg18[%c0_76, %c128] : memref<128x288xf32, #tpu.memory_space<vmem>>, vector<128x32xf32>
    tpu.vector_store %arg18[%c0_76, %c128], %62 {strides = array<i32>} : memref<128x288xf32, #tpu.memory_space<vmem>>, vector<128x32xf32>,
    %c0_77 = arith.constant 0 : index
    %c1_78 = arith.constant 1 : index
    %c2_79 = arith.constant 2 : index
    %c0_80 = arith.constant 0 : index
    %64 = vector.load %arg16[%c0_77, %c1_78, %c2_79, %c0_80] : memref<2x10x10x32xf32, #tpu.memory_space<vmem>>, vector<2x8x8x32xf32>
    %65 = vector.shape_cast %64 : vector<2x8x8x32xf32> to vector<128x32xf32>
    %c0_81 = arith.constant 0 : index
    %c160 = arith.constant 160 : index
    %66 = vector.load %arg18[%c0_81, %c160] : memref<128x288xf32, #tpu.memory_space<vmem>>, vector<128x32xf32>
    tpu.vector_store %arg18[%c0_81, %c160], %65 {strides = array<i32>} : memref<128x288xf32, #tpu.memory_space<vmem>>, vector<128x32xf32>,
    %c0_82 = arith.constant 0 : index
    %c2_83 = arith.constant 2 : index
    %c0_84 = arith.constant 0 : index
    %c0_85 = arith.constant 0 : index
    %67 = vector.load %arg16[%c0_82, %c2_83, %c0_84, %c0_85] : memref<2x10x10x32xf32, #tpu.memory_space<vmem>>, vector<2x8x8x32xf32>
    %68 = vector.shape_cast %67 : vector<2x8x8x32xf32> to vector<128x32xf32>
    %c0_86 = arith.constant 0 : index
    %c192 = arith.constant 192 : index
    %69 = vector.load %arg18[%c0_86, %c192] : memref<128x288xf32, #tpu.memory_space<vmem>>, vector<128x32xf32>
    tpu.vector_store %arg18[%c0_86, %c192], %68 {strides = array<i32>} : memref<128x288xf32, #tpu.memory_space<vmem>>, vector<128x32xf32>,
    %c0_87 = arith.constant 0 : index
    %c2_88 = arith.constant 2 : index
    %c1_89 = arith.constant 1 : index
    %c0_90 = arith.constant 0 : index
    %70 = vector.load %arg16[%c0_87, %c2_88, %c1_89, %c0_90] : memref<2x10x10x32xf32, #tpu.memory_space<vmem>>, vector<2x8x8x32xf32>
    %71 = vector.shape_cast %70 : vector<2x8x8x32xf32> to vector<128x32xf32>
    %c0_91 = arith.constant 0 : index
    %c224 = arith.constant 224 : index
    %72 = vector.load %arg18[%c0_91, %c224] : memref<128x288xf32, #tpu.memory_space<vmem>>, vector<128x32xf32>
    tpu.vector_store %arg18[%c0_91, %c224], %71 {strides = array<i32>} : memref<128x288xf32, #tpu.memory_space<vmem>>, vector<128x32xf32>,
    %c0_92 = arith.constant 0 : index
    %c2_93 = arith.constant 2 : index
    %c2_94 = arith.constant 2 : index
    %c0_95 = arith.constant 0 : index
    %73 = vector.load %arg16[%c0_92, %c2_93, %c2_94, %c0_95] : memref<2x10x10x32xf32, #tpu.memory_space<vmem>>, vector<2x8x8x32xf32>
    %74 = vector.shape_cast %73 : vector<2x8x8x32xf32> to vector<128x32xf32>
    %c0_96 = arith.constant 0 : index
    %c256 = arith.constant 256 : index
    %75 = vector.load %arg18[%c0_96, %c256] : memref<128x288xf32, #tpu.memory_space<vmem>>, vector<128x32xf32>
    tpu.vector_store %arg18[%c0_96, %c256], %74 {strides = array<i32>} : memref<128x288xf32, #tpu.memory_space<vmem>>, vector<128x32xf32>,
    %c0_97 = arith.constant 0 : index
    %c0_98 = arith.constant 0 : index
    %76 = vector.load %arg18[%c0_97, %c0_98] : memref<128x288xf32, #tpu.memory_space<vmem>>, vector<128x288xf32>
    %77 = arith.truncf %76 : vector<128x288xf32> to vector<128x288xbf16>
    %c0_99 = arith.constant 0 : index
    %c0_100 = arith.constant 0 : index
    %78 = vector.load %arg6[%c0_99, %c0_100] : memref<288x64xbf16, #tpu.memory_space<vmem>>, vector<288x64xbf16>
    %cst_101 = arith.constant dense<0.000000e+00> : vector<128x64xf32>
    %79 = tpu.matmul %77, %78, %cst_101 {dimension_numbers = #tpu.dot_dimension_numbers<[1], [0], [0], [1], [0, 0, 1, 1], [], []>} : vector<128x288xbf16>, vector<288x64xbf16>, vector<128x64xf32> -> vector<128x64xf32>
    %80 = vector.broadcast %48 : vector<1x64xf32> to vector<128x64xf32>
    %81 = arith.addf %79, %80 : vector<128x64xf32>
    %82 = vector.shape_cast %81 : vector<128x64xf32> to vector<2x64x64xf32>
    %c0_102 = arith.constant 0 : index
    %c0_103 = arith.constant 0 : index
    %c0_104 = arith.constant 0 : index
    %83 = vector.load %arg2[%c0_102, %c0_103, %c0_104] : memref<2x1x64xf32, #tpu.memory_space<vmem>>, vector<2x1x64xf32>
    %84 = vector.broadcast %83 : vector<2x1x64xf32> to vector<2x64x64xf32>
    %85 = arith.addf %82, %84 : vector<2x64x64xf32>
    %c0_105 = arith.constant 0 : index
    %c0_106 = arith.constant 0 : index
    %86 = vector.load %arg8[%c0_105, %c0_106] : memref<1x64xf32, #tpu.memory_space<vmem>>, vector<1x64xf32>
    %c0_107 = arith.constant 0 : index
    %c0_108 = arith.constant 0 : index
    %87 = vector.load %arg9[%c0_107, %c0_108] : memref<1x64xf32, #tpu.memory_space<vmem>>, vector<1x64xf32>
    %c0_109 = arith.constant 0 : index
    %c0_110 = arith.constant 0 : index
    %88 = vector.load %arg10[%c0_109, %c0_110] : memref<64x64xf32, #tpu.memory_space<vmem>>, vector<64x64xf32>
    %cst_111 = arith.constant dense<0.000000e+00> : vector<2x64xf32>
    %89 = vector.multi_reduction <add>, %85, %cst_111 [1] : vector<2x64x64xf32> to vector<2x64xf32>
    %90 = arith.mulf %85, %85 : vector<2x64x64xf32>
    %cst_112 = arith.constant dense<0.000000e+00> : vector<2x64xf32>
    %91 = vector.multi_reduction <add>, %90, %cst_112 [1] : vector<2x64x64xf32> to vector<2x64xf32>
    %92 = tpu.concatenate %89, %91 in 0 : vector<2x64xf32>, vector<2x64xf32> -> vector<4x64xf32>
    %cst_113 = arith.constant dense<0.000000e+00> : vector<4x64xf32>
    %93 = tpu.matmul %92, %88, %cst_113 {dimension_numbers = #tpu.dot_dimension_numbers<[1], [0], [0], [1], [0, 0, 1, 1], [], []>, precision = #tpu.contract_precision<fp32>} : vector<4x64xf32>, vector<64x64xf32>, vector<4x64xf32> -> vector<4x64xf32>
    %94 = vector.extract_strided_slice %93 {offsets = [0, 0], sizes = [2, 64], strides = [1, 1]} : vector<4x64xf32> to vector<2x64xf32>
    %95 = vector.extract_strided_slice %93 {offsets = [2, 0], sizes = [2, 64], strides = [1, 1]} : vector<4x64xf32> to vector<2x64xf32>
    %cst_114 = arith.constant 7.812500e-03 : f32
    %96 = vector.broadcast %cst_114 : f32 to vector<2x64xf32>
    %97 = arith.mulf %94, %96 : vector<2x64xf32>
    %cst_115 = arith.constant 7.812500e-03 : f32
    %98 = vector.broadcast %cst_115 : f32 to vector<2x64xf32>
    %99 = arith.mulf %95, %98 : vector<2x64xf32>
    %100 = arith.mulf %97, %97 : vector<2x64xf32>
    %101 = arith.subf %99, %100 : vector<2x64xf32>
    %cst_116 = arith.constant 9.99999997E-7 : f32
    %102 = vector.broadcast %cst_116 : f32 to vector<2x64xf32>
    %103 = arith.addf %101, %102 : vector<2x64xf32>
    %104 = math.rsqrt %103 : vector<2x64xf32>
    %105 = vector.shape_cast %97 : vector<2x64xf32> to vector<2x1x64xf32>
    %106 = vector.broadcast %105 : vector<2x1x64xf32> to vector<2x64x64xf32>
    %107 = arith.subf %85, %106 : vector<2x64x64xf32>
    %108 = vector.shape_cast %104 : vector<2x64xf32> to vector<2x1x64xf32>
    %109 = vector.broadcast %108 : vector<2x1x64xf32> to vector<2x64x64xf32>
    %110 = arith.mulf %107, %109 : vector<2x64x64xf32>
    %111 = vector.shape_cast %86 : vector<1x64xf32> to vector<1x1x64xf32>
    %112 = vector.broadcast %111 : vector<1x1x64xf32> to vector<2x64x64xf32>
    %113 = arith.mulf %110, %112 : vector<2x64x64xf32>
    %114 = vector.shape_cast %87 : vector<1x64xf32> to vector<1x1x64xf32>
    %115 = vector.broadcast %114 : vector<1x1x64xf32> to vector<2x64x64xf32>
    %116 = arith.addf %113, %115 : vector<2x64x64xf32>
    %117 = arith.negf %116 : vector<2x64x64xf32>
    %118 = math.exp %117 : vector<2x64x64xf32>
    %cst_117 = arith.constant 1.000000e+00 : f32
    %119 = vector.broadcast %cst_117 : f32 to vector<2x64x64xf32>
    %120 = arith.addf %119, %118 : vector<2x64x64xf32>
    %121 = arith.divf %119, %120 : vector<2x64x64xf32>
    %122 = arith.mulf %116, %121 : vector<2x64x64xf32>
    %123 = vector.shape_cast %122 : vector<2x64x64xf32> to vector<2x8x8x64xf32>
    %c0_118 = arith.constant 0 : index
    %c1_119 = arith.constant 1 : index
    %c1_120 = arith.constant 1 : index
    %c0_121 = arith.constant 0 : index
    %124 = vector.load %arg17[%c0_118, %c1_119, %c1_120, %c0_121] : memref<2x10x10x64xf32, #tpu.memory_space<vmem>>, vector<2x8x8x64xf32>
    tpu.vector_store %arg17[%c0_118, %c1_119, %c1_120, %c0_121], %123 {strides = array<i32>} : memref<2x10x10x64xf32, #tpu.memory_space<vmem>>, vector<2x8x8x64xf32>,
    %c0_122 = arith.constant 0 : index
    %c0_123 = arith.constant 0 : index
    %125 = vector.load %arg12[%c0_122, %c0_123] : memref<1x64xf32, #tpu.memory_space<vmem>>, vector<1x64xf32>
    %c0_124 = arith.constant 0 : index
    %c0_125 = arith.constant 0 : index
    %c0_126 = arith.constant 0 : index
    %c0_127 = arith.constant 0 : index
    %126 = vector.load %arg17[%c0_124, %c0_125, %c0_126, %c0_127] : memref<2x10x10x64xf32, #tpu.memory_space<vmem>>, vector<2x8x8x64xf32>
    %127 = vector.shape_cast %126 : vector<2x8x8x64xf32> to vector<128x64xf32>
    %c0_128 = arith.constant 0 : index
    %c0_129 = arith.constant 0 : index
    %128 = vector.load %arg19[%c0_128, %c0_129] : memref<128x576xf32, #tpu.memory_space<vmem>>, vector<128x64xf32>
    tpu.vector_store %arg19[%c0_128, %c0_129], %127 {strides = array<i32>} : memref<128x576xf32, #tpu.memory_space<vmem>>, vector<128x64xf32>,
    %c0_130 = arith.constant 0 : index
    %c0_131 = arith.constant 0 : index
    %c1_132 = arith.constant 1 : index
    %c0_133 = arith.constant 0 : index
    %129 = vector.load %arg17[%c0_130, %c0_131, %c1_132, %c0_133] : memref<2x10x10x64xf32, #tpu.memory_space<vmem>>, vector<2x8x8x64xf32>
    %130 = vector.shape_cast %129 : vector<2x8x8x64xf32> to vector<128x64xf32>
    %c0_134 = arith.constant 0 : index
    %c64_135 = arith.constant 64 : index
    %131 = vector.load %arg19[%c0_134, %c64_135] : memref<128x576xf32, #tpu.memory_space<vmem>>, vector<128x64xf32>
    tpu.vector_store %arg19[%c0_134, %c64_135], %130 {strides = array<i32>} : memref<128x576xf32, #tpu.memory_space<vmem>>, vector<128x64xf32>,
    %c0_136 = arith.constant 0 : index
    %c0_137 = arith.constant 0 : index
    %c2_138 = arith.constant 2 : index
    %c0_139 = arith.constant 0 : index
    %132 = vector.load %arg17[%c0_136, %c0_137, %c2_138, %c0_139] : memref<2x10x10x64xf32, #tpu.memory_space<vmem>>, vector<2x8x8x64xf32>
    %133 = vector.shape_cast %132 : vector<2x8x8x64xf32> to vector<128x64xf32>
    %c0_140 = arith.constant 0 : index
    %c128_141 = arith.constant 128 : index
    %134 = vector.load %arg19[%c0_140, %c128_141] : memref<128x576xf32, #tpu.memory_space<vmem>>, vector<128x64xf32>
    tpu.vector_store %arg19[%c0_140, %c128_141], %133 {strides = array<i32>} : memref<128x576xf32, #tpu.memory_space<vmem>>, vector<128x64xf32>,
    %c0_142 = arith.constant 0 : index
    %c1_143 = arith.constant 1 : index
    %c0_144 = arith.constant 0 : index
    %c0_145 = arith.constant 0 : index
    %135 = vector.load %arg17[%c0_142, %c1_143, %c0_144, %c0_145] : memref<2x10x10x64xf32, #tpu.memory_space<vmem>>, vector<2x8x8x64xf32>
    %136 = vector.shape_cast %135 : vector<2x8x8x64xf32> to vector<128x64xf32>
    %c0_146 = arith.constant 0 : index
    %c192_147 = arith.constant 192 : index
    %137 = vector.load %arg19[%c0_146, %c192_147] : memref<128x576xf32, #tpu.memory_space<vmem>>, vector<128x64xf32>
    tpu.vector_store %arg19[%c0_146, %c192_147], %136 {strides = array<i32>} : memref<128x576xf32, #tpu.memory_space<vmem>>, vector<128x64xf32>,
    %c0_148 = arith.constant 0 : index
    %c1_149 = arith.constant 1 : index
    %c1_150 = arith.constant 1 : index
    %c0_151 = arith.constant 0 : index
    %138 = vector.load %arg17[%c0_148, %c1_149, %c1_150, %c0_151] : memref<2x10x10x64xf32, #tpu.memory_space<vmem>>, vector<2x8x8x64xf32>
    %139 = vector.shape_cast %138 : vector<2x8x8x64xf32> to vector<128x64xf32>
    %c0_152 = arith.constant 0 : index
    %c256_153 = arith.constant 256 : index
    %140 = vector.load %arg19[%c0_152, %c256_153] : memref<128x576xf32, #tpu.memory_space<vmem>>, vector<128x64xf32>
    tpu.vector_store %arg19[%c0_152, %c256_153], %139 {strides = array<i32>} : memref<128x576xf32, #tpu.memory_space<vmem>>, vector<128x64xf32>,
    %c0_154 = arith.constant 0 : index
    %c1_155 = arith.constant 1 : index
    %c2_156 = arith.constant 2 : index
    %c0_157 = arith.constant 0 : index
    %141 = vector.load %arg17[%c0_154, %c1_155, %c2_156, %c0_157] : memref<2x10x10x64xf32, #tpu.memory_space<vmem>>, vector<2x8x8x64xf32>
    %142 = vector.shape_cast %141 : vector<2x8x8x64xf32> to vector<128x64xf32>
    %c0_158 = arith.constant 0 : index
    %c320 = arith.constant 320 : index
    %143 = vector.load %arg19[%c0_158, %c320] : memref<128x576xf32, #tpu.memory_space<vmem>>, vector<128x64xf32>
    tpu.vector_store %arg19[%c0_158, %c320], %142 {strides = array<i32>} : memref<128x576xf32, #tpu.memory_space<vmem>>, vector<128x64xf32>,
    %c0_159 = arith.constant 0 : index
    %c2_160 = arith.constant 2 : index
    %c0_161 = arith.constant 0 : index
    %c0_162 = arith.constant 0 : index
    %144 = vector.load %arg17[%c0_159, %c2_160, %c0_161, %c0_162] : memref<2x10x10x64xf32, #tpu.memory_space<vmem>>, vector<2x8x8x64xf32>
    %145 = vector.shape_cast %144 : vector<2x8x8x64xf32> to vector<128x64xf32>
    %c0_163 = arith.constant 0 : index
    %c384 = arith.constant 384 : index
    %146 = vector.load %arg19[%c0_163, %c384] : memref<128x576xf32, #tpu.memory_space<vmem>>, vector<128x64xf32>
    tpu.vector_store %arg19[%c0_163, %c384], %145 {strides = array<i32>} : memref<128x576xf32, #tpu.memory_space<vmem>>, vector<128x64xf32>,
    %c0_164 = arith.constant 0 : index
    %c2_165 = arith.constant 2 : index
    %c1_166 = arith.constant 1 : index
    %c0_167 = arith.constant 0 : index
    %147 = vector.load %arg17[%c0_164, %c2_165, %c1_166, %c0_167] : memref<2x10x10x64xf32, #tpu.memory_space<vmem>>, vector<2x8x8x64xf32>
    %148 = vector.shape_cast %147 : vector<2x8x8x64xf32> to vector<128x64xf32>
    %c0_168 = arith.constant 0 : index
    %c448 = arith.constant 448 : index
    %149 = vector.load %arg19[%c0_168, %c448] : memref<128x576xf32, #tpu.memory_space<vmem>>, vector<128x64xf32>
    tpu.vector_store %arg19[%c0_168, %c448], %148 {strides = array<i32>} : memref<128x576xf32, #tpu.memory_space<vmem>>, vector<128x64xf32>,
    %c0_169 = arith.constant 0 : index
    %c2_170 = arith.constant 2 : index
    %c2_171 = arith.constant 2 : index
    %c0_172 = arith.constant 0 : index
    %150 = vector.load %arg17[%c0_169, %c2_170, %c2_171, %c0_172] : memref<2x10x10x64xf32, #tpu.memory_space<vmem>>, vector<2x8x8x64xf32>
    %151 = vector.shape_cast %150 : vector<2x8x8x64xf32> to vector<128x64xf32>
    %c0_173 = arith.constant 0 : index
    %c512 = arith.constant 512 : index
    %152 = vector.load %arg19[%c0_173, %c512] : memref<128x576xf32, #tpu.memory_space<vmem>>, vector<128x64xf32>
    tpu.vector_store %arg19[%c0_173, %c512], %151 {strides = array<i32>} : memref<128x576xf32, #tpu.memory_space<vmem>>, vector<128x64xf32>,
    %c0_174 = arith.constant 0 : index
    %c0_175 = arith.constant 0 : index
    %153 = vector.load %arg19[%c0_174, %c0_175] : memref<128x576xf32, #tpu.memory_space<vmem>>, vector<128x576xf32>
    %154 = arith.truncf %153 : vector<128x576xf32> to vector<128x576xbf16>
    %c0_176 = arith.constant 0 : index
    %c0_177 = arith.constant 0 : index
    %155 = vector.load %arg11[%c0_176, %c0_177] : memref<576x64xbf16, #tpu.memory_space<vmem>>, vector<576x64xbf16>
    %cst_178 = arith.constant dense<0.000000e+00> : vector<128x64xf32>
    %156 = tpu.matmul %154, %155, %cst_178 {dimension_numbers = #tpu.dot_dimension_numbers<[1], [0], [0], [1], [0, 0, 1, 1], [], []>} : vector<128x576xbf16>, vector<576x64xbf16>, vector<128x64xf32> -> vector<128x64xf32>
    %157 = vector.broadcast %125 : vector<1x64xf32> to vector<128x64xf32>
    %158 = arith.addf %156, %157 : vector<128x64xf32>
    %159 = vector.shape_cast %158 : vector<128x64xf32> to vector<2x64x64xf32>
    %160 = vector.shape_cast %13 : vector<2x64x32xf32> to vector<128x32xf32>
    %161 = arith.truncf %160 : vector<128x32xf32> to vector<128x32xbf16>
    %c0_179 = arith.constant 0 : index
    %c0_180 = arith.constant 0 : index
    %162 = vector.load %arg13[%c0_179, %c0_180] : memref<32x64xbf16, #tpu.memory_space<vmem>>, vector<32x64xbf16>
    %cst_181 = arith.constant dense<0.000000e+00> : vector<128x64xf32>
    %163 = tpu.matmul %161, %162, %cst_181 {dimension_numbers = #tpu.dot_dimension_numbers<[1], [0], [0], [1], [0, 0, 1, 1], [], []>} : vector<128x32xbf16>, vector<32x64xbf16>, vector<128x64xf32> -> vector<128x64xf32>
    %c0_182 = arith.constant 0 : index
    %c0_183 = arith.constant 0 : index
    %164 = vector.load %arg14[%c0_182, %c0_183] : memref<1x64xf32, #tpu.memory_space<vmem>>, vector<1x64xf32>
    %165 = vector.broadcast %164 : vector<1x64xf32> to vector<128x64xf32>
    %166 = arith.addf %163, %165 : vector<128x64xf32>
    %167 = vector.shape_cast %166 : vector<128x64xf32> to vector<2x64x64xf32>
    %168 = arith.addf %159, %167 : vector<2x64x64xf32>
    %169 = vector.shape_cast %168 : vector<2x64x64xf32> to vector<2x8x8x64xf32>
    %c0_184 = arith.constant 0 : index
    %c0_185 = arith.constant 0 : index
    %c0_186 = arith.constant 0 : index
    %c0_187 = arith.constant 0 : index
    %170 = vector.load %arg15[%c0_184, %c0_185, %c0_186, %c0_187] : memref<2x8x8x64xf32, #tpu.memory_space<vmem>>, vector<2x8x8x64xf32>
    tpu.vector_store %arg15[%c0_184, %c0_185, %c0_186, %c0_187], %169 {strides = array<i32>} : memref<2x8x8x64xf32, #tpu.memory_space<vmem>>, vector<2x8x8x64xf32>,
    return
  }
  func.func @transform_0(%arg0: i32) -> (i32, i32, i32, i32) {
    %c0_i32 = arith.constant 0 : i32
    %c0_i32_0 = arith.constant 0 : i32
    %c0_i32_1 = arith.constant 0 : i32
    %c0_i32_2 = arith.constant 0 : i32
    return %arg0, %c0_i32, %c0_i32_0, %c0_i32_1 : i32, i32, i32, i32
  }
  func.func @transform_1(%arg0: i32) -> (i32, i32, i32) {
    %c0_i32 = arith.constant 0 : i32
    %c0_i32_0 = arith.constant 0 : i32
    %c0_i32_1 = arith.constant 0 : i32
    return %arg0, %c0_i32, %c0_i32_0 : i32, i32, i32
  }
  func.func @transform_2(%arg0: i32) -> (i32, i32) {
    %c0_i32 = arith.constant 0 : i32
    %c0_i32_0 = arith.constant 0 : i32
    %c0_i32_1 = arith.constant 0 : i32
    return %c0_i32, %c0_i32_0 : i32, i32
  }
  func.func @transform_3(%arg0: i32) -> (i32, i32) {
    %c0_i32 = arith.constant 0 : i32
    %c0_i32_0 = arith.constant 0 : i32
    %c0_i32_1 = arith.constant 0 : i32
    return %c0_i32, %c0_i32_0 : i32, i32
  }
  func.func @transform_4(%arg0: i32) -> (i32, i32) {
    %c0_i32 = arith.constant 0 : i32
    %c0_i32_0 = arith.constant 0 : i32
    %c0_i32_1 = arith.constant 0 : i32
    return %c0_i32, %c0_i32_0 : i32, i32
  }
  func.func @transform_5(%arg0: i32) -> (i32, i32) {
    %c0_i32 = arith.constant 0 : i32
    %c0_i32_0 = arith.constant 0 : i32
    %c0_i32_1 = arith.constant 0 : i32
    return %c0_i32, %c0_i32_0 : i32, i32
  }
  func.func @transform_6(%arg0: i32) -> (i32, i32) {
    %c0_i32 = arith.constant 0 : i32
    %c0_i32_0 = arith.constant 0 : i32
    %c0_i32_1 = arith.constant 0 : i32
    return %c0_i32, %c0_i32_0 : i32, i32
  }
  func.func @transform_7(%arg0: i32) -> (i32, i32) {
    %c0_i32 = arith.constant 0 : i32
    %c0_i32_0 = arith.constant 0 : i32
    %c0_i32_1 = arith.constant 0 : i32
    return %c0_i32, %c0_i32_0 : i32, i32
  }
  func.func @transform_8(%arg0: i32) -> (i32, i32) {
    %c0_i32 = arith.constant 0 : i32
    %c0_i32_0 = arith.constant 0 : i32
    %c0_i32_1 = arith.constant 0 : i32
    return %c0_i32, %c0_i32_0 : i32, i32
  }
  func.func @transform_9(%arg0: i32) -> (i32, i32) {
    %c0_i32 = arith.constant 0 : i32
    %c0_i32_0 = arith.constant 0 : i32
    %c0_i32_1 = arith.constant 0 : i32
    return %c0_i32, %c0_i32_0 : i32, i32
  }
  func.func @transform_10(%arg0: i32) -> (i32, i32) {
    %c0_i32 = arith.constant 0 : i32
    %c0_i32_0 = arith.constant 0 : i32
    %c0_i32_1 = arith.constant 0 : i32
    return %c0_i32, %c0_i32_0 : i32, i32
  }
  func.func @transform_11(%arg0: i32) -> (i32, i32) {
    %c0_i32 = arith.constant 0 : i32
    %c0_i32_0 = arith.constant 0 : i32
    %c0_i32_1 = arith.constant 0 : i32
    return %c0_i32, %c0_i32_0 : i32, i32
  }
  func.func @transform_12(%arg0: i32) -> (i32, i32) {
    %c0_i32 = arith.constant 0 : i32
    %c0_i32_0 = arith.constant 0 : i32
    %c0_i32_1 = arith.constant 0 : i32
    return %c0_i32, %c0_i32_0 : i32, i32
  }
  func.func @transform_13(%arg0: i32) -> (i32, i32) {
    %c0_i32 = arith.constant 0 : i32
    %c0_i32_0 = arith.constant 0 : i32
    %c0_i32_1 = arith.constant 0 : i32
    return %c0_i32, %c0_i32_0 : i32, i32
  }
  func.func @transform_14(%arg0: i32) -> (i32, i32, i32, i32) {
    %c0_i32 = arith.constant 0 : i32
    %c0_i32_0 = arith.constant 0 : i32
    %c0_i32_1 = arith.constant 0 : i32
    %c0_i32_2 = arith.constant 0 : i32
    return %arg0, %c0_i32, %c0_i32_0, %c0_i32_1 : i32, i32, i32, i32
  }
}

</mosaic_0001>

<bundles_post_ra>
// kernel: tpu_custom_call.1
= control target key start
LH: loop header
LB: loop body
LE: loop exit
PB: predicated region body
PF: predicated region fallthrough
CT: control target
= control target key end

     0   :  { %s7965_s0 = inlined_call_operand.vmem [shape: f32[4,8,8,32], index: 0, kind: input, shape index: {}]   ;;  %s7966_s1 = inlined_call_operand.vmem [shape: f32[4,1,64], index: 1, kind: input, shape index: {}]   ;;  %s7967_s2 = inlined_call_operand.vmem [shape: f32[1,32], index: 2, kind: input, shape index: {}]   ;;  %s7968_s3 = inlined_call_operand.vmem [shape: f32[1,32], index: 3, kind: input, shape index: {}]   ;;  %s7969_s4 = inlined_call_operand.vmem [shape: f32[32,32], index: 4, kind: input, shape index: {}]   ;;  %s7970_s5 = inlined_call_operand.vmem [shape: bf16[288,64], index: 5, kind: input, shape index: {}]   ;;  %s7971_s6 = inlined_call_operand.vmem [shape: f32[1,64], index: 6, kind: input, shape index: {}]   ;;  %s7972_s7 = inlined_call_operand.vmem [shape: f32[1,64], index: 7, kind: input, shape index: {}]   ;;  %s7973_s8 = inlined_call_operand.vmem [shape: f32[1,64], index: 8, kind: input, shape index: {}]   ;;  %s7974_s9 = inlined_call_operand.vmem [shape: f32[64,64], index: 9, kind: input, shape index: {}]   ;;  %s7975_s10 = inlined_call_operand.vmem [shape: bf16[576,64], index: 10, kind: input, shape index: {}]   ;;  %s7976_s11 = inlined_call_operand.vmem [shape: f32[1,64], index: 11, kind: input, shape index: {}]   ;;  %s7977_s12 = inlined_call_operand.vmem [shape: bf16[32,64], index: 12, kind: input, shape index: {}]   ;;  %s7978_s13 = inlined_call_operand.vmem [shape: f32[1,64], index: 13, kind: input, shape index: {}]   ;;  %s7979_s14 = inlined_call_operand.hbm [shape: f32[4,8,8,64], index: 14, kind: output, shape index: {}]  }
   0x1   :  { %7994 = sst [smem:[#allocation9_spill]] %s7965_s0 }
   0x2   :  { %7995 = sst [smem:[#allocation10_spill]] %s7966_s1 }
   0x3   :  { %7996 = sst [smem:[#allocation11_spill]] %s7967_s2 }
   0x4   :  { %19 = vsyncpa [#allocation7], 0 }
   0x5   :  { %21 = vsyncpa [#allocation7 + $0x1], 0  ;;  %s5208_s28 = smov 0   ;;  %s5210_s29 = smov 0  }
   0x6   :  { %s5212_s30 = smov 0   ;;  %s5214_s15 = smov 0  }
   0x7 LB: > { %s5229_s16 = sadd.s32 4294967295, %s5125_s15   ;;  %s4492_s17 = sadd.s32 4294967294, %s5125_s15   ;;  %s5125_s15 = sphi %s5214_s15, %s8092_s15   ;;  %s5121_s30 = sphi %s5212_s30, %s8091_s30   ;;  %s5117_s29 = sphi %s5210_s29, %s8090_s29   ;;  %s5113_s28 = sphi %s5208_s28, %s8089_s28  }
   0x8   : > { %s5233_s18 = sadd.s32 1, %s5125_s15   ;;  %s338_s19 = sadd.s32 1, %s5121_s30 }
   0x9   : > { %s335_s20 = ssub.s32 %s5125_s15, %s5233_s18  ;;  %p348_p0 = scmp.ne.s32.totalorder %s5121_s30, %s5117_s29 }
   0xa   : > { %p336_p1 = scmp.eq.s32.totalorder %s335_s20, 0  ;;  %p349_p2 = scmp.eq.s32.totalorder %s5229_s16, 1 }
   0xb   : > { %p354_p3 = scmp.ne.s32.totalorder %s5117_s29, %s5113_s28  ;;  %p355_p4 = scmp.eq.s32.totalorder %s4492_s17, 1 }
   0xc   : > { %s5244_s21 = scalar_select %p336_p1, %s5121_s30, %s338_s19  }
   0xd   : > { %p5246_p5 = por %p349_p2, %p348_p0  ;;  %p5250_p6 = por %p355_p4, %p354_p3 }
   0xe   : > { %p4495_p7 = scmp.ge.s32.totalorder %s5125_s15, 1  ;;  %p427_p8 = scmp.lt.s32.totalorder %s5125_s15, 3 }
  0x10   : > { %p428_p9 = pnand %p4495_p7, %p427_p8 }
  0x11   : > { %s4497_s23 = sshll.u32 (!%p428_p9), %s5229_s16, 1  ;;  %s7999_s0 = sld [smem:[#allocation9_spill]] (!%p428_p9) }
  0x12   : > { %431 = sbr.rel (%p428_p9) target bundleno = 1457 (0x5b1), region = 76  ;;  %p479_p10 = scmp.lt.s32.totalorder (!%p428_p9), %s4497_s23, 3 }
  0x13   : > { %s5128_s17 = smov (!%p428_p9), 32   ;;  %s7980_s19 = smov (!%p428_p9), 64  }
  0x14   : > { %s8000_s2 = sld [smem:[#allocation11_spill]] (!%p428_p9)  ;;  %s7982_s20 = smov (!%p428_p9), 96  }
  0x15   : > { %s8038_s25 = smov (!%p428_p9), 96   ;;  %s8039_s1 = sld [smem:[#allocation10_spill]] (!%p428_p9) }
  0x16   : > { %s4845_s26 = sshll.u32 (!%p428_p9), %s5229_s16, 7 }
  0x17   : > { %vm7992_vm0 = vcmask 261120   ;;  %vm494_vm1 = vcmask 254976   ;;  %v7984_v0 = vmov 0.0   ;;  %vm503_vm2 = vcmask 253952   ;;  %s8094_s23 = smov (!%p479_p10, %s4497_s23), 3 }
  0x18   : > { %493 = vst.msk [vmem:[#allocation2] sm:$0xff] %vm7992_vm0, %v7984_v0  ;;  %s4787_s24 = sshll.u32 %s8094_s23, 6 }
  0x19   : > { %495 = vst.msk [vmem:[#allocation2 + $0x8] sm:$0x3] %vm494_vm1, %v7984_v0  ;;  %s5277_s27 = scalar_lea.vmem %s7999_s0, %s4787_s24  ;;  %s8029_s0 = smov 64  }
  0x1a   : > { %504 = vst.msk [vmem:[#allocation2] sm:$0x1] %vm503_vm2, %v7984_v0  ;;  %v5282_v1 = vld [vmem:[%s5277_s27] sm:$0xff]  ;;  %v5285_v2 = vld [vmem:[%s5277_s27 + $0x8] sm:$0xff]  ;;  %v5288_v3 = vld [vmem:[%s5277_s27 + $0x10] sm:$0xff]  ;;  %s4417_s24 = scalar_lea.hbm %s7979_s14, %s4845_s26 }
  0x1b   : > { %496 = vst.msk [vmem:[#allocation2 + $0xa0] sm:$0xff] %vm7992_vm0, %v7984_v0  ;;  %v5293_v5 = vld [vmem:[%s5277_s27 + $0x18] sm:$0xff]  ;;  %v614_v6 = vsel %vm7992_vm0, %v5282_v1, 0.0  ;;  %v656_v7 = vmul.f32 %v5282_v1, %v5282_v1  ;;  %v615_v8 = vsel %vm7992_vm0, %v5285_v2, 0.0  ;;  %v657_v9 = vmul.f32 %v5285_v2, %v5285_v2  ;;  %v5311_v11 = vld [vmem:[%s5277_s27 + $0x20] sm:$0xff]  ;;  %v5324_v16 = vld [vmem:[%s5277_s27 + $0x28] sm:$0xff] }
  0x1c   : > { %497 = vst.msk [vmem:[#allocation2 + $0xa8] sm:$0x3] %vm494_vm1, %v7984_v0  ;;  %v658_v10 = vmul.f32 %v5288_v3, %v5288_v3  ;;  %v616_v12 = vadd.f32 %v615_v8, %v614_v6  ;;  %v617_v13 = vsel %vm7992_vm0, %v5288_v3, 0.0  ;;  %v619_v14 = vsel %vm7992_vm0, %v5293_v5, 0.0  ;;  %v5338_v24 = vld [vmem:[%s5277_s27 + $0x30] sm:$0xff]  ;;  %v5350_v30 = vld [vmem:[%s5277_s27 + $0x38] sm:$0xff] }
  0x1d   : > { %499 = vst.msk [vmem:[#allocation2 + $0x90] sm:$0xff] %vm7992_vm0, %v7984_v0  ;;  %v659_v15 = vmul.f32 %v5293_v5, %v5293_v5  ;;  %v672_v18 = vsel %vm7992_vm0, %v656_v7, 0.0  ;;  %v621_v19 = vsel %vm7992_vm0, %v5311_v11, 0.0  ;;  %v660_v20 = vmul.f32 %v5311_v11, %v5311_v11  ;;  %v5433_v8 = vld [vmem:[%s5277_s27 + $0x40] sm:$0xff] }
  0x1e   : > { %500 = vst.msk [vmem:[#allocation2 + $0x98] sm:$0x3] %vm494_vm1, %v7984_v0  ;;  %v618_v17 = vadd.f32 %v617_v13, %v616_v12  ;;  %v673_v21 = vsel %vm7992_vm0, %v657_v9, 0.0  ;;  %v675_v22 = vsel %vm7992_vm0, %v658_v10, 0.0  ;;  %v623_v27 = vsel %vm7992_vm0, %v5324_v16, 0.0  ;;  %v5436_v9 = vld [vmem:[%s5277_s27 + $0x48] sm:$0xff] }
  0x1f   : > { %501 = vst.msk [vmem:[#allocation2 + $0x130] sm:$0xff] %vm7992_vm0, %v7984_v0  ;;  %v674_v26 = vadd.f32 %v673_v21, %v672_v18  ;;  %v661_v28 = vmul.f32 %v5324_v16, %v5324_v16  ;;  %v677_v29 = vsel %vm7992_vm0, %v659_v15, 0.0  ;;  %v625_v33 = vsel %vm7992_vm0, %v5338_v24, 0.0 }
  0x20   : > { %v1184_v4 = vld [vmem:[#allocation2 + $0x1] sm:$0xff]  ;;  %502 = vst.msk [vmem:[#allocation2 + $0x138] sm:$0x3] %vm494_vm1, %v7984_v0  ;;  %v620_v25 = vadd.f32 %v619_v14, %v618_v17  ;;  %v662_v34 = vmul.f32 %v5338_v24, %v5338_v24  ;;  %v679_v35 = vsel %vm7992_vm0, %v660_v20, 0.0  ;;  %v627_v38 = vsel %vm7992_vm0, %v5350_v30, 0.0 }
  0x21   : > { %1216 = vrot.lane.b32.xlu0 %v1184_v4, %s5128_s17  ;;  %505 = vst.msk [vmem:[#allocation2 + $0x10] sm:$0x1] %vm503_vm2, %v7984_v0  ;;  %v676_v32 = vadd.f32 %v675_v22, %v674_v26  ;;  %v663_v39 = vmul.f32 %v5350_v30, %v5350_v30  ;;  %v681_v40 = vsel %vm7992_vm0, %v661_v28, 0.0  ;;  %v635_v10 = vsel %vm7992_vm0, %v5433_v8, 0.0  ;;  %v5447_v17 = vld [vmem:[%s5277_s27 + $0x50] sm:$0xff]  ;;  %v5454_v22 = vld [vmem:[%s5277_s27 + $0x58] sm:$0xff] }
  0x22   : > { %506 = vst.msk [vmem:[#allocation2 + $0x20] sm:$0x1] %vm503_vm2, %v7984_v0  ;;  %v622_v31 = vadd.f32 %v621_v19, %v620_v25  ;;  %v683_v43 = vsel %vm7992_vm0, %v662_v34, 0.0  ;;  %v636_v12 = vsel %vm7992_vm0, %v5436_v9, 0.0  ;;  %v664_v13 = vmul.f32 %v5433_v8, %v5433_v8 }
  0x23   : > { %507 = vst.msk [vmem:[#allocation2 + $0x30] sm:$0x1] %vm503_vm2, %v7984_v0  ;;  %v1192_v23 = vld [vmem:[#allocation2 + $0xa1] sm:$0xff]  ;;  %v678_v37 = vadd.f32 %v677_v29, %v676_v32  ;;  %v685_v46 = vsel %vm7992_vm0, %v663_v39, 0.0  ;;  %v665_v14 = vmul.f32 %v5436_v9, %v5436_v9  ;;  %v637_v18 = vadd.f32 %v636_v12, %v635_v10 }
  0x24   : > { %508 = vst.msk [vmem:[#allocation2 + $0x40] sm:$0x1] %vm503_vm2, %v7984_v0  ;;  %v624_v36 = vadd.f32 %v623_v27, %v622_v31  ;;  %v638_v20 = vsel %vm7992_vm0, %v5447_v17, 0.0  ;;  %v666_v21 = vmul.f32 %v5447_v17, %v5447_v17  ;;  %v693_v25 = vsel %vm7992_vm0, %v664_v13, 0.0  ;;  %v5463_v31 = vld [vmem:[%s5277_s27 + $0x60] sm:$0xff] }
  0x25   : > { %509 = vst.msk [vmem:[#allocation2 + $0x50] sm:$0x1] %vm503_vm2, %v7984_v0  ;;  %v680_v42 = vadd.f32 %v679_v35, %v678_v37  ;;  %v640_v27 = vsel %vm7992_vm0, %v5454_v22, 0.0  ;;  %v667_v28 = vmul.f32 %v5454_v22, %v5454_v22  ;;  %v694_v29 = vsel %vm7992_vm0, %v665_v14, 0.0 }
  0x26   : > { %510 = vst.msk [vmem:[#allocation2 + $0x60] sm:$0x1] %vm503_vm2, %v7984_v0  ;;  %v626_v41 = vadd.f32 %v625_v33, %v624_v36  ;;  %v695_v33 = vadd.f32 %v694_v29, %v693_v25  ;;  %v696_v34 = vsel %vm7992_vm0, %v666_v21, 0.0  ;;  %v642_v36 = vsel %vm7992_vm0, %v5463_v31, 0.0 }
  0x27   : > { %511 = vst.msk [vmem:[#allocation2 + $0x70] sm:$0x1] %vm503_vm2, %v7984_v0  ;;  %v682_v45 = vadd.f32 %v681_v40, %v680_v42  ;;  %v668_v37 = vmul.f32 %v5463_v31, %v5463_v31 }
  0x28   : > { %512 = vst.msk [vmem:[#allocation2 + $0x80] sm:$0x1] %vm503_vm2, %v7984_v0  ;;  %v628_v44 = vadd.f32 %v627_v38, %v626_v41  ;;  %v698_v38 = vsel %vm7992_vm0, %v667_v28, 0.0  ;;  %v5476_v41 = vld [vmem:[%s5277_s27 + $0x68] sm:$0xff] }
  0x29   : > { %515 = vst.msk [vmem:[#allocation2 + $0xb0] sm:$0x1] %vm503_vm2, %v7984_v0  ;;  %1232 = vrot.lane.b32.xlu0 %v1192_v23, %s5128_s17  ;;  %v684_v48 = vadd.f32 %v683_v43, %v682_v45  ;;  %v639_v23 = vadd.f32 %v638_v20, %v637_v18  ;;  %v697_v43 = vadd.f32 %v696_v34, %v695_v33  ;;  %v644_v45 = vsel %vm7992_vm0, %v5476_v41, 0.0 }
  0x2a   : > { %516 = vst.msk [vmem:[#allocation2 + $0xc0] sm:$0x1] %vm503_vm2, %v7984_v0  ;;  %v629_v47 = vrot.slane %v628_v44, 4 }
  0x2b   : > { %517 = vst.msk [vmem:[#allocation2 + $0xd0] sm:$0x1] %vm503_vm2, %v7984_v0  ;;  %v686_v50 = vadd.f32 %v685_v46, %v684_v48  ;;  %v641_v32 = vadd.f32 %v640_v27, %v639_v23  ;;  %v669_v46 = vmul.f32 %v5476_v41, %v5476_v41  ;;  %v5490_v48 = vld [vmem:[%s5277_s27 + $0x70] sm:$0xff] }
  0x2c   : > { %518 = vst.msk [vmem:[#allocation2 + $0xe0] sm:$0x1] %vm503_vm2, %v7984_v0  ;;  %v630_v49 = vadd.f32 %v629_v47, %v628_v44  ;;  %v700_v47 = vsel %vm7992_vm0, %v668_v37, 0.0 }
  0x2d   : > { %519 = vst.msk [vmem:[#allocation2 + $0xf0] sm:$0x1] %vm503_vm2, %v7984_v0  ;;  %v687_v52 = vrot.slane %v686_v50, 4  ;;  %v643_v42 = vadd.f32 %v642_v36, %v641_v32 }
  0x2e   : > { %520 = vst.msk [vmem:[#allocation2 + $0x100] sm:$0x1] %vm503_vm2, %v7984_v0  ;;  %v631_v51 = vrot.slane %v630_v49, 2 }
  0x2f   : > { %521 = vst.msk [vmem:[#allocation2 + $0x110] sm:$0x1] %vm503_vm2, %v7984_v0  ;;  %v688_v54 = vadd.f32 %v687_v52, %v686_v50  ;;  %v699_v50 = vadd.f32 %v698_v38, %v697_v43 }
  0x30   : > { %522 = vst.msk [vmem:[#allocation2 + $0x120] sm:$0x1] %vm503_vm2, %v7984_v0  ;;  %v632_v53 = vadd.f32 %v631_v51, %v630_v49  ;;  %v645_v49 = vadd.f32 %v644_v45, %v643_v42 }
  0x31   : > { %524 = vst.msk [vmem:[#allocation2 + $0x9] sm:$0x1] %vm503_vm2, %v7984_v0  ;;  %v689_v57 = vrot.slane %v688_v54, 2 }
  0x32   : > { %525 = vst.msk [vmem:[#allocation2 + $0x19] sm:$0x1] %vm503_vm2, %v7984_v0  ;;  %v633_v56 = vrot.slane %v632_v53, 1 }
  0x33   : > { %526 = vst.msk [vmem:[#allocation2 + $0x29] sm:$0x1] %vm503_vm2, %v7984_v0  ;;  %v690_v59 = vadd.f32 %v689_v57, %v688_v54  ;;  %v670_v54 = vmul.f32 %v5490_v48, %v5490_v48  ;;  %v702_v57 = vsel %vm7992_vm0, %v669_v46, 0.0 }
  0x34   : > { %527 = vst.msk [vmem:[#allocation2 + $0x39] sm:$0x1] %vm503_vm2, %v7984_v0  ;;  %v634_v58 = vadd.f32 %v633_v56, %v632_v53  ;;  %v646_v53 = vsel %vm7992_vm0, %v5490_v48, 0.0  ;;  %v701_v56 = vadd.f32 %v700_v47, %v699_v50 }
  0x35   : > { %528 = vst.msk [vmem:[#allocation2 + $0x49] sm:$0x1] %vm503_vm2, %v7984_v0  ;;  %v691_v60 = vrot.slane %v690_v59, 1 }
  0x36   : > { %529 = vst.msk [vmem:[#allocation2 + $0x59] sm:$0x1] %vm503_vm2, %v7984_v0  ;;  %v5406_v61 = vmul.f32 0.015625, %v634_v58  ;;  %v703_v13 = vadd.f32 %v702_v57, %v701_v56 }
  0x37   : > { %530 = vst.msk [vmem:[#allocation2 + $0x69] sm:$0x1] %vm503_vm2, %v7984_v0  ;;  %v692_v62 = vadd.f32 %v691_v60, %v690_v59  ;;  %v704_v60 = vsel %vm7992_vm0, %v670_v54, 0.0 }
  0x38   : > { %531 = vst.msk [vmem:[#allocation2 + $0x79] sm:$0x1] %vm503_vm2, %v7984_v0  ;;  %v1281_v55 = vld [vmem:[#allocation2 + $0x2] sm:$0xff]  ;;  %v718_v63 = vmul.f32 %v5406_v61, %v5406_v61  ;;  %v744_v39 = vsub.f32 %v5282_v1, %v5406_v61  ;;  %v746_v40 = vsub.f32 %v5288_v3, %v5406_v61  ;;  %v745_v1 = vsub.f32 %v5285_v2, %v5406_v61  ;;  %v5501_v2 = vld [vmem:[%s8000_s2] ss:$0 sm:$0xff] }
  0x39   : > { %532 = vst.msk [vmem:[#allocation2 + $0x89] sm:$0x1] %vm503_vm2, %v7984_v0  ;;  %1313 = vrot.lane.b32.xlu1 %v1281_v55, %s7980_s19  ;;  %v716_v4 = vmul.f32 0.015625, %v692_v62  ;;  %v748_v3 = vsub.f32 %v5311_v11, %v5406_v61  ;;  %v747_v52 = vsub.f32 %v5293_v5, %v5406_v61  ;;  %v611_v11 = vld [vmem:[%s5277_s27 + $0x78] sm:$0xff]  ;;  %v647_v55 = vadd.f32 %v646_v53, %v645_v49 }
  0x3a   : > { %535 = vst.msk [vmem:[#allocation2 + $0xb9] sm:$0x1] %vm503_vm2, %v7984_v0  ;;  %v648_v5 = vsel %vm7992_vm0, %v611_v11, 0.0  ;;  %v671_v59 = vmul.f32 %v611_v11, %v611_v11  ;;  %v705_v25 = vadd.f32 %v704_v60, %v703_v13  ;;  %v750_v38 = vsub.f32 %v5338_v24, %v5406_v61 }
  0x3b   : > { %536 = vst.msk [vmem:[#allocation2 + $0xc9] sm:$0x1] %vm503_vm2, %v7984_v0  ;;  %v720_v6 = vsub.f32 %v716_v4, %v718_v63  ;;  %v5513_v63 = vld [vmem:[%s7968_s3] ss:$0 sm:$0xff]  ;;  %v649_v12 = vadd.f32 %v648_v5, %v647_v55 }
  0x3c   : > { %537 = vst.msk [vmem:[#allocation2 + $0xd9] sm:$0x1] %vm503_vm2, %v7984_v0  ;;  %v706_v14 = vsel %vm7992_vm0, %v671_v59, 0.0 }
  0x3d   : > { %538 = vst.msk [vmem:[#allocation2 + $0xe9] sm:$0x1] %vm503_vm2, %v7984_v0  ;;  %v722_v7 = vadd.f32 1e-06, %v720_v6  ;;  %v650_v23 = vrot.slane %v649_v12, 4  ;;  %v707_v34 = vadd.f32 %v706_v14, %v705_v25 }
  0x3e   : > { %539 = vst.msk [vmem:[#allocation2 + $0xf9] sm:$0x1] %vm503_vm2, %v7984_v0 }
  0x3f   : > { %540 = vst.msk [vmem:[#allocation2 + $0x109] sm:$0x1] %vm503_vm2, %v7984_v0  ;;  %4910 = vrsqrt.f32 %v722_v7  ;;  %vm730_vm3 = vweird.f32 %v722_v7  ;;  %v651_v33 = vadd.f32 %v650_v23, %v649_v12  ;;  %v708_v45 = vrot.slane %v707_v34, 4 }
  0x40   : > { %541 = vst.msk [vmem:[#allocation2 + $0x119] sm:$0x1] %vm503_vm2, %v7984_v0 }
  0x41   : > { %542 = vst.msk [vmem:[#allocation2 + $0x129] sm:$0x1] %vm503_vm2, %v7984_v0  ;;  %v652_v42 = vrot.slane %v651_v33, 2  ;;  %v709_v24 = vadd.f32 %v708_v45, %v707_v34 }
  0x42   : > { %513 = vst.msk [vmem:[#allocation2 + $0x90] sm:$0x1] %vm503_vm2, %v7984_v0 }
  0x43   : > { %514 = vst.msk [vmem:[#allocation2 + $0xa0] sm:$0x1] %vm503_vm2, %v7984_v0  ;;  %v653_v47 = vadd.f32 %v652_v42, %v651_v33  ;;  %v710_v50 = vrot.slane %v709_v24, 2 }
  0x44   : > { %523 = vst.msk [vmem:[#allocation2 + $0x130] sm:$0x1] %vm503_vm2, %v7984_v0 }
  0x45   : > { %533 = vst.msk [vmem:[#allocation2 + $0x99] sm:$0x1] %vm503_vm2, %v7984_v0  ;;  %v4911_v15 = vpop.eup %4910  ;;  %v654_v49 = vrot.slane %v653_v47, 1  ;;  %v711_v59 = vadd.f32 %v710_v50, %v709_v24 }
  0x46   : > { %534 = vst.msk [vmem:[#allocation2 + $0xa9] sm:$0x1] %vm503_vm2, %v7984_v0  ;;  %v725_v19 = vmul.f32 %v4911_v15, %v722_v7  ;;  %vm731_vm4 = vweird.f32 %v4911_v15 }
  0x47   : > { %543 = vst.msk [vmem:[#allocation2 + $0x139] sm:$0x1] %vm503_vm2, %v7984_v0  ;;  %vm732_vm5 = vmor %vm730_vm3, %vm731_vm4  ;;  %v655_v55 = vadd.f32 %v654_v49, %v653_v47 }
  0x48   : > { %v726_v26 = vmul.f32 %v4911_v15, %v725_v19 }
  0x4a   : > { %v727_v35 = vmul.f32 0.5, %v726_v26 }
  0x4c   : > { %v728_v44 = vsub.f32 1.5, %v727_v35 }
  0x4d   : > { %v1289_v14 = vld [vmem:[#allocation2 + $0xa2] sm:$0xff] }
  0x4e   : > { %v729_v51 = vmul.f32 %v4911_v15, %v728_v44  ;;  %1329 = vrot.lane.b32.xlu2 %v1289_v14, %s7980_s19 }
  0x50   : > { %v5505_v58 = vsel %vm732_vm5, %v4911_v15, %v729_v51 }
  0x51   : > { %v760_v62 = vmul.f32 %v744_v39, %v5505_v58  ;;  %v762_v4 = vmul.f32 %v746_v40, %v5505_v58  ;;  %v761_v6 = vmul.f32 %v745_v1, %v5505_v58  ;;  %v764_v7 = vmul.f32 %v748_v3, %v5505_v58 }
  0x52   : > { %v763_v10 = vmul.f32 %v747_v52, %v5505_v58  ;;  %v749_v40 = vsub.f32 %v5324_v16, %v5406_v61  ;;  %v766_v44 = vmul.f32 %v750_v38, %v5505_v58 }
  0x53   : > { %v779_v15 = vmul.f32 %v5501_v2, %v760_v62  ;;  %v781_v18 = vmul.f32 %v5501_v2, %v762_v4  ;;  %v780_v19 = vmul.f32 %v5501_v2, %v761_v6  ;;  %v783_v20 = vmul.f32 %v5501_v2, %v764_v7 }
  0x54   : > { %v782_v21 = vmul.f32 %v5501_v2, %v763_v10  ;;  %v765_v46 = vmul.f32 %v749_v40, %v5505_v58  ;;  %v785_v1 = vmul.f32 %v5501_v2, %v766_v44 }
  0x55   : > { %v5526_v26 = vadd.f32 %v5513_v63, %v779_v15  ;;  %v5529_v27 = vadd.f32 %v5513_v63, %v781_v18  ;;  %v5532_v28 = vadd.f32 %v5513_v63, %v780_v19  ;;  %v5535_v29 = vadd.f32 %v5513_v63, %v783_v20 }
  0x56   : > { %v5538_v32 = vadd.f32 %v5513_v63, %v782_v21  ;;  %v784_v3 = vmul.f32 %v5501_v2, %v765_v46  ;;  %v5554_v16 = vadd.f32 %v5513_v63, %v785_v1  ;;  %v712_v18 = vrot.slane %v711_v59, 1 }
  0x57   : > { %v4501_v35 = vmul.f32 -1.442695, %v5526_v26  ;;  %v4503_v36 = vmul.f32 -1.442695, %v5529_v27  ;;  %v4502_v37 = vmul.f32 -1.442695, %v5532_v28 }
  0x58   : > { %v4505_v39 = vmul.f32 -1.442695, %v5535_v29  ;;  %v4504_v43 = vmul.f32 -1.442695, %v5538_v32  ;;  %v5557_v51 = vadd.f32 %v5513_v63, %v784_v3  ;;  %v4507_v53 = vmul.f32 -1.442695, %v5554_v16 }
  0x59   : > { %4912 = vpow2.f32 %v4501_v35  ;;  %v5577_v19 = vmul.f32 0.015625, %v655_v55 }
  0x5a   : > { %4914 = vpow2.f32 %v4503_v36  ;;  %v4506_v5 = vmul.f32 -1.442695, %v5557_v51 }
  0x5b   : > { %4916 = vpow2.f32 %v4502_v37 }
  0x5c   : > { %4918 = vpow2.f32 %v4505_v39 }
  0x5d   : > { %4920 = vpow2.f32 %v4504_v43 }
  0x5e   : > { %4922 = vpow2.f32 %v4507_v53 }
  0x5f   : > { %v4913_v52 = vpop.eup %4912 }
  0x60   : > { %v4915_v54 = vpop.eup %4914  ;;  %v5560_v11 = vadd.f32 1.0, %v4913_v52 }
  0x61   : > { %v4917_v56 = vpop.eup %4916  ;;  %v5562_v57 = vadd.f32 1.0, %v4915_v54  ;;  %v713_v54 = vadd.f32 %v712_v18, %v711_v59 }
  0x62   : > { %v4919_v60 = vpop.eup %4918  ;;  %4924 = vrcp.f32 %v5560_v11  ;;  %v887_v4 = vand.u32 2147483647, %v5560_v11  ;;  %v889_v6 = vand.u32 2147483648, %v5560_v11  ;;  %v5571_v12 = vadd.f32 1.0, %v4917_v56 }
  0x63   : > { %v4921_v62 = vpop.eup %4920  ;;  %4926 = vrcp.f32 %v5562_v57  ;;  %v917_v7 = vand.u32 2147483647, %v5562_v57  ;;  %v919_v10 = vand.u32 2147483648, %v5562_v57  ;;  %v5573_v13 = vadd.f32 1.0, %v4919_v60 }
  0x64   : > { %v5575_v15 = vadd.f32 1.0, %v4921_v62  ;;  %4928 = vpow2.f32 %v4506_v5  ;;  %vm883_vm6 = vweird.f32 %v5560_v11  ;;  %vm913_vm7 = vweird.f32 %v5562_v57  ;;  %v4923_v21 = vpop.eup %4922 }
  0x65   : > { %4930 = vrcp.f32 %v5571_v12  ;;  %v904_v20 = vand.u32 2147483648, %v5571_v12  ;;  %vm5584_vm8 = vcmp.eq.f32.partialorder %v887_v4, 8.507059e+37  ;;  %v890_v25 = vor.u32 1.1754944e-38, %v889_v6 }
  0x66   : > { %v902_v33 = vand.u32 2147483647, %v5571_v12  ;;  %4932 = vrcp.f32 %v5573_v13  ;;  %v949_v34 = vand.u32 2147483648, %v5573_v13  ;;  %vm5591_vm9 = vcmp.eq.f32.partialorder %v917_v7, 8.507059e+37 }
  0x67   : > { %v920_v37 = vor.u32 1.1754944e-38, %v919_v10  ;;  %v947_v38 = vand.u32 2147483647, %v5573_v13  ;;  %4934 = vrcp.f32 %v5575_v15  ;;  %vm898_vm10 = vweird.f32 %v5571_v12 }
  0x68   : > { %v4925_v35 = vpop.eup %4924  ;;  %v5599_v42 = vor.u32 1.1754944e-38, %v904_v20  ;;  %vm943_vm11 = vweird.f32 %v5573_v13  ;;  %vm928_vm13 = vweird.f32 %v5575_v15  ;;  %v932_v44 = vand.u32 2147483647, %v5575_v15 }
  0x69   : > { %v4927_v39 = vpop.eup %4926  ;;  %v879_v40 = vmul.f32 %v4925_v35, %v5560_v11  ;;  %vm884_vm12 = vweird.f32 %v4925_v35  ;;  %vm5605_vm15 = vcmp.eq.f32.partialorder %v902_v33, 8.507059e+37  ;;  %v950_v1 = vor.u32 1.1754944e-38, %v949_v34 }
  0x6a   : > { %v909_v43 = vmul.f32 %v4927_v39, %v5562_v57  ;;  %v4929_v45 = vpop.eup %4928  ;;  %vm914_vm14 = vweird.f32 %v4927_v39  ;;  %v5609_v24 = vadd.f32 1.0, %v4923_v21  ;;  %vm5611_vm1 = vcmp.eq.f32.partialorder %v947_v38, 8.507059e+37  ;;  %vm5625_vm2 = vmor %vm883_vm6, %vm884_vm12 }
  0x6b   : > { %v880_v46 = vsub.f32 1.0, %v879_v40  ;;  %v4931_v3 = vpop.eup %4930  ;;  %v934_v52 = vand.u32 2147483648, %v5575_v15  ;;  %v5616_v53 = vadd.f32 1.0, %v4929_v45  ;;  %v719_v60 = vmul.f32 %v5577_v19, %v5577_v19  ;;  %vm5638_vm4 = vmor %vm913_vm7, %vm914_vm14 }
  0x6c   : > { %v910_v49 = vsub.f32 1.0, %v909_v43  ;;  %v4933_v55 = vpop.eup %4932  ;;  %v894_v5 = vmul.f32 %v4931_v3, %v5571_v12  ;;  %4936 = vrcp.f32 %v5609_v24  ;;  %vm5630_vm3 = vcmp.eq.f32.partialorder %v932_v44, 8.507059e+37 }
  0x6d   : > { %v881_v56 = vmul.f32 %v4925_v35, %v880_v46  ;;  %v4935_v62 = vpop.eup %4934  ;;  %v939_v59 = vmul.f32 %v4933_v55, %v5573_v13  ;;  %4938 = vrcp.f32 %v5616_v53  ;;  %vm899_vm5 = vweird.f32 %v4931_v3 }
  0x6e   : > { %v911_v6 = vmul.f32 %v4927_v39, %v910_v49  ;;  %v895_v11 = vsub.f32 1.0, %v894_v5  ;;  %v924_v18 = vmul.f32 %v4935_v62, %v5575_v15  ;;  %vm944_vm6 = vweird.f32 %v4933_v55  ;;  %vm5651_vm7 = vmor %vm898_vm10, %vm899_vm5 }
  0x6f   : > { %v882_v10 = vadd.f32 %v4925_v35, %v881_v56  ;;  %v940_v21 = vsub.f32 1.0, %v939_v59  ;;  %v717_v33 = vmul.f32 0.015625, %v713_v54  ;;  %vm929_vm12 = vweird.f32 %v4935_v62 }
  0x70   : > { %v912_v20 = vadd.f32 %v4927_v39, %v911_v6  ;;  %v896_v38 = vmul.f32 %v4931_v3, %v895_v11  ;;  %v925_v40 = vsub.f32 1.0, %v924_v18  ;;  %vm5671_vm10 = vmor %vm928_vm13, %vm929_vm12  ;;  %v935_v36 = vor.u32 1.1754944e-38, %v934_v52 }
  0x71   : > { %v886_v34 = vsel %vm5625_vm2, %v4925_v35, %v882_v10  ;;  %v941_v45 = vmul.f32 %v4933_v55, %v940_v21  ;;  %v721_v46 = vsub.f32 %v717_v33, %v719_v60  ;;  %v979_v59 = vand.u32 2147483648, %v5609_v24 }
  0x72   : > { %v891_v57 = vsel %vm5584_vm8, %v890_v25, %v886_v34  ;;  %v916_v43 = vsel %vm5638_vm4, %v4927_v39, %v912_v20  ;;  %v4937_v49 = vpop.eup %4936  ;;  %v897_v56 = vadd.f32 %v4931_v3, %v896_v38  ;;  %vm5661_vm8 = vmor %vm943_vm11, %vm944_vm6  ;;  %v926_v12 = vmul.f32 %v4935_v62, %v925_v40 }
  0x73   : > { %v1118_v35 = vmul.f32 %v891_v57, %v5526_v26  ;;  %v921_v54 = vsel %vm5591_vm9, %v920_v37, %v916_v43  ;;  %v5665_v25 = vpop.eup %4938  ;;  %v942_v5 = vadd.f32 %v4933_v55, %v941_v45  ;;  %v969_v13 = vmul.f32 %v4937_v49, %v5609_v24 }
  0x74   : > { %v1120_v39 = vmul.f32 %v921_v54, %v5529_v27  ;;  %v901_v37 = vsel %vm5651_vm7, %v4931_v3, %v897_v56  ;;  %v927_v60 = vadd.f32 %v4935_v62, %v926_v12  ;;  %v954_v27 = vmul.f32 %v5665_v25, %v5616_v53 }
  0x75   : > { %1135 = vst.msk [vmem:[#allocation2 + $0x11] sm:$0xff] %vm7992_vm0, %v1118_v35  ;;  %v5681_v4 = vadd.f32 1e-06, %v721_v46  ;;  %v906_v15 = vsel %vm5605_vm15, %v5599_v42, %v901_v37  ;;  %v946_v52 = vsel %vm5661_vm8, %v4933_v55, %v942_v5  ;;  %v970_v6 = vsub.f32 1.0, %v969_v13 }
  0x76   : > { %1137 = vst.msk [vmem:[#allocation2 + $0x31] sm:$0xff] %vm7992_vm0, %v1120_v39  ;;  %v1119_v3 = vmul.f32 %v906_v15, %v5532_v28  ;;  %v951_v10 = vsel %vm5611_vm1, %v950_v1, %v946_v52  ;;  %v931_v14 = vsel %vm5671_vm10, %v4935_v62, %v927_v60  ;;  %vm973_vm9 = vweird.f32 %v5609_v24 }
  0x77   : > { %v1122_v11 = vmul.f32 %v951_v10, %v5535_v29  ;;  %v936_v42 = vsel %vm5630_vm3, %v935_v36, %v931_v14  ;;  %v971_v47 = vmul.f32 %v4937_v49, %v970_v6  ;;  %vm974_vm11 = vweird.f32 %v4937_v49 }
  0x78   : > { %1136 = vst.msk [vmem:[#allocation2 + $0x21] sm:$0xff] %vm7992_vm0, %v1119_v3  ;;  %v1121_v55 = vmul.f32 %v936_v42, %v5538_v32  ;;  %vm5701_vm13 = vmor %vm973_vm9, %vm974_vm11  ;;  %v977_v1 = vand.u32 2147483647, %v5609_v24  ;;  %v980_v50 = vor.u32 1.1754944e-38, %v979_v59  ;;  %v955_v62 = vsub.f32 1.0, %v954_v27 }
  0x79   : > { %1139 = vst.msk [vmem:[#allocation2 + $0x51] sm:$0xff] %vm7992_vm0, %v1122_v11  ;;  %v972_v29 = vadd.f32 %v4937_v49, %v971_v47  ;;  %vm958_vm14 = vweird.f32 %v5616_v53  ;;  %vm959_vm15 = vweird.f32 %v5665_v25  ;;  %v962_v7 = vand.u32 2147483647, %v5616_v53 }
  0x7a   : > { %1138 = vst.msk [vmem:[#allocation2 + $0x41] sm:$0xff] %vm7992_vm0, %v1121_v55  ;;  %vm978_vm1 = vcmp.eq.f32.partialorder %v977_v1, 8.507059e+37  ;;  %v956_v32 = vmul.f32 %v5665_v25, %v955_v62  ;;  %vm5712_vm2 = vmor %vm958_vm14, %vm959_vm15  ;;  %v964_v24 = vand.u32 2147483648, %v5616_v53  ;;  %4940 = vrsqrt.f32 %v5681_v4 }
  0x7b   : > { %v976_v34 = vsel %vm5701_vm13, %v4937_v49, %v972_v29  ;;  %vm5722_vm3 = vcmp.eq.f32.partialorder %v962_v7, 8.507059e+37  ;;  %v751_v43 = vsub.f32 %v5350_v30, %v5406_v61  ;;  %vm740_vm4 = vweird.f32 %v5681_v4 }
  0x7c   : > { %v5718_v20 = vld [vmem:[#allocation2 + $0x12] sm:$0xff]  ;;  %v981_v40 = vsel %vm978_vm1, %v980_v50, %v976_v34  ;;  %v957_v53 = vadd.f32 %v5665_v25, %v956_v32  ;;  %v965_v57 = vor.u32 1.1754944e-38, %v964_v24  ;;  %v752_v37 = vsub.f32 %v5433_v8, %v5577_v19 }
  0x7d   : > { %v1185_v21 = vld [vmem:[#allocation2 + $0x11] sm:$0xff]  ;;  %1315 = vrot.lane.b32.xlu1 %v5718_v20, %s7980_s19  ;;  %v1124_v45 = vmul.f32 %v981_v40, %v5554_v16  ;;  %v767_v49 = vmul.f32 %v751_v43, %v5505_v58  ;;  %v753_v55 = vsub.f32 %v5436_v9, %v5577_v19  ;;  %v754_v1 = vsub.f32 %v5447_v17, %v5577_v19 }
  0x7e   : > { %v1378_v33 = vld [vmem:[#allocation2 + $0x10] sm:$0xff]  ;;  %1218 = vrot.lane.b32.xlu0 %v1185_v21, %s5128_s17  ;;  %v961_v46 = vsel %vm5712_vm2, %v5665_v25, %v957_v53 }
  0x7f   : > { %v5732_v44 = vld [vmem:[#allocation2 + $0x30] sm:$0xff]  ;;  %1410 = vrot.lane.b32.xlu2 %v1378_v33, %s7982_s20  ;;  %1169 = vst.msk [vmem:[#allocation4 + $0x18] sm:$0xff] %vm7992_vm0, %v1378_v33  ;;  %v5743_v35 = vld [vmem:[#allocation2 + $0x20] sm:$0xff]  ;;  %v966_v30 = vsel %vm5722_vm3, %v965_v57, %v961_v46  ;;  %v786_v56 = vmul.f32 %v5501_v2, %v767_v49 }
  0x80   : > { %1171 = vst.msk [vmem:[#allocation4 + $0x48] sm:$0xff] %vm7992_vm0, %v5732_v44  ;;  %v4941_v61 = vpop.eup %4940  ;;  %v5748_v16 = vld [vmem:[#allocation2 + $0x50] sm:$0xff]  ;;  %v1123_v54 = vmul.f32 %v966_v30, %v5557_v51  ;;  %v5756_v23 = vld [vmem:[#allocation2 + $0x21] sm:$0xff] }
  0x81   : > { %1141 = vst.msk [vmem:[#allocation2 + $0x71] sm:$0xff] %vm7992_vm0, %v1124_v45  ;;  %v5754_v58 = vld [vmem:[#allocation2 + $0x31] sm:$0xff]  ;;  %v735_v12 = vmul.f32 %v4941_v61, %v5681_v4  ;;  %v5763_v25 = vadd.f32 %v5513_v63, %v786_v56  ;;  %v5769_v39 = vld [vmem:[#allocation2 + $0x40] sm:$0xff]  ;;  %vm741_vm5 = vweird.f32 %v4941_v61 }
  0x82   : > { %1170 = vst.msk [vmem:[#allocation4 + $0x30] sm:$0xff] %vm7992_vm0, %v5743_v35  ;;  %vm742_vm6 = vmor %vm740_vm4, %vm741_vm5  ;;  %v5783_v60 = vld [vmem:[#allocation2 + $0x32] sm:$0xff]  ;;  %v5785_v15 = vld [vmem:[#allocation2 + $0x22] sm:$0xff] }
  0x83   : > { %1173 = vst.msk [vmem:[#allocation4 + $0x78] sm:$0xff] %vm7992_vm0, %v5748_v16  ;;  %v736_v51 = vmul.f32 %v4941_v61, %v735_v12  ;;  %v4508_v5 = vmul.f32 -1.442695, %v5763_v25  ;;  %v5800_v10 = vld [vmem:[#allocation2 + $0x51] sm:$0xff]  ;;  %v5802_v14 = vld [vmem:[#allocation2 + $0x41] sm:$0xff] }
  0x84   : > { %1140 = vst.msk [vmem:[#allocation2 + $0x61] sm:$0xff] %vm7992_vm0, %v1123_v54  ;;  %v5821_v18 = vld [vmem:[#allocation2 + $0x52] sm:$0xff]  ;;  %v5824_v21 = vld [vmem:[#allocation2 + $0x42] sm:$0xff] }
  0x85   : > { %1222 = vrot.lane.b32.xlu1 %v5754_v58, %s5128_s17  ;;  %v737_v26 = vmul.f32 0.5, %v736_v51  ;;  %1172 = vst.msk [vmem:[#allocation4 + $0x60] sm:$0xff] %vm7992_vm0, %v5769_v39  ;;  %4942 = vpow2.f32 %v4508_v5 }
  0x86   : > { %1220 = vrot.lane.b32.xlu0 %v5756_v23, %s5128_s17 }
  0x87   : > { %1412 = vrot.lane.b32.xlu2 %v5743_v35, %s7982_s20  ;;  %v738_v13 = vsub.f32 1.5, %v737_v26 }
  0x88   : > { %v5777_v36 = vld [vmem:[#allocation2 + $0x70] sm:$0xff] }
  0x89   : > { %1175 = vst.msk [vmem:[#allocation4 + $0xa8] sm:$0xff] %vm7992_vm0, %v5777_v36  ;;  %v739_v27 = vmul.f32 %v4941_v61, %v738_v13 }
  0x8b   : > { %v5787_v4 = vsel %vm742_vm6, %v4941_v61, %v739_v27  ;;  %v4943_v52 = vpop.eup %4942  ;;  %v5809_v42 = vld [vmem:[#allocation2 + $0x60] sm:$0xff]  ;;  %v5842_v61 = vld [vmem:[#allocation2 + $0x71] sm:$0xff] }
  0x8c   : > { %v768_v6 = vmul.f32 %v752_v37, %v5787_v4  ;;  %v869_v8 = vadd.f32 1.0, %v4943_v52  ;;  %1174 = vst.msk [vmem:[#allocation4 + $0x90] sm:$0xff] %vm7992_vm0, %v5809_v42  ;;  %v769_v62 = vmul.f32 %v753_v55, %v5787_v4  ;;  %v770_v32 = vmul.f32 %v754_v1, %v5787_v4  ;;  %v5844_v54 = vld [vmem:[#allocation2 + $0x61] sm:$0xff] }
  0x8d   : > { %1414 = vrot.lane.b32.xlu1 %v5732_v44, %s7982_s20 }
  0x8e   : > { %1319 = vrot.lane.b32.xlu0 %v5783_v60, %s7980_s19  ;;  %v787_v59 = vmul.f32 %v5501_v2, %v768_v6  ;;  %4944 = vrcp.f32 %v869_v8  ;;  %vm988_vm12 = vweird.f32 %v869_v8  ;;  %v994_v50 = vand.u32 2147483648, %v869_v8  ;;  %v5853_v6 = vld [vmem:[#allocation2 + $0x72] sm:$0xff] }
  0x8f   : > { %1317 = vrot.lane.b32.xlu2 %v5785_v15, %s7980_s19  ;;  %v992_v7 = vand.u32 2147483647, %v869_v8  ;;  %v788_v9 = vmul.f32 %v5501_v2, %v769_v62  ;;  %v789_v34 = vmul.f32 %v5501_v2, %v770_v32 }
  0x90   : > { %v5798_v3 = vadd.f32 %v5513_v63, %v787_v59  ;;  %v995_v38 = vor.u32 1.1754944e-38, %v994_v50  ;;  %v5855_v59 = vld [vmem:[#allocation2 + $0x62] sm:$0xff] }
  0x91   : > { %v5828_v40 = vadd.f32 %v5513_v63, %v788_v9  ;;  %vm993_vm10 = vcmp.eq.f32.partialorder %v992_v7, 8.507059e+37  ;;  %v5835_v57 = vadd.f32 %v5513_v63, %v789_v34 }
  0x92   : > { %v4509_v11 = vmul.f32 -1.442695, %v5798_v3 }
  0x93   : > { %v4510_v45 = vmul.f32 -1.442695, %v5828_v40  ;;  %v4511_v46 = vmul.f32 -1.442695, %v5835_v57 }
  0x94   : > { %4946 = vpow2.f32 %v4509_v11  ;;  %v4945_v47 = vpop.eup %4944 }
  0x95   : > { %1226 = vrot.lane.b32.xlu1 %v5800_v10, %s5128_s17  ;;  %v984_v28 = vmul.f32 %v4945_v47, %v869_v8  ;;  %vm989_vm7 = vweird.f32 %v4945_v47 }
  0x96   : > { %1224 = vrot.lane.b32.xlu0 %v5802_v14, %s5128_s17  ;;  %vm990_vm8 = vmor %vm988_vm12, %vm989_vm7  ;;  %vm1264_vm7 = vcmask 523520  }
  0x97   : > { %1416 = vrot.lane.b32.xlu2 %v5769_v39, %s7982_s20  ;;  %v985_v29 = vsub.f32 1.0, %v984_v28 }
  0x99   : > { %v986_v33 = vmul.f32 %v4945_v47, %v985_v29 }
  0x9a   : > { %v4947_v24 = vpop.eup %4946 }
  0x9b   : > { %v870_v17 = vadd.f32 1.0, %v4947_v24  ;;  %v987_v53 = vadd.f32 %v4945_v47, %v986_v33 }
  0x9d   : > { %1418 = vrot.lane.b32.xlu1 %v5748_v16, %s7982_s20  ;;  %4948 = vrcp.f32 %v870_v17  ;;  %v991_v43 = vsel %vm990_vm8, %v4945_v47, %v987_v53  ;;  %vm1003_vm9 = vweird.f32 %v870_v17  ;;  %v1007_v26 = vand.u32 2147483647, %v870_v17 }
  0x9e   : > { %1323 = vrot.lane.b32.xlu0 %v5821_v18, %s7980_s19  ;;  %v996_v49 = vsel %vm993_vm10, %v995_v38, %v991_v43  ;;  %4950 = vpow2.f32 %v4510_v45  ;;  %v755_v45 = vsub.f32 %v5454_v22, %v5577_v19  ;;  %vm1361_vm8 = vcmask 785920  }
  0x9f   : > { %1321 = vrot.lane.b32.xlu2 %v5824_v21, %s7980_s19  ;;  %v1125_v30 = vmul.f32 %v996_v49, %v5763_v25  ;;  %4952 = vpow2.f32 %v4511_v46  ;;  %v1009_v25 = vand.u32 2147483648, %v870_v17  ;;  %vm1008_vm14 = vcmp.eq.f32.partialorder %v1007_v26, 8.507059e+37 }
  0xa0   : > { %vm1458_vm10 = vcmask 1048320  }
  0xa1   : > { %1142 = vst.msk [vmem:[#allocation2 + $0x81] sm:$0xff] %vm7992_vm0, %v1125_v30  ;;  %v1010_v8 = vor.u32 1.1754944e-38, %v1009_v25 }
  0xa3   : > { %v4949_v56 = vpop.eup %4948 }
  0xa4   : > { %v999_v12 = vmul.f32 %v4949_v56, %v870_v17  ;;  %v4951_v51 = vpop.eup %4950  ;;  %vm1004_vm11 = vweird.f32 %v4949_v56 }
  0xa5   : > { %1230 = vrot.lane.b32.xlu1 %v5842_v61, %s5128_s17  ;;  %v4953_v13 = vpop.eup %4952  ;;  %v871_v37 = vadd.f32 1.0, %v4951_v51  ;;  %vm1005_vm13 = vmor %vm1003_vm9, %vm1004_vm11  ;;  %v771_v51 = vmul.f32 %v755_v45, %v5787_v4 }
  0xa6   : > { %1228 = vrot.lane.b32.xlu0 %v5844_v54, %s5128_s17  ;;  %v1000_v5 = vsub.f32 1.0, %v999_v12  ;;  %v872_v52 = vadd.f32 1.0, %v4953_v13 }
  0xa7   : > { %1420 = vrot.lane.b32.xlu2 %v5809_v42, %s7982_s20  ;;  %4954 = vrcp.f32 %v871_v37  ;;  %v1024_v33 = vand.u32 2147483648, %v871_v37  ;;  %vm1018_vm15 = vweird.f32 %v871_v37  ;;  %v1022_v34 = vand.u32 2147483647, %v871_v37 }
  0xa8   : > { %v1001_v27 = vmul.f32 %v4949_v56, %v1000_v5  ;;  %4956 = vrcp.f32 %v872_v52  ;;  %v5865_v7 = vld [vmem:[#allocation2 + $0x80] sm:$0xff]  ;;  %vm1033_vm3 = vweird.f32 %v872_v52  ;;  %v1037_v43 = vand.u32 2147483647, %v872_v52 }
  0xa9   : > { %vm1023_vm5 = vcmp.eq.f32.partialorder %v1022_v34, 8.507059e+37  ;;  %v1039_v30 = vand.u32 2147483648, %v872_v52  ;;  %v790_v13 = vmul.f32 %v5501_v2, %v771_v51 }
  0xaa   : > { %v1002_v11 = vadd.f32 %v4949_v56, %v1001_v27  ;;  %vm1038_vm12 = vcmp.eq.f32.partialorder %v1037_v43, 8.507059e+37  ;;  %v4794_v27 = vld [vmem:[%s7970_s5 + $0x30] sm:$0xff] }
  0xab   : > { %v1040_v5 = vor.u32 1.1754944e-38, %v1039_v30  ;;  %v4788_v30 = vld [vmem:[%s7970_s5] sm:$0xff] }
  0xac   : > { %v1006_v47 = vsel %vm1005_vm13, %v4949_v56, %v1002_v11  ;;  %v756_v56 = vsub.f32 %v5463_v31, %v5577_v19  ;;  %v1217_v31 = vpop.permute.xlu0 %1216 }
  0xad   : > { %1422 = vrot.lane.b32.xlu1 %v5777_v36, %s7982_s20  ;;  %v1011_v55 = vsel %vm1008_vm14, %v1010_v8, %v1006_v47  ;;  %v4955_v1 = vpop.eup %4954  ;;  %v4793_v8 = vld [vmem:[%s7970_s5 + $0x28] sm:$0xff] }
  0xae   : > { %1327 = vrot.lane.b32.xlu0 %v5853_v6, %s7980_s19  ;;  %v1126_v28 = vmul.f32 %v1011_v55, %v5798_v3  ;;  %v4957_v50 = vpop.eup %4956  ;;  %v1014_v62 = vmul.f32 %v4955_v1, %v871_v37  ;;  %v4795_v3 = vld [vmem:[%s7970_s5 + $0x38] sm:$0xff]  ;;  %vm1019_vm1 = vweird.f32 %v4955_v1  ;;  %v772_v26 = vmul.f32 %v756_v56, %v5787_v4  ;;  %v1152_v37 = vld [vmem:[#allocation2] sm:$0xff] }
  0xaf   : > { %1325 = vrot.lane.b32.xlu2 %v5855_v59, %s7980_s19  ;;  %v1029_v29 = vmul.f32 %v4957_v50, %v872_v52  ;;  %2071 = vmatpush.bf16.msra.mxu0 %v4795_v3  ;;  %vm1020_vm2 = vmor %vm1018_vm15, %vm1019_vm1  ;;  %vm1034_vm4 = vweird.f32 %v4957_v50  ;;  %1168 = vst.msk [vmem:[#allocation4] sm:$0xff] %vm7992_vm0, %v1152_v37  ;;  %v1330_v3 = vpop.permute.xlu2 %1329  ;;  %v757_v37 = vsub.f32 %v5476_v41, %v5577_v19 }
  0xb0   : > { %1143 = vst.msk [vmem:[#allocation2 + $0xb1] sm:$0xff] %vm7992_vm0, %v1126_v28  ;;  %v1015_v32 = vsub.f32 1.0, %v1014_v62  ;;  %vm5880_vm6 = vmor %vm1033_vm3, %vm1034_vm4  ;;  %v791_v52 = vmul.f32 %v5501_v2, %v772_v26  ;;  %v1314_v62 = vpop.permute.xlu1 %1313 }
  0xb1   : > { %v1030_v9 = vsub.f32 1.0, %v1029_v29  ;;  %1265 = vst.msk [vmem:[#allocation4] sm:$0xff] %vm1264_vm7, %v1217_v31  ;;  %v4792_v29 = vld [vmem:[%s7970_s5 + $0x20] sm:$0xff] }
  0xb2   : > { %v1016_v24 = vmul.f32 %v4955_v1, %v1015_v32  ;;  %v5915_v11 = vadd.f32 %v5513_v63, %v791_v52  ;;  %v4791_v32 = vld [vmem:[%s7970_s5 + $0x18] sm:$0xff]  ;;  %1362 = vst.msk [vmem:[#allocation4] sm:$0xff] %vm1361_vm8, %v1314_v62 }
  0xb3   : > { %v1031_v17 = vmul.f32 %v4957_v50, %v1030_v9  ;;  %2072 = vmatpush.bf16.msra.mxu0 %v4794_v27  ;;  %v758_v27 = vsub.f32 %v5490_v48, %v5577_v19 }
  0xb4   : > { %v1017_v38 = vadd.f32 %v4955_v1, %v1016_v24  ;;  %v4513_v47 = vmul.f32 -1.442695, %v5915_v11 }
  0xb5   : > { %1541 = vrot.lane.b32.xlu1 %v5785_v15, %s5128_s17  ;;  %v1025_v15 = vor.u32 1.1754944e-38, %v1024_v33  ;;  %v1032_v53 = vadd.f32 %v4957_v50, %v1031_v17  ;;  %v4790_v17 = vld [vmem:[%s7970_s5 + $0x10] sm:$0xff] }
  0xb6   : > { %1539 = vrot.lane.b32.xlu0 %v5718_v20, %s5128_s17  ;;  %v1021_v46 = vsel %vm1020_vm2, %v4955_v1, %v1017_v38  ;;  %v1160_v1 = vld [vmem:[#allocation2 + $0xa0] sm:$0xff] }
  0xb7   : > { %1424 = vrot.lane.b32.xlu2 %v5865_v7, %s7982_s20  ;;  %v5876_v20 = vld [vmem:[#allocation2 + $0xb0] sm:$0xff]  ;;  %v1026_v12 = vsel %vm1023_vm5, %v1025_v15, %v1021_v46  ;;  %v1036_v25 = vsel %vm5880_vm6, %v4957_v50, %v1032_v53  ;;  %2073 = vmatpush.bf16.msra.mxu0 %v4793_v8  ;;  %v1233_v50 = vpop.permute.xlu0 %1232  ;;  %1176 = vst.msk [vmem:[#allocation4 + $0xc0] sm:$0xff] %vm7992_vm0, %v1160_v1  ;;  %v4789_v53 = vld [vmem:[%s7970_s5 + $0x8] sm:$0xff] }
  0xb8   : > { %1177 = vst.msk [vmem:[#allocation4 + $0xd8] sm:$0xff] %vm7992_vm0, %v5876_v20  ;;  %v1127_v22 = vmul.f32 %v1026_v12, %v5828_v40  ;;  %v1041_v40 = vsel %vm1038_vm12, %v1040_v5, %v1036_v25  ;;  %v5920_v55 = vld [vmem:[#allocation2 + $0xb2] sm:$0xff] }
  0xb9   : > { %1273 = vst.msk [vmem:[#allocation4 + $0xc0] sm:$0xff] %vm1264_vm7, %v1233_v50 }
  0xba   : > { %1144 = vst.msk [vmem:[#allocation2 + $0xc1] sm:$0xff] %vm7992_vm0, %v1127_v22 }
  0xbb   : > { %2074 = vmatpush.bf16.msra.mxu0 %v4792_v29  ;;  %1370 = vst.msk [vmem:[#allocation4 + $0xc0] sm:$0xff] %vm1361_vm8, %v1330_v3 }
  0xbd   : > { %1732 = vrot.lane.b32.xlu1 %v5756_v23, %s7982_s20  ;;  %v1128_v23 = vmul.f32 %v1041_v40, %v5835_v57  ;;  %v1193_v57 = vld [vmem:[#allocation2 + $0xb1] sm:$0xff] }
  0xbe   : > { %1638 = vrot.lane.b32.xlu0 %v5732_v44, %s7980_s19  ;;  %v5908_v44 = vadd.f32 %v5513_v63, %v790_v13 }
  0xbf   : > { %1636 = vrot.lane.b32.xlu2 %v5743_v35, %s7980_s19  ;;  %1145 = vst.msk [vmem:[#allocation2 + $0xd1] sm:$0xff] %vm7992_vm0, %v1128_v23  ;;  %2075 = vmatpush.bf16.msra.mxu0 %v4791_v32 }
  0xc0   : > { %v4512_v35 = vmul.f32 -1.442695, %v5908_v44 }
  0xc1   : > { %v5922_v28 = vld [vmem:[#allocation2 + $0xc0] sm:$0xff] }
  0xc2   : > { %4958 = vpow2.f32 %v4512_v35  ;;  %1178 = vst.msk [vmem:[#allocation4 + $0xf0] sm:$0xff] %vm7992_vm0, %v5922_v28  ;;  %v5975_v13 = vld [vmem:[#allocation2 + $0xc1] sm:$0xff] }
  0xc3   : > { %4960 = vpow2.f32 %v4513_v47  ;;  %2076 = vmatpush.bf16.msra.mxu0 %v4790_v17  ;;  %v5985_v8 = vld [vmem:[#allocation2 + $0xc2] sm:$0xff]  ;;  %v773_v47 = vmul.f32 %v757_v37, %v5787_v4 }
  0xc4   : > { %1820 = vst.msk [vmem:[#allocation4 + $0xd0] sm:$0xff] %vm7992_vm0, %v5985_v8 }
  0xc5   : > { %1234 = vrot.lane.b32.xlu1 %v1193_v57, %s5128_s17  ;;  %v774_v57 = vmul.f32 %v758_v27, %v5787_v4  ;;  %v4803_v27 = vld [vmem:[%s7970_s5 + $0x78] sm:$0xff] }
  0xc6   : > { %1331 = vrot.lane.b32.xlu0 %v5920_v55, %s7980_s19  ;;  %v5941_v33 = vld [vmem:[#allocation2 + $0xd0] sm:$0xff]  ;;  %2120 = vmatpush.bf16.msra.mxu1 %v4803_v27  ;;  %s6325_s19 = scalar_lea.vmem %s8039_s1, %s8094_s23  ;;  %s4420_s1 = sshll.u32 %s4417_s24, 4  ;;  %s4421_s1 = int_to_ptr.hbm [resolvable:$true] %s4420_s1 }
  0xc7   : > { %1734 = vrot.lane.b32.xlu2 %v5754_v58, %s7982_s20  ;;  %1179 = vst.msk [vmem:[#allocation4 + $0x108] sm:$0xff] %vm7992_vm0, %v5941_v33  ;;  %2077 = vmatpush.bf16.msra.mxu0 %v4789_v53  ;;  %v793_v1 = vmul.f32 %v5501_v2, %v774_v57  ;;  %v6009_v29 = vld [vmem:[#allocation2 + $0xd1] sm:$0xff]  ;;  %s5083_s23 = scalar_lea.hbm %s7979_s14, 256 }
  0xc8   : > { %v4959_v9 = vpop.eup %4958 }
  0xc9   : > { %v4961_v24 = vpop.eup %4960  ;;  %v873_v34 = vadd.f32 1.0, %v4959_v9  ;;  %v6007_v62 = vadd.f32 %v5513_v63, %v793_v1 }
  0xca   : > { %v874_v58 = vadd.f32 1.0, %v4961_v24 }
  0xcb   : > { %4962 = vrcp.f32 %v873_v34  ;;  %v1054_v49 = vand.u32 2147483648, %v873_v34  ;;  %vm1048_vm9 = vweird.f32 %v873_v34  ;;  %v1052_v56 = vand.u32 2147483647, %v873_v34  ;;  %2078 = vmatpush.bf16.msra.mxu0 %v4788_v30 }
  0xcc   : > { %4964 = vrcp.f32 %v874_v58  ;;  %vm1063_vm14 = vweird.f32 %v874_v58  ;;  %v1067_v5 = vand.u32 2147483647, %v874_v58  ;;  %v1069_v26 = vand.u32 2147483648, %v874_v58 }
  0xcd   : > { %1426 = vrot.lane.b32.xlu1 %v5876_v20, %s7982_s20  ;;  %v1055_v51 = vor.u32 1.1754944e-38, %v1054_v49  ;;  %vm1053_vm1 = vcmp.eq.f32.partialorder %v1052_v56, 8.507059e+37 }
  0xce   : > { %1543 = vrot.lane.b32.xlu0 %v5783_v60, %s5128_s17  ;;  %vm1068_vm3 = vcmp.eq.f32.partialorder %v1067_v5, 8.507059e+37  ;;  %v1070_v23 = vor.u32 1.1754944e-38, %v1069_v26 }
  0xcf   : > { %1428 = vrot.lane.b32.xlu2 %v5922_v28, %s7982_s20 }
  0xd1   : > { %v4963_v38 = vpop.eup %4962 }
  0xd2   : > { %v4965_v15 = vpop.eup %4964  ;;  %v1044_v43 = vmul.f32 %v4963_v38, %v873_v34  ;;  %vm1049_vm11 = vweird.f32 %v4963_v38 }
  0xd3   : > { %v1059_v45 = vmul.f32 %v4965_v15, %v874_v58  ;;  %vm5966_vm13 = vmor %vm1048_vm9, %vm1049_vm11  ;;  %vm1064_vm15 = vweird.f32 %v4965_v15 }
  0xd4   : > { %v1045_v20 = vsub.f32 1.0, %v1044_v43  ;;  %vm5971_vm2 = vmor %vm1063_vm14, %vm1064_vm15 }
  0xd5   : > { %1545 = vrot.lane.b32.xlu1 %v5824_v21, %s5128_s17  ;;  %v1060_v60 = vsub.f32 1.0, %v1059_v45 }
  0xd6   : > { %1642 = vrot.lane.b32.xlu0 %v5748_v16, %s8029_s0  ;;  %v1046_v46 = vmul.f32 %v4963_v38, %v1045_v20  ;;  %v6052_v20 = vld [vmem:[#allocation2 + $0x82] sm:$0xff] }
  0xd7   : > { %1640 = vrot.lane.b32.xlu2 %v5769_v39, %s8029_s0  ;;  %v1061_v12 = vmul.f32 %v4965_v15, %v1060_v60  ;;  %1818 = vst.msk [vmem:[#allocation4 + $0xa0] sm:$0xff] %vm7992_vm0, %v6052_v20 }
  0xd8   : > { %v1047_v25 = vadd.f32 %v4963_v38, %v1046_v46 }
  0xd9   : > { %v1411_v21 = vpop.permute.xlu2 %1410  ;;  %v1062_v39 = vadd.f32 %v4965_v15, %v1061_v12 }
  0xda   : > { %1459 = vst.msk [vmem:[#allocation4] sm:$0xff] %vm1458_vm10, %v1411_v21  ;;  %v1051_v31 = vsel %vm5966_vm13, %v4963_v38, %v1047_v25 }
  0xdb   : > { %v1056_v40 = vsel %vm1053_vm1, %v1055_v51, %v1051_v31  ;;  %v1066_v52 = vsel %vm5971_vm2, %v4965_v15, %v1062_v39 }
  0xdc   : > { %v1129_v35 = vmul.f32 %v1056_v40, %v5908_v44  ;;  %v1071_v41 = vsel %vm1068_vm3, %v1070_v23, %v1066_v52  ;;  %v792_v44 = vmul.f32 %v5501_v2, %v773_v47  ;;  %v5044_v23 = vld [vmem:[%s5277_s27 + $0x78] sm:$0xff] }
  0xdd   : > { %1736 = vrot.lane.b32.xlu1 %v5802_v14, %s7982_s20  ;;  %v1130_v48 = vmul.f32 %v1071_v41, %v5915_v11  ;;  %v4515_v11 = vmul.f32 -1.442695, %v6007_v62  ;;  %v6080_v41 = vld [vmem:[#allocation2 + $0x81] sm:$0xff] }
  0xde   : > { %1236 = vrot.lane.b32.xlu0 %v5975_v13, %s5128_s17  ;;  %1146 = vst.msk [vmem:[#allocation2 + $0xe1] sm:$0xff] %vm7992_vm0, %v1129_v35  ;;  %v6004_v14 = vadd.f32 %v5513_v63, %v792_v44  ;;  %v759_v35 = vsub.f32 %v5044_v23, %v5577_v19 }
  0xdf   : > { %1738 = vrot.lane.b32.xlu2 %v5800_v10, %s7982_s20  ;;  %1147 = vst.msk [vmem:[#allocation2 + $0xf1] sm:$0xff] %vm7992_vm0, %v1130_v48  ;;  %v6011_v10 = vld [vmem:[#allocation2 + $0xd2] sm:$0xff] }
  0xe0   : > { %v4514_v32 = vmul.f32 -1.442695, %v6004_v14  ;;  %v775_v44 = vmul.f32 %v759_v35, %v5787_v4  ;;  %1498 = vst.msk [vmem:[#allocation4 + $0xb0] sm:$0xff] %vm7992_vm0, %v6080_v41  ;;  %v5045_v4 = vld [vmem:[%s8000_s2] ss:$0 sm:$0xff] }
  0xe1   : > { %v1413_v50 = vpop.permute.xlu2 %1412  ;;  %v1828_v51 = vld [vmem:[#allocation4] sm:$0xff] }
  0xe2   : > { %4966 = vpow2.f32 %v4514_v32 }
  0xe3   : > { %4968 = vpow2.f32 %v4515_v11 }
  0xe5   : > { %1238 = vrot.lane.b32.xlu1 %v6009_v29, %s5128_s17  ;;  %v6019_v2 = vld [vmem:[#allocation2 + $0xe0] sm:$0xff] }
  0xe6   : > { %1335 = vrot.lane.b32.xlu0 %v6011_v10, %s8029_s0  ;;  %v6023_v63 = vld [vmem:[#allocation2 + $0xe1] sm:$0xff]  ;;  %1180 = vst.msk [vmem:[#allocation4 + $0x120] sm:$0xff] %vm7992_vm0, %v6019_v2  ;;  %v6027_v9 = vld [vmem:[#allocation2 + $0xf1] sm:$0xff] }
  0xe7   : > { %1333 = vrot.lane.b32.xlu2 %v5985_v8, %s8029_s0  ;;  %1502 = vst.msk [vmem:[#allocation4 + $0x110] sm:$0xff] %vm7992_vm0, %v6023_v63  ;;  %v6033_v34 = vld [vmem:[#allocation2 + $0xf2] sm:$0xff]  ;;  %v6089_v1 = vld [vmem:[#allocation2 + $0xe2] sm:$0xff] }
  0xe8   : > { %1503 = vst.msk [vmem:[#allocation4 + $0x128] sm:$0xff] %vm7992_vm0, %v6027_v9  ;;  %v4967_v24 = vpop.eup %4966  ;;  %v6037_v38 = vld [vmem:[#allocation2 + $0xf0] sm:$0xff] }
  0xe9   : > { %v1318_v3 = vpop.permute.xlu2 %1317  ;;  %v4969_v58 = vpop.eup %4968  ;;  %v875_v17 = vadd.f32 1.0, %v4967_v24  ;;  %1823 = vst.msk [vmem:[#allocation4 + $0x118] sm:$0xff] %vm7992_vm0, %v6033_v34  ;;  %v4802_v24 = vld [vmem:[%s7970_s5 + $0x70] sm:$0xff] }
  0xea   : > { %v876_v15 = vadd.f32 1.0, %v4969_v58  ;;  %1181 = vst.msk [vmem:[#allocation4 + $0x138] sm:$0xff] %vm7992_vm0, %v6037_v38  ;;  %2121 = vmatpush.bf16.msra.mxu1 %v4802_v24 }
  0xeb   : > { %4970 = vrcp.f32 %v875_v17  ;;  %v1084_v56 = vand.u32 2147483648, %v875_v17  ;;  %vm1078_vm4 = vweird.f32 %v875_v17  ;;  %v1082_v25 = vand.u32 2147483647, %v875_v17  ;;  %1822 = vst.msk [vmem:[#allocation4 + $0x100] sm:$0xff] %vm7992_vm0, %v6089_v1 }
  0xec   : > { %4972 = vrcp.f32 %v876_v15  ;;  %vm1093_vm6 = vweird.f32 %v876_v15  ;;  %v1097_v26 = vand.u32 2147483647, %v876_v15  ;;  %v1099_v31 = vand.u32 2147483648, %v876_v15 }
  0xed   : > { %1430 = vrot.lane.b32.xlu1 %v5941_v33, %s7982_s20  ;;  %v1085_v22 = vor.u32 1.1754944e-38, %v1084_v56  ;;  %vm1083_vm11 = vcmp.eq.f32.partialorder %v1082_v25, 8.507059e+37  ;;  %v4799_v25 = vld [vmem:[%s7970_s5 + $0x58] sm:$0xff] }
  0xee   : > { %1547 = vrot.lane.b32.xlu0 %v5821_v18, %s5128_s17  ;;  %vm1098_vm14 = vcmp.eq.f32.partialorder %v1097_v26, 8.507059e+37  ;;  %v1100_v57 = vor.u32 1.1754944e-38, %v1099_v31  ;;  %v1611_v26 = vld [vmem:[#allocation2 + $0x90] sm:$0xff] }
  0xef   : > { %1432 = vrot.lane.b32.xlu2 %v6019_v2, %s7982_s20  ;;  %v1316_v53 = vpop.permute.xlu1 %1315 }
  0xf0   : > { %v1219_v43 = vpop.permute.xlu0 %1218 }
  0xf1   : > { %1266 = vst.msk [vmem:[#allocation4 + $0x18] sm:$0xff] %vm1264_vm7, %v1219_v43  ;;  %v6048_v45 = vpop.permute.xlu2 %1416  ;;  %v4971_v18 = vpop.eup %4970 }
  0xf2   : > { %1363 = vst.msk [vmem:[#allocation4 + $0x18] sm:$0xff] %vm1361_vm8, %v1316_v53  ;;  %v4973_v60 = vpop.eup %4972  ;;  %v1074_v46 = vmul.f32 %v4971_v18, %v875_v17  ;;  %vm1079_vm5 = vweird.f32 %v4971_v18 }
  0xf3   : > { %1460 = vst.msk [vmem:[#allocation4 + $0x18] sm:$0xff] %vm1458_vm10, %v1413_v50  ;;  %v1089_v49 = vmul.f32 %v4973_v60, %v876_v15  ;;  %vm1094_vm12 = vweird.f32 %v4973_v60  ;;  %vm6066_vm9 = vmor %vm1078_vm4, %vm1079_vm5  ;;  %v5046_v15 = vld [vmem:[%s7968_s3] ss:$0 sm:$0xff]  ;;  %vm2362_vm4 = vcmask 1041408   ;;  %vm7993_vm5 = vcmask 516096  }
  0xf4   : > { %v1075_v30 = vsub.f32 1.0, %v1074_v46  ;;  %vm6074_vm13 = vmor %vm1093_vm6, %vm1094_vm12  ;;  %v4800_v46 = vld [vmem:[%s7970_s5 + $0x60] sm:$0xff] }
  0xf5   : > { %1549 = vrot.lane.b32.xlu1 %v5855_v59, %s5128_s17  ;;  %v1090_v16 = vsub.f32 1.0, %v1089_v49 }
  0xf6   : > { %1646 = vrot.lane.b32.xlu0 %v5777_v36, %s8029_s0  ;;  %v1076_v59 = vmul.f32 %v4971_v18, %v1075_v30  ;;  %v1475_v30 = vld [vmem:[#allocation2 + $0x11] sm:$0xff] }
  0xf7   : > { %1644 = vrot.lane.b32.xlu2 %v5809_v42, %s8029_s0  ;;  %v1223_v12 = vpop.permute.xlu1 %1222  ;;  %v1091_v5 = vmul.f32 %v4973_v60, %v1090_v16  ;;  %1491 = vst.msk [vmem:[#allocation4 + $0x8] sm:$0xff] %vm7992_vm0, %v1475_v30 }
  0xf8   : > { %v1221_v21 = vpop.permute.xlu0 %1220  ;;  %1268 = vst.msk [vmem:[#allocation4 + $0x48] sm:$0xff] %vm1264_vm7, %v1223_v12  ;;  %v1077_v40 = vadd.f32 %v4971_v18, %v1076_v59 }
  0xf9   : > { %v6063_v39 = vpop.permute.xlu2 %1321  ;;  %1267 = vst.msk [vmem:[#allocation4 + $0x30] sm:$0xff] %vm1264_vm7, %v1221_v21  ;;  %v1092_v47 = vadd.f32 %v4973_v60, %v1091_v5 }
  0xfa   : > { %v1831_v36 = vld [vmem:[#allocation4 + $0x18] sm:$0xff]  ;;  %1364 = vst.msk [vmem:[#allocation4 + $0x30] sm:$0xff] %vm1361_vm8, %v1318_v3  ;;  %v1081_v48 = vsel %vm6066_vm9, %v4971_v18, %v1077_v40 }
  0xfb   : > { %v1876_v37 = vpack.c.bf16 %v1831_v36, %v1828_v51  ;;  %v1086_v19 = vsel %vm1083_vm11, %v1085_v22, %v1081_v48  ;;  %v1096_v50 = vsel %vm6074_vm13, %v4973_v60, %v1092_v47 }
  0xfc   : > { %v1101_v32 = vsel %vm1098_vm14, %v1100_v57, %v1096_v50  ;;  %v1131_v58 = vmul.f32 %v1086_v19, %v6004_v14  ;;  %v4801_v14 = vld [vmem:[%s7970_s5 + $0x68] sm:$0xff]  ;;  %v4796_v57 = vld [vmem:[%s7970_s5 + $0x40] sm:$0xff] }
  0xfd   : > { %2079 = vmatmul.bf16.vlgmr.msra.gmra.mxu0 %v1876_v37  ;;  %1740 = vrot.lane.b32.xlu1 %v5844_v54, %s7982_s20  ;;  %v794_v54 = vmul.f32 %v5045_v4, %v775_v44  ;;  %v1132_v17 = vmul.f32 %v1101_v32, %v6007_v62  ;;  %v1476_v62 = vld [vmem:[#allocation2 + $0x21] sm:$0xff] }
  0xfe   : > { %1240 = vrot.lane.b32.xlu0 %v6023_v63, %s5128_s17  ;;  %1148 = vst.msk [vmem:[#allocation2 + $0x101] sm:$0xff] %vm7992_vm0, %v1131_v58  ;;  %2122 = vmatpush.bf16.msra.mxu1 %v4801_v14  ;;  %v4797_v37 = vld [vmem:[%s7970_s5 + $0x48] sm:$0xff] }
  0xff   : > { %1742 = vrot.lane.b32.xlu2 %v5842_v61, %s7982_s20  ;;  %v1415_v11 = vpop.permute.xlu1 %1414  ;;  %v6111_v53 = vadd.f32 %v5046_v15, %v794_v54  ;;  %1149 = vst.msk [vmem:[#allocation2 + $0x111] sm:$0xff] %vm7992_vm0, %v1132_v17  ;;  %v1707_v54 = vld [vmem:[#allocation2 + $0x91] sm:$0xff]  ;;  %v1478_v14 = vld [vmem:[#allocation2 + $0x41] sm:$0xff]  ;;  %s5077_s20 = sshra.s32 %s4421_s1, 4  ;;  %s5078_s20 = int_to_ptr.hbm [resolvable:$true] %s5077_s20 }
 0x100   : > { %v1320_v3 = vpop.permute.xlu0 %1319  ;;  %1461 = vst.msk [vmem:[#allocation4 + $0x30] sm:$0xff] %vm1458_vm10, %v1415_v11  ;;  %p5084_p0 = scmp.lt.s32.totalorder %s5078_s20, %s7979_s14 }
 0x101   : > { %v1421_v61 = vpop.permute.xlu2 %1420  ;;  %1365 = vst.msk [vmem:[#allocation4 + $0x48] sm:$0xff] %vm1361_vm8, %v1320_v3  ;;  %v4516_v43 = vmul.f32 -1.442695, %v6111_v53 }
 0x102   : > { %1462 = vst.msk [vmem:[#allocation4 + $0x48] sm:$0xff] %vm1458_vm10, %v6048_v45  ;;  %2123 = vmatpush.bf16.msra.mxu1 %v4800_v46 }
 0x103   : > { %4974 = vpow2.f32 %v4516_v43  ;;  %1492 = vst.msk [vmem:[#allocation4 + $0x20] sm:$0xff] %vm7992_vm0, %v1476_v62 }
 0x104   : > { %1494 = vst.msk [vmem:[#allocation4 + $0x50] sm:$0xff] %vm7992_vm0, %v1478_v14 }
 0x105   : > { %1242 = vrot.lane.b32.xlu1 %v6027_v9, %s5128_s17  ;;  %v6139_v16 = vld [vmem:[#allocation2 + $0x100] sm:$0xff] }
 0x106   : > { %1339 = vrot.lane.b32.xlu0 %v6033_v34, %s8029_s0  ;;  %v6142_v59 = vld [vmem:[#allocation2 + $0x110] sm:$0xff]  ;;  %1182 = vst.msk [vmem:[#allocation4 + $0x150] sm:$0xff] %vm7992_vm0, %v6139_v16  ;;  %2124 = vmatpush.bf16.msra.mxu1 %v4799_v25  ;;  %v6186_v11 = vld [vmem:[#allocation2 + $0x102] sm:$0xff] }
 0x107   : > { %1337 = vrot.lane.b32.xlu2 %v6089_v1, %s8029_s0  ;;  %v1227_v45 = vpop.permute.xlu1 %1226  ;;  %v1834_v60 = vld [vmem:[#allocation4 + $0x30] sm:$0xff]  ;;  %1183 = vst.msk [vmem:[#allocation4 + $0x168] sm:$0xff] %vm7992_vm0, %v6142_v59 }
 0x108   : > { %v1225_v18 = vpop.permute.xlu0 %1224  ;;  %1270 = vst.msk [vmem:[#allocation4 + $0x78] sm:$0xff] %vm1264_vm7, %v1227_v45  ;;  %v6156_v36 = vld [vmem:[#allocation2 + $0x112] sm:$0xff] }
 0x109   : > { %v1326_v49 = vpop.permute.xlu2 %1325  ;;  %1269 = vst.msk [vmem:[#allocation4 + $0x60] sm:$0xff] %vm1264_vm7, %v1225_v18  ;;  %v1837_v56 = vld [vmem:[#allocation4 + $0x48] sm:$0xff]  ;;  %v4975_v12 = vpop.eup %4974  ;;  %v6168_v31 = vld [vmem:[#allocation2 + $0x111] sm:$0xff] }
 0x10a   : > { %1366 = vst.msk [vmem:[#allocation4 + $0x60] sm:$0xff] %vm1361_vm8, %v6063_v39  ;;  %v1879_v21 = vpack.c.bf16 %v1837_v56, %v1834_v60  ;;  %v877_v51 = vadd.f32 1.0, %v4975_v12  ;;  %v6150_v39 = vld [vmem:[#allocation2 + $0x101] sm:$0xff] }
 0x10b   : > { %1504 = vst.msk [vmem:[#allocation4 + $0x140] sm:$0xff] %vm7992_vm0, %v6150_v39 }
 0x10c   : > { %4976 = vrcp.f32 %v877_v51  ;;  %1825 = vst.msk [vmem:[#allocation4 + $0x148] sm:$0xff] %vm7992_vm0, %v6156_v36  ;;  %v1114_v48 = vand.u32 2147483648, %v877_v51  ;;  %vm1108_vm15 = vweird.f32 %v877_v51 }
 0x10d   : > { %2084 = vmatmul.bf16.gmra.mxu0 %v1879_v21  ;;  %1434 = vrot.lane.b32.xlu1 %v6037_v38, %s8038_s25  ;;  %1505 = vst.msk [vmem:[#allocation4 + $0x158] sm:$0xff] %vm7992_vm0, %v6168_v31 }
 0x10e   : > { %1551 = vrot.lane.b32.xlu0 %v5853_v6, %s5128_s17  ;;  %v4798_v6 = vld [vmem:[%s7970_s5 + $0x50] sm:$0xff]  ;;  %v1115_v50 = vor.u32 1.1754944e-38, %v1114_v48  ;;  %1824 = vst.msk [vmem:[#allocation4 + $0x130] sm:$0xff] %vm7992_vm0, %v6186_v11  ;;  %v1619_v48 = vld [vmem:[#allocation2 + $0x130] sm:$0xff] }
 0x10f   : > { %1436 = vrot.lane.b32.xlu2 %v6139_v16, %s8038_s25  ;;  %v1419_v42 = vpop.permute.xlu1 %1418  ;;  %2125 = vmatpush.bf16.msra.mxu1 %v4798_v6 }
 0x110   : > { %v1324_v22 = vpop.permute.xlu0 %1323  ;;  %1463 = vst.msk [vmem:[#allocation4 + $0x60] sm:$0xff] %vm1458_vm10, %v1419_v42 }
 0x111   : > { %v1425_v5 = vpop.permute.xlu2 %1424  ;;  %1367 = vst.msk [vmem:[#allocation4 + $0x78] sm:$0xff] %vm1361_vm8, %v1324_v22 }
 0x112   : > { %1464 = vst.msk [vmem:[#allocation4 + $0x78] sm:$0xff] %vm1458_vm10, %v1421_v61  ;;  %v4977_v27 = vpop.eup %4976 }
 0x113   : > { %v1104_v40 = vmul.f32 %v4977_v27, %v877_v51  ;;  %2126 = vmatpush.bf16.msra.mxu1 %v4797_v37  ;;  %vm1109_vm1 = vweird.f32 %v4977_v27 }
 0x114   : > { %vm1110_vm2 = vmor %vm1108_vm15, %vm1109_vm1 }
 0x115   : > { %1553 = vrot.lane.b32.xlu1 %v6052_v20, %s5128_s17  ;;  %v1105_v52 = vsub.f32 1.0, %v1104_v40  ;;  %v1112_v20 = vand.u32 2147483647, %v877_v51 }
 0x116   : > { %1650 = vrot.lane.b32.xlu0 %v1611_v26, %s8029_s0 }
 0x117   : > { %1648 = vrot.lane.b32.xlu2 %v5865_v7, %s8029_s0  ;;  %v1231_v23 = vpop.permute.xlu1 %1230  ;;  %v1840_v47 = vld [vmem:[#allocation4 + $0x60] sm:$0xff]  ;;  %v1106_v19 = vmul.f32 %v4977_v27, %v1105_v52  ;;  %2127 = vmatpush.bf16.msra.mxu1 %v4796_v57  ;;  %vm1113_vm3 = vcmp.eq.f32.partialorder %v1112_v20, 8.507059e+37 }
 0x118   : > { %v1229_v35 = vpop.permute.xlu0 %1228  ;;  %1272 = vst.msk [vmem:[#allocation4 + $0xa8] sm:$0xff] %vm1264_vm7, %v1231_v23 }
 0x119   : > { %v1637_v44 = vpop.permute.xlu2 %1636  ;;  %1271 = vst.msk [vmem:[#allocation4 + $0x90] sm:$0xff] %vm1264_vm7, %v1229_v35  ;;  %v1843_v7 = vld [vmem:[#allocation4 + $0x78] sm:$0xff]  ;;  %v1107_v4 = vadd.f32 %v4977_v27, %v1106_v19 }
 0x11a   : > { %1368 = vst.msk [vmem:[#allocation4 + $0x90] sm:$0xff] %vm1361_vm8, %v1326_v49  ;;  %v1882_v32 = vpack.c.bf16 %v1843_v7, %v1840_v47 }
 0x11b   : > { %v1111_v3 = vsel %vm1110_vm2, %v4977_v27, %v1107_v4 }
 0x11c   : > { %v1116_v24 = vsel %vm1113_vm3, %v1115_v50, %v1111_v3  ;;  %v1715_v50 = vld [vmem:[#allocation2 + $0x131] sm:$0xff] }
 0x11d   : > { %2089 = vmatmul.bf16.gmra.mxu0 %v1882_v32  ;;  %1744 = vrot.lane.b32.xlu1 %v6080_v41, %s8038_s25  ;;  %v1133_v17 = vmul.f32 %v1116_v24, %v6111_v53  ;;  %v1477_v41 = vld [vmem:[#allocation2 + $0x31] sm:$0xff]  ;;  %v1848_v24 = vld [vmem:[#allocation4 + $0xa0] sm:$0xff] }
 0x11e   : > { %1244 = vrot.lane.b32.xlu0 %v6150_v39, %s5128_s17  ;;  %1493 = vst.msk [vmem:[#allocation4 + $0x38] sm:$0xff] %vm7992_vm0, %v1477_v41  ;;  %v1803_v32 = vld [vmem:[#allocation2 + $0x92] sm:$0xff] }
 0x11f   : > { %1746 = vrot.lane.b32.xlu2 %v1707_v54, %s8038_s25  ;;  %v1423_v58 = vpop.permute.xlu1 %1422  ;;  %1150 = vst.msk [vmem:[#allocation2 + $0x121] sm:$0xff] %vm7992_vm0, %v1133_v17  ;;  %v4804_v3 = vld [vmem:[%s7970_s5 + $0x80] sm:$0xff] }
 0x120   : > { %v1328_v61 = vpop.permute.xlu0 %1327  ;;  %1465 = vst.msk [vmem:[#allocation4 + $0x90] sm:$0xff] %vm1458_vm10, %v1423_v58 }
 0x121   : > { %v1735_v15 = vpop.permute.xlu2 %1734  ;;  %1369 = vst.msk [vmem:[#allocation4 + $0xa8] sm:$0xff] %vm1361_vm8, %v1328_v61 }
 0x122   : > { %1466 = vst.msk [vmem:[#allocation4 + $0xa8] sm:$0xff] %vm1458_vm10, %v1425_v5 }
 0x123   : > { %1819 = vst.msk [vmem:[#allocation4 + $0xb8] sm:$0xff] %vm7992_vm0, %v1803_v32  ;;  %v1801_v32 = vld [vmem:[#allocation2 + $0x72] sm:$0xff] }
 0x124   : > { %1817 = vst.msk [vmem:[#allocation4 + $0x88] sm:$0xff] %vm7992_vm0, %v1801_v32 }
 0x125   : > { %1246 = vrot.lane.b32.xlu1 %v6168_v31, %s5128_s17 }
 0x126   : > { %1343 = vrot.lane.b32.xlu0 %v6156_v36, %s8029_s0  ;;  %v6211_v46 = vld [vmem:[#allocation2 + $0x120] sm:$0xff] }
 0x127   : > { %1341 = vrot.lane.b32.xlu2 %v6186_v11, %s8029_s0  ;;  %v1542_v53 = vpop.permute.xlu1 %1541  ;;  %v1846_v62 = vld [vmem:[#allocation4 + $0x90] sm:$0xff]  ;;  %v1522_v6 = vld [vmem:[#allocation2 + $0x122] sm:$0xff] }
 0x128   : > { %v1540_v43 = vpop.permute.xlu0 %1539  ;;  %1588 = vst.msk [vmem:[#allocation4 + $0x20] sm:$0xff] %vm1264_vm7, %v1542_v53 }
 0x129   : > { %v1429_v45 = vpop.permute.xlu2 %1428  ;;  %1587 = vst.msk [vmem:[#allocation4 + $0x8] sm:$0xff] %vm1264_vm7, %v1540_v43  ;;  %v1849_v18 = vld [vmem:[#allocation4 + $0xa8] sm:$0xff] }
 0x12a   : > { %1684 = vst.msk [vmem:[#allocation4 + $0x8] sm:$0xff] %vm1361_vm8, %v1637_v44  ;;  %v1885_v60 = vpack.c.bf16 %v1849_v18, %v1846_v62  ;;  %v1481_v44 = vld [vmem:[#allocation2 + $0x71] sm:$0xff] }
 0x12b   : > { %1826 = vst.msk [vmem:[#allocation4 + $0x160] sm:$0xff] %vm7992_vm0, %v1522_v6  ;;  %v1851_v58 = vld [vmem:[#allocation4 + $0xb8] sm:$0xff] }
 0x12c   : > { %1497 = vst.msk [vmem:[#allocation4 + $0x98] sm:$0xff] %vm7992_vm0, %v1481_v44  ;;  %v1887_v17 = vpack.c.bf16 %v1851_v58, %v1848_v24  ;;  %v1866_v44 = vld [vmem:[#allocation4 + $0x130] sm:$0xff] }
 0x12d   : > { %2094 = vmatmul.bf16.gmra.mxu0 %v1885_v60  ;;  %1438 = vrot.lane.b32.xlu1 %v6142_v59, %s8038_s25  ;;  %v1483_v60 = vld [vmem:[#allocation2 + $0xb1] sm:$0xff] }
 0x12e   : > { %1555 = vrot.lane.b32.xlu0 %v5920_v55, %s5128_s17  ;;  %1499 = vst.msk [vmem:[#allocation4 + $0xc8] sm:$0xff] %vm7992_vm0, %v1483_v60 }
 0x12f   : > { %1440 = vrot.lane.b32.xlu2 %v6211_v46, %s8038_s25  ;;  %v1733_v49 = vpop.permute.xlu1 %1732 }
 0x130   : > { %v1639_v30 = vpop.permute.xlu0 %1638  ;;  %1780 = vst.msk [vmem:[#allocation4 + $0x8] sm:$0xff] %vm1458_vm10, %v1733_v49  ;;  %v1805_v49 = vld [vmem:[#allocation2 + $0xd2] sm:$0xff] }
 0x131   : > { %v1641_v56 = vpop.permute.xlu2 %1640  ;;  %1685 = vst.msk [vmem:[#allocation4 + $0x20] sm:$0xff] %vm1361_vm8, %v1639_v30 }
 0x132   : > { %1781 = vst.msk [vmem:[#allocation4 + $0x20] sm:$0xff] %vm1458_vm10, %v1735_v15 }
 0x133   : > { %1821 = vst.msk [vmem:[#allocation4 + $0xe8] sm:$0xff] %vm7992_vm0, %v1805_v49 }
 0x135   : > { %1557 = vrot.lane.b32.xlu1 %v5985_v8, %s5128_s17  ;;  %v4805_v8 = vld [vmem:[%s7970_s5 + $0x88] sm:$0xff] }
 0x136   : > { %1654 = vrot.lane.b32.xlu0 %v5941_v33, %s8029_s0  ;;  %2175 = vmatpush.bf16.msrb.mxu0 %v4805_v8 }
 0x137   : > { %1652 = vrot.lane.b32.xlu2 %v5922_v28, %s8029_s0  ;;  %v1235_v55 = vpop.permute.xlu1 %1234  ;;  %v1829_v12 = vld [vmem:[#allocation4 + $0x8] sm:$0xff]  ;;  %4846 = vmatpush.bf16.msra.mxu2 %v4805_v8 }
 0x138   : > { %v1332_v21 = vpop.permute.xlu0 %1331  ;;  %1274 = vst.msk [vmem:[#allocation4 + $0xd8] sm:$0xff] %vm1264_vm7, %v1235_v55 }
 0x139   : > { %v1739_v25 = vpop.permute.xlu2 %1738  ;;  %v1832_v51 = vld [vmem:[#allocation4 + $0x20] sm:$0xff]  ;;  %1371 = vst.msk [vmem:[#allocation4 + $0xd8] sm:$0xff] %vm1361_vm8, %v1332_v21 }
 0x13a   : > { %v1877_v42 = vpack.c.bf16 %v1832_v51, %v1829_v12  ;;  %1468 = vst.msk [vmem:[#allocation4 + $0xd8] sm:$0xff] %vm1458_vm10, %v1429_v45  ;;  %2176 = vmatpush.bf16.msrb.mxu0 %v4804_v3  ;;  %v1854_v51 = vld [vmem:[#allocation4 + $0xd0] sm:$0xff] }
 0x13b   : > { %4847 = vmatpush.bf16.msra.mxu2 %v4804_v3  ;;  %v1811_v3 = vld [vmem:[#allocation2 + $0x132] sm:$0xff] }
 0x13c   : > { %2128 = vmatmul.bf16.vlgmr.msra.gmra.mxu1 %v1877_v42  ;;  %v1857_v42 = vld [vmem:[#allocation4 + $0xe8] sm:$0xff]  ;;  %1827 = vst.msk [vmem:[#allocation4 + $0x178] sm:$0xff] %vm7992_vm0, %v1811_v3 }
 0x13d   : > { %1748 = vrot.lane.b32.xlu1 %v5975_v13, %s8038_s25  ;;  %v1890_v8 = vpack.c.bf16 %v1857_v42, %v1854_v51 }
 0x13e   : > { %1559 = vrot.lane.b32.xlu0 %v6011_v10, %s5128_s17  ;;  %v1480_v10 = vld [vmem:[#allocation2 + $0x61] sm:$0xff]  ;;  %4592 = vmatmul.msk.bf16.vlgmr.msra.gmra.mxu2 %vm7992_vm0, %v1887_v17 }
 0x13f   : > { %1750 = vrot.lane.b32.xlu2 %v6009_v29, %s8038_s25  ;;  %v1427_v28 = vpop.permute.xlu1 %1426  ;;  %v1479_v29 = vld [vmem:[#allocation2 + $0x51] sm:$0xff]  ;;  %1496 = vst.msk [vmem:[#allocation4 + $0x80] sm:$0xff] %vm7992_vm0, %v1480_v10 }
 0x140   : > { %v1544_v33 = vpop.permute.xlu0 %1543  ;;  %1467 = vst.msk [vmem:[#allocation4 + $0xc0] sm:$0xff] %vm1458_vm10, %v1427_v28 }
 0x141   : > { %v1334_v22 = vpop.permute.xlu2 %1333  ;;  %1589 = vst.msk [vmem:[#allocation4 + $0x38] sm:$0xff] %vm1264_vm7, %v1544_v33  ;;  %v1855_v13 = vld [vmem:[#allocation4 + $0xd8] sm:$0xff] }
 0x142   : > { %1686 = vst.msk [vmem:[#allocation4 + $0x38] sm:$0xff] %vm1361_vm8, %v1641_v56 }
 0x143   : > { %1495 = vst.msk [vmem:[#allocation4 + $0x68] sm:$0xff] %vm7992_vm0, %v1479_v29  ;;  %v1797_v29 = vld [vmem:[#allocation2 + $0x32] sm:$0xff] }
 0x144   : > { %1813 = vst.msk [vmem:[#allocation4 + $0x28] sm:$0xff] %vm7992_vm0, %v1797_v29  ;;  %v1875_v60 = vld [vmem:[#allocation4 + $0x178] sm:$0xff] }
 0x145   : > { %1561 = vrot.lane.b32.xlu1 %v6089_v1, %s5128_s17 }
 0x146   : > { %1658 = vrot.lane.b32.xlu0 %v6037_v38, %s8029_s0  ;;  %v1714_v38 = vld [vmem:[#allocation2 + $0x121] sm:$0xff] }
 0x147   : > { %1656 = vrot.lane.b32.xlu2 %v6019_v2, %s8029_s0  ;;  %v1546_v5 = vpop.permute.xlu1 %1545  ;;  %v1852_v26 = vld [vmem:[#allocation4 + $0xc0] sm:$0xff]  ;;  %1506 = vst.msk [vmem:[#allocation4 + $0x170] sm:$0xff] %vm7992_vm0, %v1714_v38 }
 0x148   : > { %v1643_v37 = vpop.permute.xlu0 %1642  ;;  %1590 = vst.msk [vmem:[#allocation4 + $0x50] sm:$0xff] %vm1264_vm7, %v1546_v5  ;;  %v1888_v27 = vpack.c.bf16 %v1855_v13, %v1852_v26  ;;  %v1485_v13 = vld [vmem:[#allocation2 + $0xd1] sm:$0xff] }
 0x149   : > { %v1433_v1 = vpop.permute.xlu2 %1432  ;;  %1687 = vst.msk [vmem:[#allocation4 + $0x50] sm:$0xff] %vm1361_vm8, %v1643_v37 }
 0x14a   : > { %2099 = vmatmul.bf16.gmra.mxu0 %v1888_v27  ;;  %1783 = vst.msk [vmem:[#allocation4 + $0x50] sm:$0xff] %vm1458_vm10, %v1739_v25 }
 0x14b   : > { %1501 = vst.msk [vmem:[#allocation4 + $0xf8] sm:$0xff] %vm7992_vm0, %v1485_v13 }
 0x14d   : > { %1752 = vrot.lane.b32.xlu1 %v6023_v63, %s8038_s25 }
 0x14e   : > { %1563 = vrot.lane.b32.xlu0 %v6033_v34, %s5128_s17  ;;  %4593 = vmatmul.msk.bf16.gmra.mxu2 %vm7992_vm0, %v1890_v8 }
 0x14f   : > { %1754 = vrot.lane.b32.xlu2 %v6027_v9, %s8038_s25  ;;  %v1737_v2 = vpop.permute.xlu1 %1736 }
 0x150   : > { %v1237_v40 = vpop.permute.xlu0 %1236  ;;  %1782 = vst.msk [vmem:[#allocation4 + $0x38] sm:$0xff] %vm1458_vm10, %v1737_v2  ;;  %v1863_v2 = vld [vmem:[#allocation4 + $0x118] sm:$0xff] }
 0x151   : > { %v1645_v52 = vpop.permute.xlu2 %1644  ;;  %1275 = vst.msk [vmem:[#allocation4 + $0xf0] sm:$0xff] %vm1264_vm7, %v1237_v40  ;;  %v1838_v23 = vld [vmem:[#allocation4 + $0x50] sm:$0xff] }
 0x152   : > { %1372 = vst.msk [vmem:[#allocation4 + $0xf0] sm:$0xff] %vm1361_vm8, %v1334_v22 }
 0x155   : > { %1565 = vrot.lane.b32.xlu1 %v6186_v11, %s5128_s17 }
 0x156   : > { %1662 = vrot.lane.b32.xlu0 %v6142_v59, %s8029_s0 }
 0x157   : > { %1660 = vrot.lane.b32.xlu2 %v6139_v16, %s8029_s0  ;;  %v1239_v63 = vpop.permute.xlu1 %1238  ;;  %v1835_v9 = vld [vmem:[#allocation4 + $0x38] sm:$0xff] }
 0x158   : > { %v1336_v34 = vpop.permute.xlu0 %1335  ;;  %1276 = vst.msk [vmem:[#allocation4 + $0x108] sm:$0xff] %vm1264_vm7, %v1239_v63  ;;  %v1880_v35 = vpack.c.bf16 %v1838_v23, %v1835_v9  ;;  %v1798_v63 = vld [vmem:[#allocation2 + $0x42] sm:$0xff]  ;;  %v1799_v9 = vld [vmem:[#allocation2 + $0x52] sm:$0xff] }
 0x159   : > { %v1743_v47 = vpop.permute.xlu2 %1742  ;;  %1373 = vst.msk [vmem:[#allocation4 + $0x108] sm:$0xff] %vm1361_vm8, %v1336_v34 }
 0x15a   : > { %2133 = vmatmul.bf16.gmra.mxu1 %v1880_v35  ;;  %1470 = vst.msk [vmem:[#allocation4 + $0x108] sm:$0xff] %vm1458_vm10, %v1433_v1 }
 0x15b   : > { %1814 = vst.msk [vmem:[#allocation4 + $0x40] sm:$0xff] %vm7992_vm0, %v1798_v63 }
 0x15c   : > { %1815 = vst.msk [vmem:[#allocation4 + $0x58] sm:$0xff] %vm7992_vm0, %v1799_v9 }
 0x15d   : > { %1756 = vrot.lane.b32.xlu1 %v6150_v39, %s8038_s25 }
 0x15e   : > { %1567 = vrot.lane.b32.xlu0 %v6156_v36, %s5128_s17 }
 0x15f   : > { %1758 = vrot.lane.b32.xlu2 %v6168_v31, %s8038_s25  ;;  %v1431_v16 = vpop.permute.xlu1 %1430 }
 0x160   : > { %v1548_v59 = vpop.permute.xlu0 %1547  ;;  %1469 = vst.msk [vmem:[#allocation4 + $0xf0] sm:$0xff] %vm1458_vm10, %v1431_v16 }
 0x161   : > { %v1338_v57 = vpop.permute.xlu2 %1337  ;;  %1591 = vst.msk [vmem:[#allocation4 + $0x68] sm:$0xff] %vm1264_vm7, %v1548_v59  ;;  %v1861_v39 = vld [vmem:[#allocation4 + $0x108] sm:$0xff] }
 0x162   : > { %1688 = vst.msk [vmem:[#allocation4 + $0x68] sm:$0xff] %vm1361_vm8, %v1645_v52 }
 0x165   : > { %1569 = vrot.lane.b32.xlu1 %v1522_v6, %s5128_s17  ;;  %v1796_v6 = vld [vmem:[#allocation2 + $0x22] sm:$0xff] }
 0x166   : > { %1666 = vrot.lane.b32.xlu0 %v1619_v48, %s8029_s0  ;;  %1812 = vst.msk [vmem:[#allocation4 + $0x10] sm:$0xff] %vm7992_vm0, %v1796_v6 }
 0x167   : > { %1664 = vrot.lane.b32.xlu2 %v6211_v46, %s8029_s0  ;;  %v1550_v36 = vpop.permute.xlu1 %1549  ;;  %v1858_v31 = vld [vmem:[#allocation4 + $0xf0] sm:$0xff]  ;;  %v1484_v46 = vld [vmem:[#allocation2 + $0xc1] sm:$0xff] }
 0x168   : > { %v1647_v19 = vpop.permute.xlu0 %1646  ;;  %1592 = vst.msk [vmem:[#allocation4 + $0x80] sm:$0xff] %vm1264_vm7, %v1550_v36  ;;  %v1891_v20 = vpack.c.bf16 %v1861_v39, %v1858_v31  ;;  %v1869_v39 = vld [vmem:[#allocation4 + $0x148] sm:$0xff] }
 0x169   : > { %v1437_v7 = vpop.permute.xlu2 %1436  ;;  %1689 = vst.msk [vmem:[#allocation4 + $0x80] sm:$0xff] %vm1361_vm8, %v1647_v19  ;;  %v1896_v36 = vpack.c.bf16 %v1869_v39, %v1866_v44 }
 0x16a   : > { %2104 = vmatmul.bf16.gmra.mxu0 %v1891_v20  ;;  %1785 = vst.msk [vmem:[#allocation4 + $0x80] sm:$0xff] %vm1458_vm10, %v1743_v47 }
 0x16b   : > { %1500 = vst.msk [vmem:[#allocation4 + $0xe0] sm:$0xff] %vm7992_vm0, %v1484_v46 }
 0x16d   : > { %1760 = vrot.lane.b32.xlu1 %v1714_v38, %s8038_s25  ;;  %v1860_v38 = vld [vmem:[#allocation4 + $0x100] sm:$0xff] }
 0x16e   : > { %v1893_v40 = vpack.c.bf16 %v1863_v2, %v1860_v38 }
 0x16f   : > { %1762 = vrot.lane.b32.xlu2 %v1715_v50, %s8038_s25  ;;  %v1741_v4 = vpop.permute.xlu1 %1740  ;;  %v1800_v50 = vld [vmem:[#allocation2 + $0x62] sm:$0xff] }
 0x170   : > { %v1241_v54 = vpop.permute.xlu0 %1240  ;;  %1784 = vst.msk [vmem:[#allocation4 + $0x68] sm:$0xff] %vm1458_vm10, %v1741_v4  ;;  %4594 = vmatmul.msk.bf16.gmra.mxu2 %vm7992_vm0, %v1893_v40  ;;  %v1830_v4 = vld [vmem:[#allocation4 + $0x10] sm:$0xff] }
 0x171   : > { %v1649_v11 = vpop.permute.xlu2 %1648  ;;  %1277 = vst.msk [vmem:[#allocation4 + $0x120] sm:$0xff] %vm1264_vm7, %v1241_v54  ;;  %v1844_v61 = vld [vmem:[#allocation4 + $0x80] sm:$0xff]  ;;  %v1833_v54 = vld [vmem:[#allocation4 + $0x28] sm:$0xff] }
 0x172   : > { %1374 = vst.msk [vmem:[#allocation4 + $0x120] sm:$0xff] %vm1361_vm8, %v1338_v57 }
 0x173   : > { %1816 = vst.msk [vmem:[#allocation4 + $0x70] sm:$0xff] %vm7992_vm0, %v1800_v50 }
 0x177   : > { %v1243_v15 = vpop.permute.xlu1 %1242  ;;  %v1841_v41 = vld [vmem:[#allocation4 + $0x68] sm:$0xff] }
 0x178   : > { %v1340_v14 = vpop.permute.xlu0 %1339  ;;  %1278 = vst.msk [vmem:[#allocation4 + $0x138] sm:$0xff] %vm1264_vm7, %v1243_v15  ;;  %v1883_v53 = vpack.c.bf16 %v1844_v61, %v1841_v41  ;;  %v1878_v61 = vpack.c.bf16 %v1833_v54, %v1830_v4 }
 0x179   : > { %v1747_v43 = vpop.permute.xlu2 %1746  ;;  %1375 = vst.msk [vmem:[#allocation4 + $0x138] sm:$0xff] %vm1361_vm8, %v1340_v14 }
 0x17a   : > { %2138 = vmatmul.bf16.gmra.mxu1 %v1883_v53  ;;  %1472 = vst.msk [vmem:[#allocation4 + $0x138] sm:$0xff] %vm1458_vm10, %v1437_v7  ;;  %v2080_v34 = vpop.f32.mrf.mxu0 }
 0x17f   : > { %v1435_v62 = vpop.permute.xlu1 %1434 }
 0x180   : > { %v1552_v45 = vpop.permute.xlu0 %1551  ;;  %1471 = vst.msk [vmem:[#allocation4 + $0x120] sm:$0xff] %vm1458_vm10, %v1435_v62  ;;  %4595 = vmatmul.msk.bf16.gmra.mxu2 %vm7992_vm0, %v1896_v36 }
 0x181   : > { %v1342_v18 = vpop.permute.xlu2 %1341  ;;  %1593 = vst.msk [vmem:[#allocation4 + $0x98] sm:$0xff] %vm1264_vm7, %v1552_v45  ;;  %v1867_v30 = vld [vmem:[#allocation4 + $0x138] sm:$0xff] }
 0x182   : > { %1690 = vst.msk [vmem:[#allocation4 + $0x98] sm:$0xff] %vm1361_vm8, %v1649_v11  ;;  %v6338_v31 = vpop.f32.mrf.mxu0  ;;  %v6348_v11 = vld [vmem:[%s7971_s6] ss:$0 sm:$0xff] }
 0x183   : > { %v2081_v14 = vadd.f32 %v6348_v11, %v2080_v34 }
 0x187   : > { %v1554_v56 = vpop.permute.xlu1 %1553  ;;  %v1864_v55 = vld [vmem:[#allocation4 + $0x120] sm:$0xff] }
 0x188   : > { %v1651_v12 = vpop.permute.xlu0 %1650  ;;  %1594 = vst.msk [vmem:[#allocation4 + $0xb0] sm:$0xff] %vm1264_vm7, %v1554_v56  ;;  %v1894_v21 = vpack.c.bf16 %v1867_v30, %v1864_v55 }
 0x189   : > { %v1441_v25 = vpop.permute.xlu2 %1440  ;;  %1691 = vst.msk [vmem:[#allocation4 + $0xb0] sm:$0xff] %vm1361_vm8, %v1651_v12  ;;  %v1836_v12 = vld [vmem:[#allocation4 + $0x40] sm:$0xff] }
 0x18a   : > { %2109 = vmatmul.bf16.gmra.mxu0 %v1894_v21  ;;  %1787 = vst.msk [vmem:[#allocation4 + $0xb0] sm:$0xff] %vm1458_vm10, %v1747_v43  ;;  %v2085_v58 = vpop.f32.mrf.mxu0  ;;  %v1839_v21 = vld [vmem:[#allocation4 + $0x58] sm:$0xff] }
 0x18b   : > { %v1881_v51 = vpack.c.bf16 %v1839_v21, %v1836_v12 }
 0x18f   : > { %v1745_v28 = vpop.permute.xlu1 %1744 }
 0x190   : > { %v1245_v33 = vpop.permute.xlu0 %1244  ;;  %1786 = vst.msk [vmem:[#allocation4 + $0x98] sm:$0xff] %vm1458_vm10, %v1745_v28 }
 0x191   : > { %v1653_v22 = vpop.permute.xlu2 %1652  ;;  %1279 = vst.msk [vmem:[#allocation4 + $0x150] sm:$0xff] %vm1264_vm7, %v1245_v33  ;;  %v1850_v10 = vld [vmem:[#allocation4 + $0xb0] sm:$0xff] }
 0x192   : > { %1376 = vst.msk [vmem:[#allocation4 + $0x150] sm:$0xff] %vm1361_vm8, %v1342_v18  ;;  %v1872_v18 = vld [vmem:[#allocation4 + $0x160] sm:$0xff]  ;;  %v6361_v56 = vpop.f32.mrf.mxu0 }
 0x193   : > { %v1899_v46 = vpack.c.bf16 %v1875_v60, %v1872_v18 }
 0x195   : > { %4596 = vmatmul.msk.bf16.gmra.mxu2 %vm7992_vm0, %v1899_v46 }
 0x197   : > { %v1247_v5 = vpop.permute.xlu1 %1246  ;;  %v1847_v26 = vld [vmem:[#allocation4 + $0x98] sm:$0xff] }
 0x198   : > { %v1344_v37 = vpop.permute.xlu0 %1343  ;;  %1280 = vst.msk [vmem:[#allocation4 + $0x168] sm:$0xff] %vm1264_vm7, %v1247_v5  ;;  %v1886_v27 = vpack.c.bf16 %v1850_v10, %v1847_v26  ;;  %v1842_v5 = vld [vmem:[#allocation4 + $0x70] sm:$0xff]  ;;  %v1845_v26 = vld [vmem:[#allocation4 + $0x88] sm:$0xff] }
 0x199   : > { %1377 = vst.msk [vmem:[#allocation4 + $0x168] sm:$0xff] %vm1361_vm8, %v1344_v37  ;;  %v1751_v1 = vpop.permute.xlu2 %1750  ;;  %v1884_v38 = vpack.c.bf16 %v1845_v26, %v1842_v5 }
 0x19a   : > { %2143 = vmatmul.bf16.gmra.mxu1 %v1886_v27  ;;  %1474 = vst.msk [vmem:[#allocation4 + $0x168] sm:$0xff] %vm1458_vm10, %v1441_v25 }
 0x19f   : > { %v1439_v52 = vpop.permute.xlu1 %1438 }
 0x1a0   : > { %v1556_v23 = vpop.permute.xlu0 %1555  ;;  %1473 = vst.msk [vmem:[#allocation4 + $0x150] sm:$0xff] %vm1458_vm10, %v1439_v52 }
 0x1a1   : > { %1595 = vst.msk [vmem:[#allocation4 + $0xc8] sm:$0xff] %vm1264_vm7, %v1556_v23  ;;  %v1657_v35 = vpop.permute.xlu2 %1656  ;;  %v1873_v47 = vld [vmem:[#allocation4 + $0x168] sm:$0xff] }
 0x1a2   : > { %1692 = vst.msk [vmem:[#allocation4 + $0xc8] sm:$0xff] %vm1361_vm8, %v1653_v22  ;;  %v2090_v22 = vpop.f32.mrf.mxu0 }
 0x1a3   : > { %v2091_v36 = vadd.f32 %v6348_v11, %v2090_v22 }
 0x1a7   : > { %v1558_v16 = vpop.permute.xlu1 %1557  ;;  %v1870_v59 = vld [vmem:[#allocation4 + $0x150] sm:$0xff] }
 0x1a8   : > { %v1655_v57 = vpop.permute.xlu0 %1654  ;;  %1596 = vst.msk [vmem:[#allocation4 + $0xe0] sm:$0xff] %vm1264_vm7, %v1558_v16  ;;  %v1897_v48 = vpack.c.bf16 %v1873_v47, %v1870_v59 }
 0x1a9   : > { %1693 = vst.msk [vmem:[#allocation4 + $0xe0] sm:$0xff] %vm1361_vm8, %v1655_v57  ;;  %v1755_v19 = vpop.permute.xlu2 %1754 }
 0x1aa   : > { %2114 = vmatmul.bf16.gmra.mxu0 %v1897_v48  ;;  %1789 = vst.msk [vmem:[#allocation4 + $0xe0] sm:$0xff] %vm1458_vm10, %v1751_v1  ;;  %v6374_v37 = vpop.f32.mrf.mxu0  ;;  %v2086_v1 = vadd.f32 %v6348_v11, %v2085_v58 }
 0x1af   : > { %v1749_v20 = vpop.permute.xlu1 %1748 }
 0x1b0   : > { %v1560_v7 = vpop.permute.xlu0 %1559  ;;  %1788 = vst.msk [vmem:[#allocation4 + $0xc8] sm:$0xff] %vm1458_vm10, %v1749_v20 }
 0x1b1   : > { %1597 = vst.msk [vmem:[#allocation4 + $0xf8] sm:$0xff] %vm1264_vm7, %v1560_v7  ;;  %v1856_v24 = vld [vmem:[#allocation4 + $0xe0] sm:$0xff]  ;;  %v1661_v43 = vpop.permute.xlu2 %1660 }
 0x1b2   : > { %1694 = vst.msk [vmem:[#allocation4 + $0xf8] sm:$0xff] %vm1361_vm8, %v1657_v35  ;;  %v2095_v35 = vpop.f32.mrf.mxu0 }
 0x1b3   : > { %v2096_v3 = vadd.f32 %v6348_v11, %v2095_v35 }
 0x1b7   : > { %v1562_v17 = vpop.permute.xlu1 %1561  ;;  %v1853_v15 = vld [vmem:[#allocation4 + $0xc8] sm:$0xff] }
 0x1b8   : > { %v1659_v41 = vpop.permute.xlu0 %1658  ;;  %1598 = vst.msk [vmem:[#allocation4 + $0x110] sm:$0xff] %vm1264_vm7, %v1562_v17  ;;  %v1889_v53 = vpack.c.bf16 %v1856_v24, %v1853_v15 }
 0x1b9   : > { %v2129_v62 = vpop.f32.mrf.mxu1  ;;  %1695 = vst.msk [vmem:[#allocation4 + $0x110] sm:$0xff] %vm1361_vm8, %v1659_v41  ;;  %v1759_v55 = vpop.permute.xlu2 %1758 }
 0x1ba   : > { %v6355_v45 = vadd.f32 %v2129_v62, %v2081_v14  ;;  %2148 = vmatmul.bf16.gmra.mxu1 %v1889_v53  ;;  %4589 = vmatmul.msk.bf16.vlgmr.msrb.gmra.mxu0 %vm7992_vm0, %v1878_v61  ;;  %1791 = vst.msk [vmem:[#allocation4 + $0x110] sm:$0xff] %vm1458_vm10, %v1755_v19  ;;  %v2097_v48 = vpop.f32.mrf.mxu0 }
 0x1bb   : > { %v2098_v12 = vadd.f32 %v6348_v11, %v2097_v48 }
 0x1bf   : > { %v1753_v49 = vpop.permute.xlu1 %1752 }
 0x1c0   : > { %v1564_v30 = vpop.permute.xlu0 %1563  ;;  %1790 = vst.msk [vmem:[#allocation4 + $0xf8] sm:$0xff] %vm1458_vm10, %v1753_v49 }
 0x1c1   : > { %1599 = vst.msk [vmem:[#allocation4 + $0x128] sm:$0xff] %vm1264_vm7, %v1564_v30  ;;  %v1862_v25 = vld [vmem:[#allocation4 + $0x110] sm:$0xff]  ;;  %v1665_v6 = vpop.permute.xlu2 %1664  ;;  %v6369_v13 = vpop.f32.mrf.mxu1 }
 0x1c2   : > { %1696 = vst.msk [vmem:[#allocation4 + $0x128] sm:$0xff] %vm1361_vm8, %v1661_v43  ;;  %v2193_v58 = vpop.f32.mrf.mxu2 }
 0x1c7   : > { %v1566_v42 = vpop.permute.xlu1 %1565  ;;  %v1859_v8 = vld [vmem:[#allocation4 + $0xf8] sm:$0xff]  ;;  %v2100_v39 = vpop.f32.mrf.mxu0 }
 0x1c8   : > { %1600 = vst.msk [vmem:[#allocation4 + $0x140] sm:$0xff] %vm1264_vm7, %v1566_v42  ;;  %v1892_v28 = vpack.c.bf16 %v1862_v25, %v1859_v8  ;;  %v1663_v33 = vpop.permute.xlu0 %1662  ;;  %v2101_v25 = vadd.f32 %v6348_v11, %v2100_v39 }
 0x1c9   : > { %1697 = vst.msk [vmem:[#allocation4 + $0x140] sm:$0xff] %vm1361_vm8, %v1663_v33  ;;  %v1763_v2 = vpop.permute.xlu2 %1762 }
 0x1ca   : > { %2153 = vmatmul.bf16.gmra.mxu1 %v1892_v28  ;;  %4590 = vmatmul.msk.bf16.gmra.mxu0 %vm7992_vm0, %v1881_v51  ;;  %1793 = vst.msk [vmem:[#allocation4 + $0x140] sm:$0xff] %vm1458_vm10, %v1759_v55  ;;  %v2195_v41 = vpop.f32.mrf.mxu2  ;;  %v6399_v51 = vld [vmem:[%s6325_s19] ss:$0 sm:$0xff]  ;;  %v2083_v28 = vadd.f32 %v6348_v11, %v6338_v31 }
 0x1cf   : > { %v1757_v29 = vpop.permute.xlu1 %1756  ;;  %v2102_v7 = vpop.f32.mrf.mxu0 }
 0x1d0   : > { %1792 = vst.msk [vmem:[#allocation4 + $0x128] sm:$0xff] %vm1458_vm10, %v1757_v29  ;;  %v1568_v10 = vpop.permute.xlu0 %1567  ;;  %v2103_v22 = vadd.f32 %v6348_v11, %v2102_v7 }
 0x1d1   : > { %1601 = vst.msk [vmem:[#allocation4 + $0x158] sm:$0xff] %vm1264_vm7, %v1568_v10  ;;  %v1868_v27 = vld [vmem:[#allocation4 + $0x140] sm:$0xff]  ;;  %v2132_v10 = vadd.f32 %v6369_v13, %v2083_v28 }
 0x1d2   : > { %1698 = vst.msk [vmem:[#allocation4 + $0x158] sm:$0xff] %vm1361_vm8, %v1665_v6  ;;  %v2198_v53 = vpop.f32.mrf.mxu2 }
 0x1d7   : > { %v1570_v40 = vpop.permute.xlu1 %1569  ;;  %v2134_v52 = vpop.f32.mrf.mxu1  ;;  %v1865_v23 = vld [vmem:[#allocation4 + $0x128] sm:$0xff] }
 0x1d8   : > { %1602 = vst.msk [vmem:[#allocation4 + $0x170] sm:$0xff] %vm1264_vm7, %v1570_v40  ;;  %v6378_v63 = vadd.f32 %v2134_v52, %v2086_v1  ;;  %v1895_v9 = vpack.c.bf16 %v1868_v27, %v1865_v23  ;;  %v1667_v34 = vpop.permute.xlu0 %1666  ;;  %vm544_vm7 = vcmask 523264   ;;  %v2088_v1 = vadd.f32 %v6348_v11, %v6361_v56  ;;  %v6417_v40 = vld [vmem:[%s6325_s19 + $0x1] ss:$0 sm:$0xff] }
 0x1d9   : > { %1699 = vst.msk [vmem:[#allocation4 + $0x170] sm:$0xff] %vm1361_vm8, %v1667_v34  ;;  %v2093_v52 = vadd.f32 %v6348_v11, %v6374_v37  ;;  %vm2354_vm8 = vcmask 1041409  }
 0x1da   : > { %2158 = vmatmul.bf16.gmra.mxu1 %v1895_v9  ;;  %4591 = vmatmul.msk.bf16.gmra.mxu0 %vm7992_vm0, %v1884_v38  ;;  %1795 = vst.msk [vmem:[#allocation4 + $0x170] sm:$0xff] %vm1458_vm10, %v1763_v2  ;;  %v2200_v18 = vpop.f32.mrf.mxu2 }
 0x1db   : > { %545 = vst.msk [vmem:[#allocation3] sm:$0xff] %vm544_vm7, %v7984_v0 }
 0x1dc   : > { %548 = vst.msk [vmem:[#allocation3 + $0xa0] sm:$0xff] %vm544_vm7, %v7984_v0 }
 0x1dd   : > { %551 = vst.msk [vmem:[#allocation3 + $0x90] sm:$0xff] %vm544_vm7, %v7984_v0 }
 0x1de   : > { %553 = vst.msk [vmem:[#allocation3 + $0x130] sm:$0xff] %vm544_vm7, %v7984_v0 }
 0x1df   : > { %v1761_v47 = vpop.permute.xlu1 %1760  ;;  %v2136_v44 = vpop.f32.mrf.mxu1 }
 0x1e0   : > { %1794 = vst.msk [vmem:[#allocation4 + $0x158] sm:$0xff] %vm1458_vm10, %v1761_v47  ;;  %v2137_v13 = vadd.f32 %v2136_v44, %v2088_v1  ;;  %vm2359_vm10 = vcmask 1043459  }
 0x1e1   : > { %v1874_v16 = vld [vmem:[#allocation4 + $0x170] sm:$0xff] }
 0x1e7   : > { %v1871_v59 = vld [vmem:[#allocation4 + $0x158] sm:$0xff]  ;;  %v2105_v50 = vpop.f32.mrf.mxu0 }
 0x1e8   : > { %v1898_v57 = vpack.c.bf16 %v1874_v16, %v1871_v59  ;;  %v2106_v9 = vadd.f32 %v6348_v11, %v2105_v50 }
 0x1ea   : > { %2163 = vmatmul.bf16.gmra.mxu1 %v1898_v57 }
 0x1ef   : > { %v2107_v32 = vpop.f32.mrf.mxu0 }
 0x1f3   : > { %v2203_v49 = vpop.f32.mrf.mxu2 }
 0x1f7   : > { %v2139_v19 = vpop.f32.mrf.mxu1 }
 0x1f8   : > { %v6385_v20 = vadd.f32 %v2139_v19, %v2091_v36 }
 0x1fb   : > { %v6404_v29 = vpop.f32.mrf.mxu2 }
 0x1ff   : > { %v2141_v4 = vpop.f32.mrf.mxu1 }
 0x200   : > { %v6434_v57 = vadd.f32 %v2141_v4, %v2093_v52  ;;  %v2248_v52 = vld [vmem:[%s7974_s9 + $0x20] sm:$0xff] }
 0x207   : > { %v2110_v54 = vpop.f32.mrf.mxu0 }
 0x208   : > { %v2111_v39 = vadd.f32 %v6348_v11, %v2110_v54 }
 0x20f   : > { %v2112_v15 = vpop.f32.mrf.mxu0 }
 0x210   : > { %v6441_v36 = vadd.f32 %v6348_v11, %v2112_v15  ;;  %v2251_v15 = vld [vmem:[%s7974_s9 + $0x38] sm:$0xff] }
 0x217   : > { %v2144_v24 = vpop.f32.mrf.mxu1 }
 0x218   : > { %v2145_v61 = vadd.f32 %v2144_v24, %v2096_v3  ;;  %v6462_v3 = vpop.f32.mrf.mxu2 }
 0x21a   : > { %v2194_v17 = vadd.f32 %v2193_v58, %v2145_v61 }
 0x21c   : > { %v6408_v5 = vadd.f32 %v6399_v51, %v2194_v17 }
 0x21e   : > { %v6445_v19 = vsel %vm544_vm7, %v6408_v5, 0.0 }
 0x21f   : > { %v2146_v43 = vpop.f32.mrf.mxu1 }
 0x220   : > { %v2147_v21 = vadd.f32 %v2146_v43, %v2098_v12 }
 0x222   : > { %v2196_v33 = vadd.f32 %v2195_v41, %v2147_v21 }
 0x224   : > { %v6414_v38 = vadd.f32 %v6399_v51, %v2196_v33 }
 0x226   : > { %v2301_v16 = vmul.f32 %v6414_v38, %v6414_v38 }
 0x227   : > { %v2115_v14 = vpop.f32.mrf.mxu0 }
 0x228   : > { %v6465_v24 = vsel %vm544_vm7, %v2301_v16, 0.0  ;;  %v6468_v58 = vadd.f32 %v6348_v11, %v2115_v14  ;;  %v2247_v16 = vld [vmem:[%s7974_s9 + $0x18] sm:$0xff] }
 0x22f   : > { %v2117_v62 = vpop.f32.mrf.mxu0 }
 0x230   : > { %v6479_v41 = vadd.f32 %v6348_v11, %v2117_v62 }
 0x237   : > { %v2149_v60 = vpop.f32.mrf.mxu1  ;;  %v2178_v46 = vpop.f32.mrf.mxu0 }
 0x238   : > { %v2150_v6 = vadd.f32 %v2149_v60, %v2101_v25  ;;  %v2179_v26 = vadd.f32 %v2178_v46, %v6355_v45  ;;  %v2300_v45 = vmul.f32 %v6408_v5, %v6408_v5 }
 0x23a   : > { %v2199_v2 = vadd.f32 %v2198_v53, %v2150_v6  ;;  %v6426_v56 = vadd.f32 %v6399_v51, %v2179_v26  ;;  %v6451_v50 = vsel %vm544_vm7, %v2300_v45, 0.0  ;;  %v6532_v45 = vand.u32 4294901760, %v2248_v52 }
 0x23c   : > { %v6437_v48 = vadd.f32 %v6417_v40, %v2199_v2  ;;  %v2294_v4 = vmul.f32 %v6426_v56, %v6426_v56  ;;  %v2252_v14 = vsel %vm544_vm7, %v6426_v56, 0.0 }
 0x23e   : > { %v2302_v53 = vmul.f32 %v6437_v48, %v6437_v48  ;;  %v2273_v62 = vsel %vm544_vm7, %v6437_v48, 0.0 }
 0x23f   : > { %v2151_v30 = vpop.f32.mrf.mxu1  ;;  %v2180_v55 = vpop.f32.mrf.mxu0 }
 0x240   : > { %v2152_v27 = vadd.f32 %v2151_v30, %v2103_v22  ;;  %v2181_v31 = vadd.f32 %v2180_v55, %v2132_v10  ;;  %v2249_v22 = vld [vmem:[%s7974_s9 + $0x28] sm:$0xff]  ;;  %v6512_v6 = vsel %vm544_vm7, %v2302_v53, 0.0 }
 0x242   : > { %v2201_v34 = vadd.f32 %v2200_v18, %v2152_v27  ;;  %v6431_v59 = vadd.f32 %v6399_v51, %v2181_v31  ;;  %v6483_v18 = vand.u32 4294901760, %v2251_v15  ;;  %v6518_v27 = vand.u32 4294901760, %v2249_v22 }
 0x244   : > { %v6460_v54 = vadd.f32 %v6417_v40, %v2201_v34  ;;  %v2295_v61 = vmul.f32 %v6431_v59, %v6431_v59  ;;  %v2253_v60 = vsel %vm544_vm7, %v6431_v59, 0.0  ;;  %2376 = vmatpush.msra.mxu3 %v6483_v18 }
 0x245   : > { %v2254_v10 = vadd.f32 %v2253_v60, %v2252_v14  ;;  %v2246_v14 = vld [vmem:[%s7974_s9 + $0x10] sm:$0xff]  ;;  %v6558_v60 = vsub.f32 %v2251_v15, %v6483_v18  ;;  %v2245_v15 = vld [vmem:[%s7974_s9 + $0x8] sm:$0xff] }
 0x246   : > { %v2303_v55 = vmul.f32 %v6460_v54, %v6460_v54 }
 0x247   : > { %v2154_v42 = vpop.f32.mrf.mxu1  ;;  %v2183_v8 = vpop.f32.mrf.mxu0 }
 0x248   : > { %v2184_v23 = vadd.f32 %v2183_v8, %v6378_v63  ;;  %v2108_v63 = vadd.f32 %v6348_v11, %v2107_v32  ;;  %v2155_v44 = vadd.f32 %v2154_v42, %v2106_v9  ;;  %v6455_v32 = vsel %vm544_vm7, %v6414_v38, 0.0  ;;  %v2250_v11 = vld [vmem:[%s7974_s9 + $0x30] sm:$0xff] }
 0x249   : > { %v6500_v25 = vand.u32 4294901760, %v2250_v11  ;;  %v2274_v42 = vsel %vm544_vm7, %v6460_v54, 0.0  ;;  %v2311_v8 = vsel %vm544_vm7, %v2295_v61, 0.0  ;;  %v6545_v61 = vand.u32 4294901760, %v2247_v16 }
 0x24a   : > { %v6448_v7 = vadd.f32 %v6399_v51, %v2184_v23  ;;  %v2204_v43 = vadd.f32 %v2203_v49, %v2155_v44  ;;  %v2310_v49 = vsel %vm544_vm7, %v2294_v4, 0.0  ;;  %v2332_v23 = vsel %vm544_vm7, %v2303_v55, 0.0  ;;  %v2210_v4 = vpop.f32.mrf.mxu2 }
 0x24b   : > { %2378 = vmatpush.msra.mxu3 %v6500_v25  ;;  %v2312_v9 = vadd.f32 %v2311_v8, %v2310_v49 }
 0x24c   : > { %v2296_v46 = vmul.f32 %v6448_v7, %v6448_v7  ;;  %v6515_v26 = vadd.f32 %v6417_v40, %v2204_v43  ;;  %v2255_v1 = vsel %vm544_vm7, %v6448_v7, 0.0 }
 0x24d   : > { %2380 = vmatpush.msra.mxu3 %v6518_v27 }
 0x24f   : > { %v2156_v35 = vpop.f32.mrf.mxu1  ;;  %v2185_v47 = vpop.f32.mrf.mxu0  ;;  %2382 = vmatpush.msra.mxu3 %v6532_v45 }
 0x250   : > { %v2186_v37 = vadd.f32 %v2185_v47, %v2137_v13  ;;  %v2157_v30 = vadd.f32 %v2156_v35, %v2108_v63  ;;  %v2275_v13 = vadd.f32 %v2274_v42, %v2273_v62  ;;  %v2256_v63 = vadd.f32 %v2255_v1, %v2254_v10  ;;  %v2244_v1 = vld [vmem:[%s7974_s9] sm:$0xff] }
 0x251   : > { %2384 = vmatpush.msra.mxu3 %v6545_v61  ;;  %v6572_v10 = vand.u32 4294901760, %v2245_v15 }
 0x252   : > { %v6473_v17 = vadd.f32 %v6399_v51, %v2186_v37  ;;  %v2206_v31 = vadd.f32 %v6404_v29, %v2157_v30  ;;  %v2276_v37 = vsel %vm544_vm7, %v6515_v26, 0.0 }
 0x254   : > { %v2297_v28 = vmul.f32 %v6473_v17, %v6473_v17  ;;  %v2257_v34 = vsel %vm544_vm7, %v6473_v17, 0.0  ;;  %v6550_v53 = vadd.f32 %v6417_v40, %v2206_v31  ;;  %v6586_v31 = vand.u32 4294901760, %v2244_v1 }
 0x256   : > { %v2315_v29 = vsel %vm544_vm7, %v2297_v28, 0.0  ;;  %v2410_v28 = vand.u32 4294901760, %v6558_v60 }
 0x257   : > { %v2159_v12 = vpop.f32.mrf.mxu1  ;;  %v2188_v21 = vpop.f32.mrf.mxu0 }
 0x258   : > { %v2189_v33 = vadd.f32 %v2188_v21, %v6385_v20  ;;  %v2313_v20 = vsel %vm544_vm7, %v2296_v46, 0.0  ;;  %v2160_v35 = vadd.f32 %v2159_v12, %v2111_v39  ;;  %v2304_v39 = vmul.f32 %v6515_v26, %v6515_v26 }
 0x259   : > { %v2314_v44 = vadd.f32 %v2313_v20, %v2312_v9  ;;  %v2258_v46 = vadd.f32 %v2257_v34, %v2256_v63  ;;  %v6562_v12 = vand.u32 4294901760, %v2246_v14  ;;  %v2411_v9 = vsub.f32 %v6558_v60, %v2410_v28 }
 0x25a   : > { %v6525_v2 = vadd.f32 %v6399_v51, %v2189_v33  ;;  %v2209_v21 = vadd.f32 %v6462_v3, %v2160_v35  ;;  %v6578_v3 = vsub.f32 %v2250_v11, %v6500_v25 }
 0x25b   : > { %v2316_v30 = vadd.f32 %v2315_v29, %v2314_v44  ;;  %2386 = vmatpush.msra.mxu3 %v6562_v12  ;;  %v6595_v29 = vsub.f32 %v2248_v52, %v6532_v45  ;;  %v2412_v63 = vand.u32 4294901760, %v2411_v9 }
 0x25c   : > { %v2298_v47 = vmul.f32 %v6525_v2, %v6525_v2  ;;  %v2259_v43 = vsel %vm544_vm7, %v6525_v2, 0.0  ;;  %v2416_v34 = vand.u32 4294901760, %v6578_v3 }
 0x25d   : > { %v2260_v33 = vadd.f32 %v2259_v43, %v2258_v46  ;;  %2388 = vmatpush.msra.mxu3 %v6572_v10  ;;  %v2277_v46 = vadd.f32 %v2276_v37, %v2275_v13 }
 0x25e   : > { %v2317_v62 = vsel %vm544_vm7, %v2298_v47, 0.0  ;;  %v2417_v43 = vsub.f32 %v6578_v3, %v2416_v34 }
 0x25f   : > { %v2161_v49 = vpop.f32.mrf.mxu1  ;;  %v2190_v55 = vpop.f32.mrf.mxu0  ;;  %2390 = vmatpush.msra.mxu3 %v6586_v31 }
 0x260   : > { %v2162_v42 = vadd.f32 %v2161_v49, %v6441_v36  ;;  %v2191_v8 = vadd.f32 %v2190_v55, %v6434_v57  ;;  %v6581_v57 = vsub.f32 %v2249_v22, %v6518_v27  ;;  %v2318_v36 = vadd.f32 %v2317_v62, %v2316_v30 }
 0x261   : > { %v6598_v22 = vsub.f32 %v2247_v16, %v6545_v61  ;;  %v7990_v16 = vand.u32 4294901760, %v6595_v29  ;;  %2413 = vmatpush.msrb.mxu3 %v2412_v63  ;;  %v2334_v49 = vsel %vm544_vm7, %v2304_v39, 0.0  ;;  %v6617_v55 = vadd.f32 %v6417_v40, %v2209_v21 }
 0x262   : > { %v6584_v20 = vadd.f32 %v6399_v51, %v2191_v8  ;;  %v7991_v11 = vand.u32 4294901760, %v6581_v57  ;;  %v2211_v51 = vadd.f32 %v2210_v4, %v2162_v42  ;;  %v2333_v4 = vadd.f32 %v2332_v23, %v6512_v6  ;;  %v2213_v8 = vpop.f32.mrf.mxu2 }
 0x263   : > { %v7989_v62 = vand.u32 4294901760, %v6598_v22  ;;  %v2418_v9 = vand.u32 4294901760, %v2417_v43  ;;  %v2429_v23 = vsub.f32 %v6595_v29, %v7990_v16  ;;  %v6637_v43 = vsub.f32 %v2245_v15, %v6572_v10 }
 0x264   : > { %v2261_v35 = vsel %vm544_vm7, %v6584_v20, 0.0  ;;  %v2299_v47 = vmul.f32 %v6584_v20, %v6584_v20  ;;  %v2423_v52 = vsub.f32 %v6581_v57, %v7991_v11  ;;  %v6626_v37 = vadd.f32 %v6417_v40, %v2211_v51 }
 0x265   : > { %v2262_v44 = vadd.f32 %v2261_v35, %v2260_v33  ;;  %v2305_v35 = vmul.f32 %v6550_v53, %v6550_v53  ;;  %2419 = vmatpush.msrb.mxu3 %v2418_v9  ;;  %v2430_v63 = vand.u32 4294901760, %v2429_v23  ;;  %v2306_v51 = vmul.f32 %v6617_v55, %v6617_v55 }
 0x266   : > { %v2319_v30 = vsel %vm544_vm7, %v2299_v47, 0.0  ;;  %v2424_v13 = vand.u32 4294901760, %v2423_v52  ;;  %v2335_v52 = vadd.f32 %v2334_v49, %v2333_v4  ;;  %v7986_v15 = vand.u32 4294901760, %v6637_v43 }
 0x267   : > { %v2320_v42 = vadd.f32 %v2319_v30, %v2318_v36  ;;  %v2164_v33 = vpop.f32.mrf.mxu1  ;;  %v2264_v39 = vadd.f32 %v6445_v19, %v2262_v44  ;;  %v2435_v36 = vsub.f32 %v6598_v22, %v7989_v62  ;;  %v2278_v44 = vsel %vm544_vm7, %v6550_v53, 0.0 }
 0x268   : > { %v2165_v6 = vadd.f32 %v2164_v33, %v6468_v58  ;;  %v6634_v58 = vsub.f32 %v2246_v14, %v6562_v12  ;;  %2425 = vmatpush.msrb.mxu3 %v2424_v13  ;;  %v2336_v4 = vsel %vm544_vm7, %v2305_v35, 0.0  ;;  %v2307_v33 = vmul.f32 %v6626_v37, %v6626_v37 }
 0x269   : > { %v2322_v21 = vadd.f32 %v6451_v50, %v2320_v42  ;;  %v2436_v19 = vand.u32 4294901760, %v2435_v36  ;;  %v6642_v50 = vsub.f32 %v2244_v1, %v6586_v31  ;;  %v2266_v49 = vadd.f32 %v6455_v32, %v2264_v39 }
 0x26a   : > { %v2214_v47 = vadd.f32 %v2213_v8, %v2165_v6  ;;  %v7987_v14 = vand.u32 4294901760, %v6634_v58  ;;  %2431 = vmatpush.msrb.mxu3 %v2430_v63  ;;  %v2280_v8 = vsel %vm544_vm7, %v6617_v55, 0.0  ;;  %v2447_v35 = vsub.f32 %v6637_v43, %v7986_v15  ;;  %v2215_v0 = vpop.f32.mrf.mxu2 }
 0x26b   : > { %v2324_v42 = vadd.f32 %v6465_v24, %v2322_v21  ;;  %v7988_v1 = vand.u32 4294901760, %v6642_v50  ;;  %v2279_v32 = vadd.f32 %v2278_v44, %v2277_v46  ;;  %v2338_v24 = vsel %vm544_vm7, %v2306_v51, 0.0 }
 0x26c   : > { %v6647_v30 = vadd.f32 %v6417_v40, %v2214_v47  ;;  %v2441_v9 = vsub.f32 %v6634_v58, %v7987_v14  ;;  %v2282_v6 = vsel %vm544_vm7, %v6626_v37, 0.0  ;;  %2437 = vmatpush.msrb.mxu3 %v2436_v19  ;;  %v2448_v47 = vand.u32 4294901760, %v2447_v35 }
 0x26d   : > { %v2453_v23 = vsub.f32 %v6642_v50, %v7988_v1  ;;  %v2337_v63 = vadd.f32 %v2336_v4, %v2335_v52  ;;  %v2281_v46 = vadd.f32 %v2280_v8, %v2279_v32  ;;  %v2267_v44 = vrot.slane %v2266_v49, 4 }
 0x26e   : > { %v2308_v39 = vmul.f32 %v6647_v30, %v6647_v30  ;;  %v2442_v36 = vand.u32 4294901760, %v2441_v9  ;;  %v2325_v51 = vrot.slane %v2324_v42, 4  ;;  %v2340_v15 = vsel %vm544_vm7, %v2307_v33, 0.0 }
 0x26f   : > { %v2166_v13 = vpop.f32.mrf.mxu1  ;;  %v2284_v19 = vsel %vm544_vm7, %v6647_v30, 0.0  ;;  %v2454_v1 = vand.u32 4294901760, %v2453_v23  ;;  %v2339_v62 = vadd.f32 %v2338_v24, %v2337_v63  ;;  %v2283_v16 = vadd.f32 %v2282_v6, %v2281_v46 }
 0x270   : > { %v2167_v21 = vadd.f32 %v2166_v13, %v6479_v41  ;;  %2443 = vmatpush.msrb.mxu3 %v2442_v36  ;;  %v2342_v11 = vsel %vm544_vm7, %v2308_v39, 0.0  ;;  %v2268_v4 = vadd.f32 %v2267_v44, %v2266_v49  ;;  %v2326_v8 = vadd.f32 %v2325_v51, %v2324_v42 }
 0x271   : > { %v2341_v52 = vadd.f32 %v2340_v15, %v2339_v62  ;;  %v2285_v9 = vadd.f32 %v2284_v19, %v2283_v16 }
 0x272   : > { %v2216_v14 = vadd.f32 %v2215_v0, %v2167_v21  ;;  %2449 = vmatpush.msrb.mxu3 %v2448_v47  ;;  %v2269_v6 = vrot.slane %v2268_v4, 2  ;;  %v2327_v13 = vrot.slane %v2326_v8, 2 }
 0x273   : > { %v2343_v35 = vadd.f32 %v2342_v11, %v2341_v52 }
 0x274   : > { %v6679_v41 = vadd.f32 %v6417_v40, %v2216_v14  ;;  %2455 = vmatpush.msrb.mxu3 %v2454_v1  ;;  %v2270_v15 = vadd.f32 %v2269_v6, %v2268_v4  ;;  %v2328_v42 = vadd.f32 %v2327_v13, %v2326_v8  ;;  %v8040_v6 = vand.u32 4294901760, %v6581_v57 }
 0x275   : > { %v8041_v13 = vand.u32 4294901760, %v6595_v29 }
 0x276   : > { %v2286_v33 = vsel %vm544_vm7, %v6679_v41, 0.0  ;;  %v2309_v0 = vmul.f32 %v6679_v41, %v6679_v41  ;;  %v2271_v63 = vrot.slane %v2270_v15, 1  ;;  %v2329_v1 = vrot.slane %v2328_v42, 1 }
 0x277   : > { %v2287_v32 = vadd.f32 %v2286_v33, %v2285_v9 }
 0x278   : > { %v2344_v24 = vsel %vm544_vm7, %v2309_v0, 0.0  ;;  %v2272_v44 = vadd.f32 %v2271_v63, %v2270_v15  ;;  %v2330_v51 = vadd.f32 %v2329_v1, %v2328_v42 }
 0x279   : > { %v2288_v40 = vrot.slane %v2287_v32, 4  ;;  %v2345_v14 = vadd.f32 %v2344_v24, %v2343_v35 }
 0x27b   : > { %v2289_v23 = vadd.f32 %v2288_v40, %v2287_v32  ;;  %v2346_v62 = vrot.slane %v2345_v14, 4  ;;  %v8042_v40 = vand.u32 4294901760, %v6598_v22 }
 0x27d   : > { %v2290_v49 = vrot.slane %v2289_v23, 2  ;;  %v2347_v16 = vadd.f32 %v2346_v62, %v2345_v14  ;;  %v8043_v14 = vand.u32 4294901760, %v6634_v58 }
 0x27f   : > { %v2291_v39 = vadd.f32 %v2290_v49, %v2289_v23  ;;  %v2348_v21 = vrot.slane %v2347_v16, 2  ;;  %v8044_v23 = vand.u32 4294901760, %v6637_v43 }
 0x281   : > { %v2292_v36 = vrot.slane %v2291_v39, 1  ;;  %v2349_v47 = vadd.f32 %v2348_v21, %v2347_v16 }
 0x283   : > { %v2293_v11 = vadd.f32 %v2292_v36, %v2291_v39  ;;  %v2350_v46 = vrot.slane %v2349_v47, 1 }
 0x285   : > { %v2351_v19 = vadd.f32 %v2350_v46, %v2349_v47  ;;  %v2355_v52 = vsel %vm2354_vm8, %v2293_v11, %v2272_v44 }
 0x287   : > { %v2360_v9 = vsel %vm2359_vm10, %v2351_v19, %v2330_v51  ;;  %v6783_v51 = vld [vmem:[%s7972_s7] ss:$0 sm:$0xff] }
 0x288   : > { %v2363_v4 = vsel %vm2362_vm4, %v2355_v52, %v2360_v9 }
 0x289   : > { %v2365_v33 = vsel %vm544_vm7, %v2363_v4, 0 }
 0x28a   : > { %v2391_v8 = vand.u32 4294901760, %v2365_v33 }
 0x28c   : > { %v2392_v0 = vsub.f32 %v2365_v33, %v2391_v8 }
 0x28e   : > { %v2393_v35 = vand.u32 4294901760, %v2392_v0 }
 0x290   : > { %v2394_v32 = vsub.f32 %v2392_v0, %v2393_v35 }
 0x292   : > { %v2395_v24 = vand.u32 4294901760, %v2394_v32 }
 0x294   : > { %2396 = vmatmul.f32.vlgmr.msra.gmra.mxu3 %v2395_v24 }
 0x295   : > { %2471 = vmatpush.msra.mxu3 %v6558_v60  ;;  %v8045_v60 = vand.u32 4294901760, %v6642_v50 }
 0x297   : > { %2474 = vmatpush.msra.mxu3 %v6578_v3 }
 0x299   : > { %2477 = vmatpush.msra.mxu3 %v6581_v57 }
 0x29b   : > { %2480 = vmatpush.msra.mxu3 %v6595_v29 }
 0x29c   : > { %2457 = vmatmul.f32.vlgmr.msrb.gmra.mxu3 %v2391_v8 }
 0x29d   : > { %2483 = vmatpush.msra.mxu3 %v6598_v22 }
 0x29f   : > { %2486 = vmatpush.msra.mxu3 %v6634_v58 }
 0x2a1   : > { %2489 = vmatpush.msra.mxu3 %v6637_v43 }
 0x2a3   : > { %2492 = vmatpush.msra.mxu3 %v6642_v50 }
 0x2a4   : > { %2495 = vmatmul.f32.vlgmr.msra.gmra.mxu3 %v2392_v0 }
 0x2a5   : > { %2508 = vmatpush.msrb.mxu3 %v6483_v18 }
 0x2a7   : > { %2510 = vmatpush.msrb.mxu3 %v6500_v25 }
 0x2a9   : > { %2512 = vmatpush.msrb.mxu3 %v6518_v27 }
 0x2ab   : > { %2514 = vmatpush.msrb.mxu3 %v6532_v45 }
 0x2ad   : > { %2516 = vmatpush.msrb.mxu3 %v6545_v61 }
 0x2af   : > { %2518 = vmatpush.msrb.mxu3 %v6562_v12 }
 0x2b1   : > { %2520 = vmatpush.msrb.mxu3 %v6572_v10 }
 0x2b3   : > { %2522 = vmatpush.msrb.mxu3 %v6586_v31 }
 0x2b4   : > { %2526 = vmatmul.f32.vlgmr.msrb.gmra.mxu3 %v2393_v35 }
 0x2b5   : > { %2541 = vmatpush.msra.mxu3 %v2410_v28 }
 0x2b7   : > { %2545 = vmatpush.msra.mxu3 %v2416_v34 }
 0x2b9   : > { %2549 = vmatpush.msra.mxu3 %v8040_v6 }
 0x2bb   : > { %2553 = vmatpush.msra.mxu3 %v8041_v13 }
 0x2bd   : > { %2557 = vmatpush.msra.mxu3 %v8042_v40 }
 0x2bf   : > { %2561 = vmatpush.msra.mxu3 %v8043_v14 }
 0x2c1   : > { %2565 = vmatpush.msra.mxu3 %v8044_v23 }
 0x2c3   : > { %2569 = vmatpush.msra.mxu3 %v8045_v60 }
 0x2c4   : > { %2571 = vmatmul.f32.vlgmr.msra.gmra.mxu3 %v2391_v8 }
 0x2c5   : > { %2584 = vmatpush.msrb.mxu3 %v6483_v18 }
 0x2c7   : > { %2586 = vmatpush.msrb.mxu3 %v6500_v25 }
 0x2c9   : > { %2588 = vmatpush.msrb.mxu3 %v6518_v27 }
 0x2cb   : > { %2590 = vmatpush.msrb.mxu3 %v6532_v45 }
 0x2cd   : > { %2592 = vmatpush.msrb.mxu3 %v6545_v61 }
 0x2cf   : > { %2594 = vmatpush.msrb.mxu3 %v6562_v12 }
 0x2d1   : > { %2596 = vmatpush.msrb.mxu3 %v6572_v10  ;;  %v8046_v10 = vmov 0.0  }
 0x2d2   : > { %559 = vst.msk [vmem:[#allocation3 + $0x30] sm:$0x1] %vm7993_vm5, %v8046_v10 }
 0x2d3   : > { %2598 = vmatpush.msrb.mxu3 %v6586_v31  ;;  %556 = vst.msk [vmem:[#allocation3] sm:$0x1] %vm7993_vm5, %v8046_v10 }
 0x2d4   : > { %2600 = vmatmul.f32.vlgmr.msrb.gmra.mxu3 %v2391_v8  ;;  %557 = vst.msk [vmem:[#allocation3 + $0x10] sm:$0x1] %vm7993_vm5, %v8046_v10 }
 0x2d5   : > { %558 = vst.msk [vmem:[#allocation3 + $0x20] sm:$0x1] %vm7993_vm5, %v8046_v10 }
 0x2d6   : > { %560 = vst.msk [vmem:[#allocation3 + $0x40] sm:$0x1] %vm7993_vm5, %v8046_v10 }
 0x2d7   : > { %561 = vst.msk [vmem:[#allocation3 + $0x50] sm:$0x1] %vm7993_vm5, %v8046_v10 }
 0x2d8   : > { %562 = vst.msk [vmem:[#allocation3 + $0x60] sm:$0x1] %vm7993_vm5, %v8046_v10 }
 0x2d9   : > { %563 = vst.msk [vmem:[#allocation3 + $0x70] sm:$0x1] %vm7993_vm5, %v8046_v10 }
 0x2da   : > { %564 = vst.msk [vmem:[#allocation3 + $0x80] sm:$0x1] %vm7993_vm5, %v8046_v10 }
 0x2db   : > { %565 = vst.msk [vmem:[#allocation3 + $0x90] sm:$0x1] %vm7993_vm5, %v8046_v10 }
 0x2dc   : > { %566 = vst.msk [vmem:[#allocation3 + $0xa0] sm:$0x1] %vm7993_vm5, %v8046_v10 }
 0x2dd   : > { %567 = vst.msk [vmem:[#allocation3 + $0xb0] sm:$0x1] %vm7993_vm5, %v8046_v10 }
 0x2de   : > { %568 = vst.msk [vmem:[#allocation3 + $0xc0] sm:$0x1] %vm7993_vm5, %v8046_v10 }
 0x2df   : > { %569 = vst.msk [vmem:[#allocation3 + $0xd0] sm:$0x1] %vm7993_vm5, %v8046_v10 }
 0x2e0   : > { %570 = vst.msk [vmem:[#allocation3 + $0xe0] sm:$0x1] %vm7993_vm5, %v8046_v10 }
 0x2e1   : > { %571 = vst.msk [vmem:[#allocation3 + $0xf0] sm:$0x1] %vm7993_vm5, %v8046_v10 }
 0x2e2   : > { %572 = vst.msk [vmem:[#allocation3 + $0x100] sm:$0x1] %vm7993_vm5, %v8046_v10 }
 0x2e3   : > { %573 = vst.msk [vmem:[#allocation3 + $0x110] sm:$0x1] %vm7993_vm5, %v8046_v10 }
 0x2e4   : > { %574 = vst.msk [vmem:[#allocation3 + $0x120] sm:$0x1] %vm7993_vm5, %v8046_v10 }
 0x2e5   : > { %575 = vst.msk [vmem:[#allocation3 + $0x130] sm:$0x1] %vm7993_vm5, %v8046_v10 }
 0x2e6   : > { %577 = vst.msk [vmem:[#allocation3 + $0x19] sm:$0x1] %vm7993_vm5, %v8046_v10 }
 0x2e7   : > { %578 = vst.msk [vmem:[#allocation3 + $0x29] sm:$0x1] %vm7993_vm5, %v8046_v10 }
 0x2e8   : > { %579 = vst.msk [vmem:[#allocation3 + $0x39] sm:$0x1] %vm7993_vm5, %v8046_v10 }
 0x2e9   : > { %580 = vst.msk [vmem:[#allocation3 + $0x49] sm:$0x1] %vm7993_vm5, %v8046_v10 }
 0x2ea   : > { %581 = vst.msk [vmem:[#allocation3 + $0x59] sm:$0x1] %vm7993_vm5, %v8046_v10 }
 0x2eb   : > { %582 = vst.msk [vmem:[#allocation3 + $0x69] sm:$0x1] %vm7993_vm5, %v8046_v10 }
 0x2ec   : > { %583 = vst.msk [vmem:[#allocation3 + $0x79] sm:$0x1] %vm7993_vm5, %v8046_v10 }
 0x2ed   : > { %584 = vst.msk [vmem:[#allocation3 + $0x89] sm:$0x1] %vm7993_vm5, %v8046_v10 }
 0x2ee   : > { %587 = vst.msk [vmem:[#allocation3 + $0xb9] sm:$0x1] %vm7993_vm5, %v8046_v10 }
 0x2ef   : > { %588 = vst.msk [vmem:[#allocation3 + $0xc9] sm:$0x1] %vm7993_vm5, %v8046_v10 }
 0x2f0   : > { %589 = vst.msk [vmem:[#allocation3 + $0xd9] sm:$0x1] %vm7993_vm5, %v8046_v10 }
 0x2f1   : > { %590 = vst.msk [vmem:[#allocation3 + $0xe9] sm:$0x1] %vm7993_vm5, %v8046_v10 }
 0x2f2   : > { %591 = vst.msk [vmem:[#allocation3 + $0xf9] sm:$0x1] %vm7993_vm5, %v8046_v10 }
 0x2f3   : > { %592 = vst.msk [vmem:[#allocation3 + $0x109] sm:$0x1] %vm7993_vm5, %v8046_v10 }
 0x2f4   : > { %593 = vst.msk [vmem:[#allocation3 + $0x119] sm:$0x1] %vm7993_vm5, %v8046_v10 }
 0x2f5   : > { %594 = vst.msk [vmem:[#allocation3 + $0x129] sm:$0x1] %vm7993_vm5, %v8046_v10 }
 0x317   : > { %v2397_v28 = vpop.f32.mrf.mxu3 }
 0x31f   : > { %v2458_v3 = vpop.f32.mrf.mxu3 }
 0x320   : > { %v2459_v29 = vadd.f32 %v2458_v3, %v2397_v28 }
 0x327   : > { %v2496_v57 = vpop.f32.mrf.mxu3 }
 0x328   : > { %v2497_v25 = vadd.f32 %v2496_v57, %v2459_v29 }
 0x337   : > { %v2527_v34 = vpop.f32.mrf.mxu3 }
 0x338   : > { %v2528_v22 = vadd.f32 %v2527_v34, %v2497_v25 }
 0x347   : > { %v2572_v18 = vpop.f32.mrf.mxu3 }
 0x348   : > { %v2573_v27 = vadd.f32 %v2572_v18, %v2528_v22 }
 0x357   : > { %v2601_v58 = vpop.f32.mrf.mxu3 }
 0x358   : > { %v2602_v45 = vadd.f32 %v2601_v58, %v2573_v27 }
 0x35a   : > { %v2604_v43 = vmul.f32 0.0078125, %v2602_v45 }
 0x35c   : > { %v2605_v61 = vmul.f32 %v2604_v43, %v2604_v43  ;;  %v2622_v36 = vrot.slane %v2604_v43, 1  ;;  %v2623_v47 = vperm.slane %v2604_v43, 0 }
 0x35e   : > { %v2607_v50 = vrot.slane %v2605_v61, 6  ;;  %v6771_v63 = vperm.slane %v2622_v36, 0  ;;  %v2627_v1 = vsub.f32 %v6426_v56, %v2623_v47  ;;  %v2628_v11 = vsub.f32 %v6431_v59, %v2623_v47 }
 0x35f   : > { %v2629_v46 = vsub.f32 %v6448_v7, %v2623_v47  ;;  %v2630_v19 = vsub.f32 %v6473_v17, %v2623_v47  ;;  %v2631_v52 = vsub.f32 %v6525_v2, %v2623_v47  ;;  %v2632_v9 = vsub.f32 %v6584_v20, %v2623_v47  ;;  %v6803_v2 = vld [vmem:[%s7973_s8] ss:$0 sm:$0xff] }
 0x360   : > { %v2609_v12 = vsub.f32 %v2604_v43, %v2607_v50  ;;  %v2633_v59 = vsub.f32 %v6408_v5, %v2623_v47  ;;  %v2634_v7 = vsub.f32 %v6414_v38, %v2623_v47  ;;  %v2635_v33 = vsub.f32 %v6437_v48, %v6771_v63 }
 0x361   : > { %v2637_v8 = vsub.f32 %v6515_v26, %v6771_v63  ;;  %v2636_v45 = vsub.f32 %v6460_v54, %v6771_v63 }
 0x362   : > { %v2610_v62 = vadd.f32 1e-06, %v2609_v12 }
 0x364   : > { %4978 = vrsqrt.f32 %v2610_v62  ;;  %vm2617_vm12 = vweird.f32 %v2610_v62 }
 0x36a   : > { %v4979_v31 = vpop.eup %4978 }
 0x36b   : > { %v2612_v15 = vmul.f32 %v4979_v31, %v2610_v62  ;;  %vm2618_vm6 = vweird.f32 %v4979_v31 }
 0x36c   : > { %vm2619_vm9 = vmor %vm2617_vm12, %vm2618_vm6 }
 0x36d   : > { %v2613_v49 = vmul.f32 %v4979_v31, %v2612_v15 }
 0x36f   : > { %v2614_v16 = vmul.f32 0.5, %v2613_v49 }
 0x371   : > { %v2615_v42 = vsub.f32 1.5, %v2614_v16 }
 0x373   : > { %v2616_v39 = vmul.f32 %v4979_v31, %v2615_v42 }
 0x375   : > { %v2620_v21 = vsel %vm2619_vm9, %v4979_v31, %v2616_v39  ;;  %v2638_v31 = vsub.f32 %v6550_v53, %v6771_v63 }
 0x376   : > { %2644 = vst [vmem:[#allocation1] sm:$0xff] %v2620_v21  ;;  %v2640_v21 = vsub.f32 %v6626_v37, %v6771_v63 }
 0x37d   : > { %v2646_v44 = vld [vmem:[#allocation1 + $0x2] ss:$9 sm:$0xff] }
 0x37e   : > { %v2648_v56 = vld [vmem:[#allocation1 + $0x3] ss:$9 sm:$0xff]  ;;  %v2649_v4 = vperm.slane %v2646_v44, 0 }
 0x37f   : > { %v6807_v0 = vperm.slane %v2648_v56, 0 }
 0x380   : > { %v2655_v17 = vmul.f32 %v2649_v4, %v2629_v46  ;;  %v2654_v5 = vmul.f32 %v2649_v4, %v2628_v11  ;;  %v2653_v38 = vmul.f32 %v2649_v4, %v2627_v1  ;;  %v2657_v20 = vmul.f32 %v2649_v4, %v2631_v52 }
 0x381   : > { %v2656_v48 = vmul.f32 %v2649_v4, %v2630_v19  ;;  %v2658_v26 = vmul.f32 %v2649_v4, %v2632_v9  ;;  %v2660_v35 = vmul.f32 %v2649_v4, %v2634_v7  ;;  %v2659_v60 = vmul.f32 %v2649_v4, %v2633_v59 }
 0x382   : > { %v2674_v32 = vmul.f32 %v6783_v51, %v2655_v17  ;;  %v2673_v24 = vmul.f32 %v6783_v51, %v2654_v5  ;;  %v2672_v6 = vmul.f32 %v6783_v51, %v2653_v38  ;;  %v2676_v13 = vmul.f32 %v6783_v51, %v2657_v20 }
 0x383   : > { %v2675_v40 = vmul.f32 %v6783_v51, %v2656_v48  ;;  %v2677_v14 = vmul.f32 %v6783_v51, %v2658_v26  ;;  %v2679_v23 = vmul.f32 %v6783_v51, %v2660_v35  ;;  %v2661_v27 = vmul.f32 %v6807_v0, %v2635_v33 }
 0x384   : > { %v6823_v28 = vadd.f32 %v6803_v2, %v2674_v32  ;;  %v6828_v3 = vadd.f32 %v6803_v2, %v2673_v24  ;;  %v6831_v57 = vadd.f32 %v6803_v2, %v2672_v6  ;;  %v6834_v34 = vadd.f32 %v6803_v2, %v2676_v13 }
 0x385   : > { %v6839_v18 = vadd.f32 %v6803_v2, %v2675_v40  ;;  %v6842_v29 = vadd.f32 %v6803_v2, %v2677_v14  ;;  %v2663_v58 = vmul.f32 %v6807_v0, %v2637_v8  ;;  %v2678_v50 = vmul.f32 %v6783_v51, %v2659_v60 }
 0x386   : > { %v4599_v25 = vmul.f32 -1.442695, %v6823_v28  ;;  %v4598_v22 = vmul.f32 -1.442695, %v6828_v3  ;;  %v4597_v43 = vmul.f32 -1.442695, %v6831_v57  ;;  %v6861_v62 = vadd.f32 %v6803_v2, %v2679_v23 }
 0x387   : > { %v4601_v61 = vmul.f32 -1.442695, %v6834_v34  ;;  %v4600_v12 = vmul.f32 -1.442695, %v6839_v18  ;;  %v2680_v54 = vmul.f32 %v6783_v51, %v2661_v27  ;;  %v4602_v15 = vmul.f32 -1.442695, %v6842_v29 }
 0x388   : > { %4980 = vpow2.f32 %v4599_v25  ;;  %v2682_v49 = vmul.f32 %v6783_v51, %v2663_v58  ;;  %v2662_v16 = vmul.f32 %v6807_v0, %v2636_v45  ;;  %v6870_v42 = vadd.f32 %v6803_v2, %v2678_v50 }
 0x389   : > { %4982 = vpow2.f32 %v4598_v22  ;;  %v2664_v39 = vmul.f32 %v6807_v0, %v2638_v31  ;;  %v4604_v53 = vmul.f32 -1.442695, %v6861_v62  ;;  %v6877_v36 = vadd.f32 %v6803_v2, %v2680_v54 }
 0x38a   : > { %4984 = vpow2.f32 %v4597_v43  ;;  %v6880_v1 = vadd.f32 %v6803_v2, %v2682_v49  ;;  %v2681_v11 = vmul.f32 %v6783_v51, %v2662_v16  ;;  %v2666_v46 = vmul.f32 %v6807_v0, %v2640_v21 }
 0x38b   : > { %4986 = vpow2.f32 %v4601_v61  ;;  %v4603_v37 = vmul.f32 -1.442695, %v6870_v42  ;;  %v2683_v52 = vmul.f32 %v6783_v51, %v2664_v39  ;;  %v4605_v4 = vmul.f32 -1.442695, %v6877_v36 }
 0x38c   : > { %4988 = vpow2.f32 %v4600_v12  ;;  %v2639_v7 = vsub.f32 %v6617_v55, %v6771_v63  ;;  %v2642_v33 = vsub.f32 %v6679_v41, %v6771_v63  ;;  %v6898_v17 = vmul.f32 -1.442695, %v6880_v1 }
 0x38d   : > { %4990 = vpow2.f32 %v4602_v15  ;;  %v6901_v5 = vadd.f32 %v6803_v2, %v2681_v11  ;;  %v2685_v38 = vmul.f32 %v6783_v51, %v2666_v46  ;;  %v6909_v26 = vadd.f32 %v6803_v2, %v2683_v52 }
 0x38e   : > { %v4981_v47 = vpop.eup %4980  ;;  %4992 = vpow2.f32 %v4604_v53  ;;  %v6919_v40 = vmul.f32 %v6807_v0, %v2639_v7 }
 0x38f   : > { %v4983_v44 = vpop.eup %4982  ;;  %v6884_v19 = vadd.f32 1.0, %v4981_v47  ;;  %v6926_v25 = vadd.f32 %v6803_v2, %v2685_v38 }
 0x390   : > { %v4985_v9 = vpop.eup %4984  ;;  %v6888_v56 = vadd.f32 1.0, %v4983_v44 }
 0x391   : > { %v4987_v59 = vpop.eup %4986  ;;  %4994 = vrcp.f32 %v6884_v19  ;;  %v6904_v48 = vadd.f32 1.0, %v4985_v9  ;;  %v2810_v35 = vand.u32 2147483647, %v6884_v19  ;;  %v2812_v32 = vand.u32 2147483648, %v6884_v19 }
 0x392   : > { %v4989_v8 = vpop.eup %4988  ;;  %4996 = vrcp.f32 %v6888_v56  ;;  %v6906_v55 = vadd.f32 1.0, %v4987_v59  ;;  %v2795_v6 = vand.u32 2147483647, %v6888_v56  ;;  %v2797_v13 = vand.u32 2147483648, %v6888_v56 }
 0x393   : > { %v4991_v20 = vpop.eup %4990  ;;  %4998 = vpow2.f32 %v4603_v37  ;;  %v6913_v24 = vadd.f32 1.0, %v4989_v8  ;;  %v2782_v23 = vand.u32 2147483648, %v6904_v48  ;;  %vm2806_vm11 = vweird.f32 %v6884_v19 }
 0x394   : > { %5000 = vpow2.f32 %v4605_v4  ;;  %v4993_v14 = vpop.eup %4992  ;;  %v6923_v60 = vadd.f32 1.0, %v4991_v20  ;;  %vm2791_vm13 = vweird.f32 %v6888_v56  ;;  %v2842_v27 = vand.u32 2147483648, %v6906_v55 }
 0x395   : > { %5002 = vrcp.f32 %v6904_v48  ;;  %vm6933_vm14 = vcmp.eq.f32.partialorder %v2810_v35, 8.507059e+37  ;;  %v2813_v61 = vor.u32 1.1754944e-38, %v2812_v32  ;;  %v2780_v50 = vand.u32 2147483647, %v6904_v48 }
 0x396   : > { %5004 = vrcp.f32 %v6906_v55  ;;  %vm6939_vm15 = vcmp.eq.f32.partialorder %v2795_v6, 8.507059e+37  ;;  %v2798_v15 = vor.u32 1.1754944e-38, %v2797_v13  ;;  %v2840_v49 = vand.u32 2147483647, %v6906_v55 }
 0x397   : > { %v4995_v22 = vpop.eup %4994  ;;  %5006 = vrcp.f32 %v6913_v24  ;;  %v2827_v16 = vand.u32 2147483648, %v6913_v24  ;;  %vm2776_vm1 = vweird.f32 %v6904_v48  ;;  %v2783_v53 = vor.u32 1.1754944e-38, %v2782_v23 }
 0x398   : > { %v4997_v58 = vpop.eup %4996  ;;  %v2802_v45 = vmul.f32 %v4995_v22, %v6884_v19  ;;  %5008 = vrcp.f32 %v6923_v60  ;;  %vm2807_vm2 = vweird.f32 %v4995_v22  ;;  %v2843_v46 = vor.u32 1.1754944e-38, %v2842_v27 }
 0x399   : > { %v4999_v12 = vpop.eup %4998  ;;  %v2787_v54 = vmul.f32 %v4997_v58, %v6888_v56  ;;  %vm2792_vm3 = vweird.f32 %v4997_v58  ;;  %vm6949_vm10 = vcmp.eq.f32.partialorder %v2780_v50, 8.507059e+37  ;;  %v2825_v4 = vand.u32 2147483647, %v6913_v24  ;;  %vm2808_vm9 = vmor %vm2806_vm11, %vm2807_vm2 }
 0x39a   : > { %v5001_v39 = vpop.eup %5000  ;;  %v2803_v21 = vsub.f32 1.0, %v2802_v45  ;;  %v2855_v59 = vand.u32 2147483647, %v6923_v60  ;;  %vm6957_vm6 = vcmp.eq.f32.partialorder %v2840_v49, 8.507059e+37  ;;  %v2828_v35 = vor.u32 1.1754944e-38, %v2827_v16  ;;  %vm2793_vm8 = vmor %vm2791_vm13, %vm2792_vm3 }
 0x39b   : > { %v5003_v47 = vpop.eup %5002  ;;  %v2788_v11 = vsub.f32 1.0, %v2787_v54  ;;  %v2857_v32 = vand.u32 2147483648, %v6923_v60  ;;  %vm2851_vm4 = vweird.f32 %v6923_v60  ;;  %vm8055_vm13 = vweird.f32 %v6906_v55 }
 0x39c   : > { %v5005_v44 = vpop.eup %5004  ;;  %v2804_v37 = vmul.f32 %v4995_v22, %v2803_v21  ;;  %v2772_v52 = vmul.f32 %v5003_v47, %v6904_v48  ;;  %vm2777_vm12 = vweird.f32 %v5003_v47  ;;  %v6970_v21 = vadd.f32 1.0, %v4993_v14 }
 0x39d   : > { %v5007_v7 = vpop.eup %5006  ;;  %v2789_v8 = vmul.f32 %v4997_v58, %v2788_v11  ;;  %v2832_v38 = vmul.f32 %v5005_v44, %v6906_v55  ;;  %vm2837_vm0 = vweird.f32 %v5005_v44  ;;  %vm2778_vm11 = vmor %vm2776_vm1, %vm2777_vm12  ;;  %v6989_v31 = vadd.f32 1.0, %v5001_v39 }
 0x39e   : > { %v2805_v6 = vadd.f32 %v4995_v22, %v2804_v37  ;;  %v2773_v13 = vsub.f32 1.0, %v2772_v52  ;;  %v2817_v23 = vmul.f32 %v5007_v7, %v6913_v24  ;;  %vm2822_vm5 = vweird.f32 %v5007_v7  ;;  %v5009_v50 = vpop.eup %5008 }
 0x39f   : > { %v2790_v27 = vadd.f32 %v4997_v58, %v2789_v8  ;;  %v2833_v45 = vsub.f32 1.0, %v2832_v38  ;;  %v2847_v52 = vmul.f32 %v5009_v50, %v6923_v60  ;;  %5010 = vrcp.f32 %v6970_v21 }
 0x3a0   : > { %v2809_v54 = vsel %vm2808_vm9, %v4995_v22, %v2805_v6  ;;  %v2774_v49 = vmul.f32 %v5003_v47, %v2773_v13  ;;  %v2818_v16 = vsub.f32 1.0, %v2817_v23  ;;  %vm2852_vm2 = vweird.f32 %v5009_v50 }
 0x3a1   : > { %v2814_v19 = vsel %vm6933_vm14, %v2813_v61, %v2809_v54  ;;  %v2794_v11 = vsel %vm2793_vm8, %v4997_v58, %v2790_v27  ;;  %v2834_v37 = vmul.f32 %v5005_v44, %v2833_v45  ;;  %v2848_v43 = vsub.f32 1.0, %v2847_v52  ;;  %vm2838_vm14 = vmor %vm8055_vm13, %vm2837_vm0 }
 0x3a2   : > { %v3013_v8 = vmul.f32 %v2814_v19, %v6823_v28  ;;  %v2799_v22 = vsel %vm6939_vm15, %v2798_v15, %v2794_v11  ;;  %v2775_v38 = vadd.f32 %v5003_v47, %v2774_v49  ;;  %v2819_v6 = vmul.f32 %v5007_v7, %v2818_v16 }
 0x3a3   : > { %v3012_v56 = vmul.f32 %v2799_v22, %v6828_v3  ;;  %v2835_v14 = vadd.f32 %v5005_v44, %v2834_v37  ;;  %v6982_v61 = vadd.f32 1.0, %v4999_v12  ;;  %vm8056_vm15 = vweird.f32 %v6913_v24 }
 0x3a4   : > { %3030 = vst.msk [vmem:[#allocation3 + $0x31] sm:$0xff] %vm544_vm7, %v3013_v8  ;;  %v2779_v58 = vsel %vm2778_vm11, %v5003_v47, %v2775_v38  ;;  %v2820_v28 = vadd.f32 %v5007_v7, %v2819_v6  ;;  %vm2823_vm1 = vmor %vm8056_vm15, %vm2822_vm5  ;;  %v2849_v12 = vmul.f32 %v5009_v50, %v2848_v43  ;;  %vm2826_vm0 = vcmp.eq.f32.partialorder %v2825_v4, 8.507059e+37 }
 0x3a5   : > { %3029 = vst.msk [vmem:[#allocation3 + $0x21] sm:$0xff] %vm544_vm7, %v3012_v56  ;;  %v2784_v3 = vsel %vm6949_vm10, %v2783_v53, %v2779_v58  ;;  %v2839_v48 = vsel %vm2838_vm14, %v5005_v44, %v2835_v14  ;;  %v2858_v9 = vor.u32 1.1754944e-38, %v2857_v32  ;;  %vm2853_vm5 = vmor %vm2851_vm4, %vm2852_vm2  ;;  %v2885_v24 = vand.u32 2147483647, %v6970_v21 }
 0x3a6   : > { %v3011_v55 = vmul.f32 %v2784_v3, %v6831_v57  ;;  %v2844_v15 = vsel %vm6957_vm6, %v2843_v46, %v2839_v48  ;;  %v2824_v47 = vsel %vm2823_vm1, %v5007_v7, %v2820_v28  ;;  %v2850_v23 = vadd.f32 %v5009_v50, %v2849_v12 }
 0x3a7   : > { %v3015_v39 = vmul.f32 %v2844_v15, %v6834_v34  ;;  %v2829_v13 = vsel %vm2826_vm0, %v2828_v35, %v2824_v47  ;;  %v2887_v57 = vand.u32 2147483648, %v6970_v21  ;;  %5012 = vrcp.f32 %v6982_v61 }
 0x3a8   : > { %3028 = vst.msk [vmem:[#allocation3 + $0x11] sm:$0xff] %vm544_vm7, %v3011_v55  ;;  %v3014_v53 = vmul.f32 %v2829_v13, %v6839_v18  ;;  %v2854_v46 = vsel %vm2853_vm5, %v5009_v50, %v2850_v23  ;;  %vm2856_vm3 = vcmp.eq.f32.partialorder %v2855_v59, 8.507059e+37  ;;  %5014 = vrcp.f32 %v6989_v31  ;;  %v7014_v18 = vpop.eup %5010 }
 0x3a9   : > { %3032 = vst.msk [vmem:[#allocation3 + $0x51] sm:$0xff] %vm544_vm7, %v3015_v39  ;;  %v2684_v34 = vmul.f32 %v6783_v51, %v6919_v40  ;;  %v2859_v44 = vsel %vm2856_vm3, %v2858_v9, %v2854_v46  ;;  %v4606_v4 = vmul.f32 -1.442695, %v6901_v5  ;;  %v2668_v7 = vmul.f32 %v6807_v0, %v2642_v33 }
 0x3aa   : > { %3031 = vst.msk [vmem:[#allocation3 + $0x41] sm:$0xff] %vm544_vm7, %v3014_v53  ;;  %v2641_v60 = vsub.f32 %v6647_v30, %v6771_v63  ;;  %v3016_v20 = vmul.f32 %v2859_v44, %v6842_v29  ;;  %v2877_v40 = vmul.f32 %v7014_v18, %v6970_v21  ;;  %v4608_v35 = vmul.f32 -1.442695, %v6909_v26 }
 0x3ab   : > { %v3208_v59 = vld [vmem:[#allocation3 + $0x30] sm:$0xff]  ;;  %vm2881_vm8 = vweird.f32 %v6970_v21  ;;  %vm7030_vm10 = vcmp.eq.f32.partialorder %v2885_v24, 8.507059e+37  ;;  %v2888_v33 = vor.u32 1.1754944e-38, %v2887_v57  ;;  %vm546_vm4 = vcmask 517120  }
 0x3ac   : > { %3242 = vrot.lane.b32.xlu2 %v3208_v59, %s8029_s0  ;;  %v3207_v32 = vld [vmem:[#allocation3 + $0x20] sm:$0xff]  ;;  %3033 = vst.msk [vmem:[#allocation3 + $0x61] sm:$0xff] %vm544_vm7, %v3016_v20  ;;  %v2878_v30 = vsub.f32 1.0, %v2877_v40  ;;  %5016 = vpow2.f32 %v6898_v17  ;;  %v4610_v63 = vmul.f32 -1.442695, %v6926_v25  ;;  %v7039_v29 = vadd.f32 %v6803_v2, %v2684_v34 }
 0x3ad   : > { %3240 = vrot.lane.b32.xlu1 %v3207_v32, %s8029_s0  ;;  %v7041_v27 = vpop.eup %5012  ;;  %vm2866_vm6 = vweird.f32 %v6982_v61  ;;  %v2870_v45 = vand.u32 2147483647, %v6982_v61  ;;  %549 = vst.msk [vmem:[#allocation3 + $0xa8] sm:$0x3] %vm546_vm4, %v8046_v10  ;;  %5018 = vpow2.f32 %v4606_v4  ;;  %v2687_v50 = vmul.f32 %v6783_v51, %v2668_v7 }
 0x3ae   : > { %v7048_v54 = vpop.eup %5014  ;;  %v2879_v49 = vmul.f32 %v7014_v18, %v2878_v30  ;;  %vm2882_vm12 = vweird.f32 %v7014_v18  ;;  %v2862_v16 = vmul.f32 %v7041_v27, %v6982_v61  ;;  %v2872_v19 = vand.u32 2147483648, %v6982_v61  ;;  %547 = vst.msk [vmem:[#allocation3 + $0x8] sm:$0x3] %vm546_vm4, %v8046_v10  ;;  %v4821_v61 = vld [vmem:[%s7975_s10 + $0x78] sm:$0xff] }
 0x3af   : > { %v3206_v17 = vld [vmem:[#allocation3 + $0x10] sm:$0xff]  ;;  %vm8059_vm9 = vcmask 516096   ;;  %v2892_v11 = vmul.f32 %v7048_v54, %v6989_v31  ;;  %v2900_v37 = vand.u32 2147483647, %v6989_v31  ;;  %5020 = vpow2.f32 %v4608_v35  ;;  %552 = vst.msk [vmem:[#allocation3 + $0x98] sm:$0x3] %vm546_vm4, %v8046_v10  ;;  %vm7074_vm11 = vmor %vm2881_vm8, %vm2882_vm12  ;;  %4075 = vmatpush.bf16.msrb.mxu2 %v4821_v61 }
 0x3b0   : > { %586 = vst.msk [vmem:[#allocation3 + $0xa9] sm:$0x1] %vm8059_vm9, %v8046_v10  ;;  %3238 = vrot.lane.b32.xlu0 %v3206_v17, %s8029_s0  ;;  %v4609_v52 = vmul.f32 -1.442695, %v7039_v29  ;;  %v2880_v8 = vadd.f32 %v7014_v18, %v2879_v49  ;;  %v2863_v22 = vsub.f32 1.0, %v2862_v16  ;;  %5022 = vpow2.f32 %v4610_v63  ;;  %v7082_v28 = vld [vmem:[#allocation3 + $0x51] sm:$0xff]  ;;  %vm8062_vm15 = vmmov %vm8059_vm9 }
 0x3b1   : > { %v7068_v38 = vadd.f32 %v6803_v2, %v2687_v50  ;;  %v2893_v56 = vsub.f32 1.0, %v2892_v11  ;;  %v2902_v14 = vand.u32 2147483648, %v6989_v31  ;;  %554 = vst.msk [vmem:[#allocation3 + $0x138] sm:$0x3] %vm546_vm4, %v8046_v10  ;;  %v2667_v43 = vmul.f32 %v6807_v0, %v2641_v60  ;;  %v7084_v3 = vld [vmem:[#allocation3 + $0x50] sm:$0xff]  ;;  %v7096_v0 = vld [vmem:[#allocation3 + $0x41] sm:$0xff]  ;;  %vm8063_vm1 = vmmov %vm8059_vm9 }
 0x3b2   : > { %5024 = vpow2.f32 %v4609_v52  ;;  %v5017_v58 = vpop.eup %5016  ;;  %v2884_v21 = vsel %vm7074_vm11, %v7014_v18, %v2880_v8  ;;  %v2864_v48 = vmul.f32 %v7041_v27, %v2863_v22  ;;  %vm2867_vm13 = vweird.f32 %v7041_v27  ;;  %576 = vst.msk [vmem:[#allocation3 + $0x9] sm:$0x1] %vm8062_vm15, %v8046_v10  ;;  %vm8064_vm0 = vmmov %vm8063_vm1  ;;  %v3209_v57 = vld [vmem:[#allocation3 + $0x40] sm:$0xff]  ;;  %v7152_v32 = vld [vmem:[#allocation3 + $0x11] sm:$0xff] }
 0x3b3   : > { %vm2897_vm14 = vweird.f32 %v7048_v54  ;;  %v5019_v12 = vpop.eup %5018  ;;  %v2889_v55 = vsel %vm7030_vm10, %v2888_v33, %v2884_v21  ;;  %v2894_v15 = vmul.f32 %v7048_v54, %v2893_v56  ;;  %v7101_v47 = vadd.f32 1.0, %v5017_v58  ;;  %585 = vst.msk [vmem:[#allocation3 + $0x99] sm:$0x1] %vm8063_vm1, %v8046_v10  ;;  %v3211_v13 = vld [vmem:[#allocation3 + $0x60] sm:$0xff]  ;;  %vm7119_vm5 = vmor %vm2866_vm6, %vm2867_vm13  ;;  %v4820_v56 = vld [vmem:[%s7975_s10 + $0x70] sm:$0xff] }
 0x3b4   : > { %3119 = vrot.lane.b32.xlu2 %v7082_v28, %s8029_s0  ;;  %v4612_v39 = vmul.f32 -1.442695, %v7068_v38  ;;  %v3018_v23 = vmul.f32 %v2889_v55, %v6861_v62  ;;  %v2865_v9 = vadd.f32 %v7041_v27, %v2864_v48  ;;  %vm2896_vm2 = vweird.f32 %v6989_v31  ;;  %595 = vst.msk [vmem:[#allocation3 + $0x139] sm:$0x1] %vm8064_vm0, %v8046_v10  ;;  %v7157_v33 = vld [vmem:[#allocation3 + $0x61] sm:$0xff]  ;;  %4076 = vmatpush.bf16.msrb.mxu2 %v4820_v56  ;;  %v7315_v22 = vld [vmem:[#allocation3 + $0x52] sm:$0xff] }
 0x3b5   : > { %3117 = vrot.lane.b32.xlu1 %v7096_v0, %s8029_s0  ;;  %v7113_v53 = vadd.f32 1.0, %v5019_v12  ;;  %v5021_v24 = vpop.eup %5020  ;;  %v2873_v62 = vor.u32 1.1754944e-38, %v2872_v19  ;;  %v2895_v34 = vadd.f32 %v7048_v54, %v2894_v15  ;;  %5026 = vrcp.f32 %v7101_v47  ;;  %3066 = vst.msk [vmem:[#allocation5 + $0xc8] sm:$0xff] %vm544_vm7, %v7084_v3  ;;  %vm2898_vm8 = vmor %vm2896_vm2, %vm2897_vm14 }
 0x3b6   : > { %v2686_v18 = vmul.f32 %v6783_v51, %v2667_v43  ;;  %v5023_v10 = vpop.eup %5022  ;;  %3035 = vst.msk [vmem:[#allocation3 + $0x81] sm:$0xff] %vm544_vm7, %v3018_v23  ;;  %v2869_v44 = vsel %vm7119_vm5, %v7041_v27, %v2865_v9  ;;  %vm2871_vm3 = vcmp.eq.f32.partialorder %v2870_v45, 8.507059e+37  ;;  %v2903_v4 = vor.u32 1.1754944e-38, %v2902_v14  ;;  %v4819_v23 = vld [vmem:[%s7975_s10 + $0x68] sm:$0xff] }
 0x3b7   : > { %5028 = vrcp.f32 %v7113_v53  ;;  %v2874_v7 = vsel %vm2871_vm3, %v2873_v62, %v2869_v44  ;;  %v2899_v60 = vsel %vm2898_vm8, %v7048_v54, %v2895_v34  ;;  %vm2901_vm10 = vcmp.eq.f32.partialorder %v2900_v37, 8.507059e+37  ;;  %3067 = vst.msk [vmem:[#allocation5 + $0xf0] sm:$0xff] %vm544_vm7, %v3211_v13 }
 0x3b8   : > { %v5025_v51 = vpop.eup %5024  ;;  %3244 = vrot.lane.b32.xlu0 %v3209_v57, %s8029_s0  ;;  %5030 = vpow2.f32 %v4612_v39  ;;  %v3017_v31 = vmul.f32 %v2874_v7, %v6870_v42  ;;  %v2904_v59 = vsel %vm2901_vm10, %v2903_v4, %v2899_v60  ;;  %3065 = vst.msk [vmem:[#allocation5 + $0xa0] sm:$0xff] %vm544_vm7, %v3209_v57  ;;  %v7148_v40 = vadd.f32 1.0, %v5021_v24  ;;  %4077 = vmatpush.bf16.msrb.mxu2 %v4819_v23  ;;  %v4813_v23 = vld [vmem:[%s7975_s10 + $0x38] sm:$0xff] }
 0x3b9   : > { %v3019_v20 = vmul.f32 %v2904_v59, %v6877_v36  ;;  %v7150_v35 = vadd.f32 1.0, %v5023_v10  ;;  %v7155_v41 = vadd.f32 %v6803_v2, %v2686_v18  ;;  %v2930_v42 = vand.u32 2147483647, %v7101_v47  ;;  %3318 = vst.msk [vmem:[#allocation5 + $0x10] sm:$0xff] %vm544_vm7, %v7152_v32  ;;  %v7258_v59 = vld [vmem:[#allocation3 + $0x12] sm:$0xff]  ;;  %4026 = vmatpush.bf16.msrb.mxu1 %v4813_v23  ;;  %4848 = vmatpush.bf16.msra.mxu3 %v4813_v23 }
 0x3ba   : > { %3034 = vst.msk [vmem:[#allocation3 + $0x71] sm:$0xff] %vm544_vm7, %v3017_v31  ;;  %v7161_v30 = vadd.f32 1.0, %v5025_v51  ;;  %v2932_v36 = vand.u32 2147483648, %v7101_v47  ;;  %v2915_v2 = vand.u32 2147483647, %v7113_v53  ;;  %v2917_v27 = vand.u32 2147483648, %v7113_v53 }
 0x3bb   : > { %v7163_v63 = vpop.eup %5026  ;;  %3036 = vst.msk [vmem:[#allocation3 + $0xb1] sm:$0xff] %vm544_vm7, %v3019_v20  ;;  %5032 = vrcp.f32 %v7148_v40  ;;  %vm2926_vm4 = vweird.f32 %v7101_v47  ;;  %vm2911_vm6 = vweird.f32 %v7113_v53  ;;  %v2947_v49 = vand.u32 2147483648, %v7148_v40 }
 0x3bc   : > { %3121 = vrot.lane.b32.xlu2 %v7157_v33, %s8029_s0  ;;  %v2922_v50 = vmul.f32 %v7163_v63, %v7101_v47  ;;  %5034 = vrcp.f32 %v7150_v35  ;;  %v4611_v16 = vmul.f32 -1.442695, %v7155_v41  ;;  %vm7186_vm12 = vcmp.eq.f32.partialorder %v2930_v42, 8.507059e+37  ;;  %3191 = vst.msk [vmem:[#allocation5 + $0x30] sm:$0xff] %vm544_vm7, %v7258_v59 }
 0x3bd   : > { %v7172_v45 = vpop.eup %5028  ;;  %3248 = vrot.lane.b32.xlu1 %v3211_v13, %s8029_s0  ;;  %v2945_v37 = vand.u32 2147483647, %v7148_v40  ;;  %5036 = vrcp.f32 %v7161_v30  ;;  %v2933_v52 = vor.u32 1.1754944e-38, %v2932_v36  ;;  %vm7194_vm9 = vcmp.eq.f32.partialorder %v2915_v2, 8.507059e+37  ;;  %v3213_v55 = vld [vmem:[#allocation3 + $0x80] sm:$0xff]  ;;  %3195 = vst.msk [vmem:[#allocation5 + $0xd0] sm:$0xff] %vm544_vm7, %v7315_v22 }
 0x3be   : > { %v5031_v54 = vpop.eup %5030  ;;  %v2907_v17 = vmul.f32 %v7172_v45, %v7113_v53  ;;  %v2923_v19 = vsub.f32 1.0, %v2922_v50  ;;  %v2918_v6 = vor.u32 1.1754944e-38, %v2917_v27  ;;  %vm2927_vm11 = vweird.f32 %v7163_v63  ;;  %v7265_v36 = vld [vmem:[#allocation3 + $0x22] sm:$0xff]  ;;  %3578 = vst.msk [vmem:[#allocation5 + $0x98] sm:$0xff] %vm544_vm7, %v7315_v22 }
 0x3bf   : > { %vm2941_vm13 = vweird.f32 %v7148_v40  ;;  %v7204_v43 = vadd.f32 1.0, %v5031_v54  ;;  %vm2912_vm14 = vweird.f32 %v7172_v45  ;;  %v7210_v48 = vor.u32 1.1754944e-38, %v2947_v49  ;;  %vm2928_vm2 = vmor %vm2926_vm4, %vm2927_vm11  ;;  %3192 = vst.msk [vmem:[#allocation5 + $0x58] sm:$0xff] %vm544_vm7, %v7265_v36 }
 0x3c0   : > { %3246 = vrot.lane.b32.xlu0 %v7084_v3, %s8029_s0  ;;  %v2908_v8 = vsub.f32 1.0, %v2907_v17  ;;  %v2924_v14 = vmul.f32 %v7163_v63, %v2923_v19  ;;  %vm2971_vm15 = vweird.f32 %v7150_v35  ;;  %5038 = vpow2.f32 %v4611_v16  ;;  %vm2913_vm5 = vmor %vm2911_vm6, %vm2912_vm14  ;;  %v7293_v19 = vld [vmem:[#allocation3 + $0x32] sm:$0xff]  ;;  %3575 = vst.msk [vmem:[#allocation5 + $0x20] sm:$0xff] %vm544_vm7, %v7265_v36 }
 0x3c1   : > { %v7206_v58 = vpop.eup %5032  ;;  %v3212_v3 = vld [vmem:[#allocation3 + $0x70] sm:$0xff]  ;;  %vm7218_vm1 = vcmp.eq.f32.partialorder %v2945_v37, 8.507059e+37  ;;  %v2975_v9 = vand.u32 2147483647, %v7150_v35  ;;  %5040 = vrcp.f32 %v7204_v43  ;;  %v2977_v46 = vand.u32 2147483648, %v7150_v35  ;;  %3193 = vst.msk [vmem:[#allocation5 + $0x80] sm:$0xff] %vm544_vm7, %v7293_v19 }
 0x3c2   : > { %v2909_v21 = vmul.f32 %v7172_v45, %v2908_v8  ;;  %v7213_v12 = vpop.eup %5034  ;;  %v3214_v15 = vld [vmem:[#allocation3 + $0xb0] sm:$0xff]  ;;  %v2925_v39 = vadd.f32 %v7163_v63, %v2924_v14  ;;  %v2937_v13 = vmul.f32 %v7206_v58, %v7148_v40  ;;  %3068 = vst.msk [vmem:[#allocation5 + $0x118] sm:$0xff] %vm544_vm7, %v3212_v3  ;;  %vm2956_vm0 = vweird.f32 %v7161_v30  ;;  %v3433_v37 = vld [vmem:[#allocation3 + $0x40] sm:$0xff] }
 0x3c3   : > { %v2967_v57 = vmul.f32 %v7213_v12, %v7150_v35  ;;  %3070 = vst.msk [vmem:[#allocation5 + $0x168] sm:$0xff] %vm544_vm7, %v3214_v15  ;;  %v7236_v62 = vpop.eup %5036  ;;  %v2960_v18 = vand.u32 2147483647, %v7161_v30  ;;  %v2962_v10 = vand.u32 2147483648, %v7161_v30  ;;  %v7251_v60 = vld [vmem:[#allocation3 + $0x71] sm:$0xff]  ;;  %vm2942_vm3 = vweird.f32 %v7206_v58 }
 0x3c4   : > { %3252 = vrot.lane.b32.xlu2 %v3213_v55, %s8029_s0  ;;  %v2910_v24 = vadd.f32 %v7172_v45, %v2909_v21  ;;  %v2929_v34 = vsel %vm2928_vm2, %v7163_v63, %v2925_v39  ;;  %v2938_v47 = vsub.f32 1.0, %v2937_v13  ;;  %v2952_v7 = vmul.f32 %v7236_v62, %v7161_v30  ;;  %vm7284_vm4 = vmor %vm2941_vm13, %vm2942_vm3  ;;  %v7295_v11 = vld [vmem:[#allocation3 + $0x72] sm:$0xff]  ;;  %3449 = vst.msk [vmem:[#allocation5 + $0x68] sm:$0xff] %vm544_vm7, %v3433_v37  ;;  %v4808_v37 = vld [vmem:[%s7975_s10 + $0x10] sm:$0xff] }
 0x3c5   : > { %3250 = vrot.lane.b32.xlu1 %v3212_v3, %s8029_s0  ;;  %v2934_v44 = vsel %vm7186_vm12, %v2933_v52, %v2929_v34  ;;  %v2968_v51 = vsub.f32 1.0, %v2967_v57  ;;  %vm2972_vm8 = vweird.f32 %v7213_v12  ;;  %vm7273_vm10 = vcmp.eq.f32.partialorder %v2975_v9, 8.507059e+37  ;;  %3197 = vst.msk [vmem:[#allocation5 + $0x120] sm:$0xff] %vm544_vm7, %v7295_v11  ;;  %v3085_v3 = vld [vmem:[#allocation3 + $0xa1] sm:$0xff] }
 0x3c6   : > { %v2914_v4 = vsel %vm2913_vm5, %v7172_v45, %v2910_v24  ;;  %v3021_v61 = vmul.f32 %v2934_v44, %v6880_v1  ;;  %v2939_v31 = vmul.f32 %v7206_v58, %v2938_v47  ;;  %v5039_v20 = vpop.eup %5038  ;;  %v2953_v1 = vsub.f32 1.0, %v2952_v7  ;;  %vm7304_vm12 = vmor %vm2971_vm15, %vm2972_vm8  ;;  %v7358_v24 = vld [vmem:[#allocation3 + $0x42] sm:$0xff]  ;;  %3576 = vst.msk [vmem:[#allocation5 + $0x48] sm:$0xff] %vm544_vm7, %v7293_v19 }
 0x3c7   : > { %v2919_v53 = vsel %vm7194_vm9, %v2918_v6, %v2914_v4  ;;  %v2969_v63 = vmul.f32 %v7213_v12, %v2968_v51  ;;  %v7269_v2 = vpop.eup %5040  ;;  %v7277_v50 = vadd.f32 1.0, %v5039_v20  ;;  %vm2957_vm6 = vweird.f32 %v7236_v62  ;;  %v3086_v6 = vld [vmem:[#allocation3 + $0xb1] sm:$0xff]  ;;  %3194 = vst.msk [vmem:[#allocation5 + $0xa8] sm:$0xff] %vm544_vm7, %v7358_v24 }
 0x3c8   : > { %3123 = vrot.lane.b32.xlu0 %v7251_v60, %s8029_s0  ;;  %v3020_v42 = vmul.f32 %v2919_v53, %v6901_v5  ;;  %3038 = vst.msk [vmem:[#allocation3 + $0xd1] sm:$0xff] %vm544_vm7, %v3021_v61  ;;  %v2940_v27 = vadd.f32 %v7206_v58, %v2939_v31  ;;  %v2978_v5 = vor.u32 1.1754944e-38, %v2977_v46  ;;  %v2954_v49 = vmul.f32 %v7236_v62, %v2953_v1  ;;  %vm2958_vm11 = vmor %vm2956_vm0, %vm2957_vm6  ;;  %v7384_v31 = vld [vmem:[#allocation3 + $0xb2] sm:$0xff] }
 0x3c9   : > { %v2970_v17 = vadd.f32 %v7213_v12, %v2969_v63  ;;  %v2997_v16 = vmul.f32 %v7269_v2, %v7204_v43  ;;  %vm7308_vm9 = vcmp.eq.f32.partialorder %v2960_v18, 8.507059e+37  ;;  %v2963_v8 = vor.u32 1.1754944e-38, %v2962_v10  ;;  %3199 = vst.msk [vmem:[#allocation5 + $0x170] sm:$0xff] %vm544_vm7, %v7384_v31 }
 0x3ca   : > { %3037 = vst.msk [vmem:[#allocation3 + $0xc1] sm:$0xff] %vm544_vm7, %v3020_v42  ;;  %v2944_v40 = vsel %vm7284_vm4, %v7206_v58, %v2940_v27  ;;  %5042 = vrcp.f32 %v7277_v50  ;;  %v2955_v14 = vadd.f32 %v7236_v62, %v2954_v49  ;;  %vm3002_vm13 = vweird.f32 %v7269_v2  ;;  %v4818_v42 = vld [vmem:[%s7975_s10 + $0x60] sm:$0xff] }
 0x3cb   : > { %v2949_v35 = vsel %vm7218_vm1, %v7210_v48, %v2944_v40  ;;  %v2974_v56 = vsel %vm7304_vm12, %v7213_v12, %v2970_v17  ;;  %v2998_v58 = vsub.f32 1.0, %v2997_v16  ;;  %v3005_v48 = vand.u32 2147483647, %v7204_v43  ;;  %4078 = vmatpush.bf16.msrb.mxu2 %v4818_v42  ;;  %v3432_v16 = vld [vmem:[#allocation3 + $0x30] sm:$0xff]  ;;  %3577 = vst.msk [vmem:[#allocation5 + $0x70] sm:$0xff] %vm544_vm7, %v7358_v24 }
 0x3cc   : > { %3254 = vrot.lane.b32.xlu2 %v3214_v15, %s8029_s0  ;;  %v3022_v21 = vmul.f32 %v2949_v35, %v6909_v26  ;;  %v2979_v55 = vsel %vm7273_vm10, %v2978_v5, %v2974_v56  ;;  %v3007_v12 = vand.u32 2147483648, %v7204_v43  ;;  %v2959_v39 = vsel %vm2958_vm11, %v7236_v62, %v2955_v14  ;;  %v7360_v62 = vld [vmem:[#allocation3 + $0x62] sm:$0xff]  ;;  %v3046_v40 = vld [vmem:[#allocation3 + $0x10] sm:$0xff]  ;;  %3448 = vst.msk [vmem:[#allocation5 + $0x40] sm:$0xff] %vm544_vm7, %v3432_v16 }
 0x3cd   : > { %3127 = vrot.lane.b32.xlu1 %v3086_v6, %s8029_s0  ;;  %v3024_v15 = vmul.f32 %v2979_v55, %v6926_v25  ;;  %v2999_v26 = vmul.f32 %v7269_v2, %v2998_v58  ;;  %v2964_v30 = vsel %vm7308_vm9, %v2963_v8, %v2959_v39  ;;  %vm3001_vm14 = vweird.f32 %v7204_v43  ;;  %3196 = vst.msk [vmem:[#allocation5 + $0xf8] sm:$0xff] %vm544_vm7, %v7360_v62  ;;  %v3307_v8 = vld [vmem:[#allocation3 + $0x61] sm:$0xff]  ;;  %v3308_v14 = vld [vmem:[#allocation3 + $0x71] sm:$0xff] }
 0x3ce   : > { %3039 = vst.msk [vmem:[#allocation3 + $0xe1] sm:$0xff] %vm544_vm7, %v3022_v21  ;;  %v3023_v25 = vmul.f32 %v2964_v30, %v7039_v29  ;;  %vm3003_vm15 = vmor %vm3001_vm14, %vm3002_vm13  ;;  %v3008_v46 = vor.u32 1.1754944e-38, %v3007_v12  ;;  %vm3006_vm1 = vcmp.eq.f32.partialorder %v3005_v48, 8.507059e+37  ;;  %v2992_v51 = vand.u32 2147483648, %v7277_v50  ;;  %v3047_v6 = vld [vmem:[#allocation3 + $0x20] sm:$0xff]  ;;  %v4816_v21 = vld [vmem:[%s7975_s10 + $0x50] sm:$0xff] }
 0x3cf   : > { %v7349_v13 = vld [vmem:[#allocation3 + $0xd0] sm:$0xff]  ;;  %3041 = vst.msk [vmem:[#allocation3 + $0x101] sm:$0xff] %vm544_vm7, %v3024_v15  ;;  %v3000_v9 = vadd.f32 %v7269_v2, %v2999_v26  ;;  %v2990_v53 = vand.u32 2147483647, %v7277_v50  ;;  %vm2986_vm0 = vweird.f32 %v7277_v50  ;;  %v3305_v48 = vld [vmem:[#allocation3 + $0x41] sm:$0xff]  ;;  %vm3157_vm8 = vcmask 1048064  }
 0x3d0   : > { %3125 = vrot.lane.b32.xlu0 %v3085_v3, %s8029_s0  ;;  %v5043_v57 = vpop.eup %5042  ;;  %3072 = vst.msk [vmem:[#allocation5 + $0x1b8] sm:$0xff] %vm544_vm7, %v7349_v13  ;;  %v7367_v43 = vld [vmem:[#allocation3 + $0xd1] sm:$0xff]  ;;  %v2993_v1 = vor.u32 1.1754944e-38, %v2992_v51  ;;  %v7441_v3 = vld [vmem:[#allocation3 + $0x21] sm:$0xff]  ;;  %vm8081_vm10 = vcmask 261120  }
 0x3d1   : > { %v3215_v34 = vld [vmem:[#allocation3 + $0xc0] sm:$0xff]  ;;  %3040 = vst.msk [vmem:[#allocation3 + $0xf1] sm:$0xff] %vm544_vm7, %v3023_v25  ;;  %v3004_v29 = vsel %vm3003_vm15, %v7269_v2, %v3000_v9  ;;  %v2982_v47 = vmul.f32 %v5043_v57, %v7277_v50  ;;  %vm2987_vm2 = vweird.f32 %v5043_v57  ;;  %v7392_v63 = vld [vmem:[#allocation3 + $0xd2] sm:$0xff]  ;;  %vm2991_vm3 = vcmp.eq.f32.partialorder %v2990_v53, 8.507059e+37  ;;  %vm8082_vm4 = vmmov %vm8081_vm10 }
 0x3d2   : > { %v3009_v18 = vsel %vm3006_vm1, %v3008_v46, %v3004_v29  ;;  %v7373_v10 = vld [vmem:[#allocation3 + $0xc1] sm:$0xff]  ;;  %3071 = vst.msk [vmem:[#allocation5 + $0x190] sm:$0xff] %vm544_vm7, %v3215_v34  ;;  %vm2988_vm5 = vmor %vm2986_vm0, %vm2987_vm2  ;;  %v7450_v55 = vld [vmem:[#allocation3 + $0x31] sm:$0xff] }
 0x3d3   : > { %v3026_v44 = vmul.f32 %v3009_v18, %v7068_v38  ;;  %v2983_v4 = vsub.f32 1.0, %v2982_v47  ;;  %v7395_v2 = vld [vmem:[#allocation3 + $0xc2] sm:$0xff]  ;;  %3201 = vst.msk [vmem:[#allocation5 + $0x1c0] sm:$0xff] %vm544_vm7, %v7392_v63  ;;  %v3434_v39 = vld [vmem:[#allocation3 + $0x50] sm:$0xff]  ;;  %vm8083_vm6 = vmmov %vm8082_vm4 }
 0x3d4   : > { %3131 = vrot.lane.b32.xlu2 %v7367_v43, %s8029_s0  ;;  %3200 = vst.msk [vmem:[#allocation5 + $0x198] sm:$0xff] %vm544_vm7, %v7395_v2  ;;  %v3439_v15 = vld [vmem:[#allocation3 + $0xc0] sm:$0xff]  ;;  %v3306_v30 = vld [vmem:[#allocation3 + $0x51] sm:$0xff]  ;;  %vm8084_vm12 = vmmov %vm8082_vm4 }
 0x3d5   : > { %3129 = vrot.lane.b32.xlu1 %v7373_v10, %s8029_s0  ;;  %v3217_v7 = vld [vmem:[#allocation3 + $0xe0] sm:$0xff]  ;;  %3043 = vst.msk [vmem:[#allocation3 + $0x121] sm:$0xff] %vm544_vm7, %v3026_v44  ;;  %v2984_v61 = vmul.f32 %v5043_v57, %v2983_v4  ;;  %v3436_v9 = vld [vmem:[#allocation3 + $0x70] sm:$0xff]  ;;  %v4812_v44 = vld [vmem:[%s7975_s10 + $0x30] sm:$0xff] }
 0x3d6   : > { %v3219_v38 = vld [vmem:[#allocation3 + $0x100] sm:$0xff]  ;;  %3073 = vst.msk [vmem:[#allocation5 + $0x1e0] sm:$0xff] %vm544_vm7, %v3217_v7  ;;  %v3310_v47 = vld [vmem:[#allocation3 + $0xb1] sm:$0xff]  ;;  %4849 = vmatpush.bf16.msra.mxu3 %v4812_v44  ;;  %4027 = vmatpush.bf16.msrb.mxu1 %v4812_v44  ;;  %vm8085_vm9 = vmmov %vm8082_vm4 }
 0x3d7   : > { %v2985_v20 = vadd.f32 %v5043_v57, %v2984_v61  ;;  %3075 = vst.msk [vmem:[#allocation5 + $0x230] sm:$0xff] %vm544_vm7, %v3219_v38  ;;  %v7401_v5 = vld [vmem:[#allocation3 + $0xe2] sm:$0xff]  ;;  %v3440_v61 = vld [vmem:[#allocation3 + $0xd0] sm:$0xff]  ;;  %vm8086_vm11 = vmmov %vm8082_vm4 }
 0x3d8   : > { %3256 = vrot.lane.b32.xlu0 %v3215_v34, %s8029_s0  ;;  %v7397_v27 = vld [vmem:[#allocation3 + $0xf2] sm:$0xff]  ;;  %v7405_v50 = vld [vmem:[#allocation3 + $0xe1] sm:$0xff]  ;;  %3202 = vst.msk [vmem:[#allocation5 + $0x1e8] sm:$0xff] %vm544_vm7, %v7401_v5  ;;  %vm8087_vm13 = vmmov %vm8082_vm4 }
 0x3d9   : > { %v2989_v45 = vsel %vm2988_vm5, %v5043_v57, %v2985_v20  ;;  %3203 = vst.msk [vmem:[#allocation5 + $0x210] sm:$0xff] %vm544_vm7, %v7397_v27  ;;  %v3218_v17 = vld [vmem:[#allocation3 + $0xf0] sm:$0xff]  ;;  %v7424_v52 = vld [vmem:[#allocation3 + $0x102] sm:$0xff]  ;;  %vm8088_vm14 = vmmov %vm8082_vm4 }
 0x3da   : > { %v2994_v54 = vsel %vm2991_vm3, %v2993_v1, %v2989_v45  ;;  %3074 = vst.msk [vmem:[#allocation5 + $0x208] sm:$0xff] %vm544_vm7, %v3218_v17  ;;  %v7439_v58 = vld [vmem:[#allocation3 + $0xf1] sm:$0xff]  ;;  %v7455_v12 = vld [vmem:[#allocation3 + $0x101] sm:$0xff] }
 0x3db   : > { %v3025_v49 = vmul.f32 %v2994_v54, %v7155_v41  ;;  %v4817_v41 = vld [vmem:[%s7975_s10 + $0x58] sm:$0xff]  ;;  %3062 = vst.msk [vmem:[#allocation5 + $0x28] sm:$0xff] %vm544_vm7, %v3046_v40  ;;  %v3077_v26 = vld [vmem:[#allocation3 + $0x1] sm:$0xff]  ;;  %v4814_v45 = vld [vmem:[%s7975_s10 + $0x40] sm:$0xff] }
 0x3dc   : > { %3133 = vrot.lane.b32.xlu2 %v7405_v50, %s8029_s0  ;;  %4079 = vmatpush.bf16.msrb.mxu2 %v4817_v41  ;;  %3204 = vst.msk [vmem:[#allocation5 + $0x238] sm:$0xff] %vm544_vm7, %v7424_v52  ;;  %v3435_v25 = vld [vmem:[#allocation3 + $0x60] sm:$0xff]  ;;  %v3314_v57 = vld [vmem:[#allocation3 + $0xf1] sm:$0xff] }
 0x3dd   : > { %3260 = vrot.lane.b32.xlu1 %v3217_v7, %s8029_s0  ;;  %3042 = vst.msk [vmem:[#allocation3 + $0x111] sm:$0xff] %vm544_vm7, %v3025_v49  ;;  %v7476_v46 = vld [vmem:[#allocation3 + $0x81] sm:$0xff]  ;;  %v3312_v53 = vld [vmem:[#allocation3 + $0xd1] sm:$0xff] }
 0x3de   : > { %3323 = vst.msk [vmem:[#allocation5 + $0xd8] sm:$0xff] %vm544_vm7, %v3307_v8  ;;  %v3437_v34 = vld [vmem:[#allocation3 + $0x80] sm:$0xff]  ;;  %v3442_v42 = vld [vmem:[#allocation3 + $0xf0] sm:$0xff] }
 0x3df   : > { %3063 = vst.msk [vmem:[#allocation5 + $0x50] sm:$0xff] %vm544_vm7, %v3047_v6  ;;  %v4815_v18 = vld [vmem:[%s7975_s10 + $0x48] sm:$0xff]  ;;  %v4809_v54 = vld [vmem:[%s7975_s10 + $0x18] sm:$0xff] }
 0x3e0   : > { %3258 = vrot.lane.b32.xlu0 %v7349_v13, %s8029_s0  ;;  %3064 = vst.msk [vmem:[#allocation5 + $0x78] sm:$0xff] %vm544_vm7, %v3432_v16  ;;  %4080 = vmatpush.bf16.msrb.mxu2 %v4816_v21  ;;  %v3313_v13 = vld [vmem:[#allocation3 + $0xe1] sm:$0xff] }
 0x3e1   : > { %3324 = vst.msk [vmem:[#allocation5 + $0x100] sm:$0xff] %vm544_vm7, %v3308_v14  ;;  %v3311_v4 = vld [vmem:[#allocation3 + $0xc1] sm:$0xff] }
 0x3e2   : > { %3319 = vst.msk [vmem:[#allocation5 + $0x38] sm:$0xff] %vm544_vm7, %v7441_v3  ;;  %v4811_v51 = vld [vmem:[%s7975_s10 + $0x28] sm:$0xff] }
 0x3e3   : > { %3447 = vst.msk [vmem:[#allocation5 + $0x18] sm:$0xff] %vm544_vm7, %v3047_v6  ;;  %v3445_v7 = vld [vmem:[#allocation3 + $0x120] sm:$0xff]  ;;  %4850 = vmatpush.bf16.msra.mxu3 %v4811_v51  ;;  %4028 = vmatpush.bf16.msrb.mxu1 %v4811_v51 }
 0x3e4   : > { %3264 = vrot.lane.b32.xlu2 %v3219_v38, %s8029_s0  ;;  %v3220_v35 = vld [vmem:[#allocation3 + $0x110] sm:$0xff]  ;;  %3320 = vst.msk [vmem:[#allocation5 + $0x60] sm:$0xff] %vm544_vm7, %v7450_v55  ;;  %4081 = vmatpush.bf16.msrb.mxu2 %v4815_v18  ;;  %v3441_v38 = vld [vmem:[#allocation3 + $0xe0] sm:$0xff] }
 0x3e5   : > { %3262 = vrot.lane.b32.xlu1 %v3218_v17, %s8029_s0  ;;  %v7434_v56 = vld [vmem:[#allocation3 + $0x112] sm:$0xff]  ;;  %3076 = vst.msk [vmem:[#allocation5 + $0x258] sm:$0xff] %vm544_vm7, %v3220_v35  ;;  %v3174_v20 = vld [vmem:[#allocation3 + $0x2] sm:$0xff] }
 0x3e6   : > { %3205 = vst.msk [vmem:[#allocation5 + $0x260] sm:$0xff] %vm544_vm7, %v7434_v56  ;;  %v7484_v29 = vld [vmem:[#allocation3 + $0x111] sm:$0xff]  ;;  %v3563_v1 = vld [vmem:[#allocation3 + $0x62] sm:$0xff] }
 0x3e7   : > { %3321 = vst.msk [vmem:[#allocation5 + $0x88] sm:$0xff] %vm544_vm7, %v3305_v48  ;;  %v3315_v17 = vld [vmem:[#allocation3 + $0x101] sm:$0xff]  ;;  %v3316_v40 = vld [vmem:[#allocation3 + $0x111] sm:$0xff] }
 0x3e8   : > { %3135 = vrot.lane.b32.xlu0 %v7439_v58, %s8029_s0  ;;  %3455 = vst.msk [vmem:[#allocation5 + $0x158] sm:$0xff] %vm544_vm7, %v3439_v15  ;;  %4082 = vmatpush.bf16.msrb.mxu2 %v4814_v45  ;;  %v3443_v49 = vld [vmem:[#allocation3 + $0x100] sm:$0xff]  ;;  %v3470_v48 = vld [vmem:[#allocation3 + $0x91] sm:$0xff] }
 0x3e9   : > { %3450 = vst.msk [vmem:[#allocation5 + $0x90] sm:$0xff] %vm544_vm7, %v3434_v39  ;;  %v3182_v41 = vld [vmem:[#allocation3 + $0xa2] sm:$0xff]  ;;  %v4826_v45 = vld [vmem:[%s7975_s10 + $0xa0] sm:$0xff] }
 0x3ea   : > { %3322 = vst.msk [vmem:[#allocation5 + $0xb0] sm:$0xff] %vm544_vm7, %v3306_v30  ;;  %v7542_v8 = vld [vmem:[#allocation3 + $0x121] sm:$0xff]  ;;  %v4841_v30 = vld [vmem:[%s7975_s10 + $0x118] sm:$0xff] }
 0x3eb   : > { %3329 = vst.msk [vmem:[#allocation5 + $0x1c8] sm:$0xff] %vm544_vm7, %v3313_v13  ;;  %v3341_v6 = vld [vmem:[#allocation3 + $0x82] sm:$0xff] }
 0x3ec   : > { %3137 = vrot.lane.b32.xlu2 %v7455_v12, %s8029_s0  ;;  %3451 = vst.msk [vmem:[#allocation5 + $0xb8] sm:$0xff] %vm544_vm7, %v3435_v25  ;;  %v4807_v14 = vld [vmem:[%s7975_s10 + $0x8] sm:$0xff] }
 0x3ed   : > { %3111 = vrot.lane.b32.xlu1 %v7152_v32, %s8029_s0  ;;  %v3221_v32 = vld [vmem:[#allocation3 + $0x120] sm:$0xff]  ;;  %3452 = vst.msk [vmem:[#allocation5 + $0xe0] sm:$0xff] %vm544_vm7, %v3436_v9 }
 0x3ee   : > { %3330 = vst.msk [vmem:[#allocation5 + $0x1f0] sm:$0xff] %vm544_vm7, %v3314_v57 }
 0x3ef   : > { %3325 = vst.msk [vmem:[#allocation5 + $0x128] sm:$0xff] %vm544_vm7, %v7476_v46 }
 0x3f0   : > { %3109 = vrot.lane.b32.xlu0 %v3077_v26, %s8029_s0  ;;  %3453 = vst.msk [vmem:[#allocation5 + $0x108] sm:$0xff] %vm544_vm7, %v3437_v34 }
 0x3f1   : > { %3460 = vst.msk [vmem:[#allocation5 + $0x220] sm:$0xff] %vm544_vm7, %v3220_v35 }
 0x3f2   : > { %3326 = vst.msk [vmem:[#allocation5 + $0x150] sm:$0xff] %vm544_vm7, %v3310_v47 }
 0x3f3   : > { %3327 = vst.msk [vmem:[#allocation5 + $0x178] sm:$0xff] %vm544_vm7, %v3311_v4 }
 0x3f4   : > { %3268 = vrot.lane.b32.xlu2 %v3221_v32, %s8029_s0  ;;  %3461 = vst.msk [vmem:[#allocation5 + $0x248] sm:$0xff] %vm544_vm7, %v3445_v7 }
 0x3f5   : > { %3266 = vrot.lane.b32.xlu1 %v3220_v35, %s8029_s0  ;;  %3456 = vst.msk [vmem:[#allocation5 + $0x180] sm:$0xff] %vm544_vm7, %v3440_v61  ;;  %v3566_v35 = vld [vmem:[#allocation3 + $0x92] sm:$0xff] }
 0x3f6   : > { %3328 = vst.msk [vmem:[#allocation5 + $0x1a0] sm:$0xff] %vm544_vm7, %v3312_v53 }
 0x3f7   : > { %3190 = vst.msk [vmem:[#allocation5 + $0x8] sm:$0xff] %vm544_vm7, %v3174_v20  ;;  %v4837_v20 = vld [vmem:[%s7975_s10 + $0xf8] sm:$0xff] }
 0x3f8   : > { %3139 = vrot.lane.b32.xlu0 %v7484_v29, %s8029_s0  ;;  %3457 = vst.msk [vmem:[#allocation5 + $0x1a8] sm:$0xff] %vm544_vm7, %v3441_v38 }
 0x3f9   : > { %3458 = vst.msk [vmem:[#allocation5 + $0x1d0] sm:$0xff] %vm544_vm7, %v3442_v42 }
 0x3fa   : > { %3579 = vst.msk [vmem:[#allocation5 + $0xc0] sm:$0xff] %vm544_vm7, %v3563_v1 }
 0x3fb   : > { %3580 = vst.msk [vmem:[#allocation5 + $0xe8] sm:$0xff] %vm544_vm7, %v7295_v11 }
 0x3fc   : > { %3366 = vrot.lane.b32.xlu2 %v7258_v59, %s8029_s0  ;;  %v4810_v59 = vld [vmem:[%s7975_s10 + $0x20] sm:$0xff]  ;;  %3331 = vst.msk [vmem:[#allocation5 + $0x218] sm:$0xff] %vm544_vm7, %v3315_v17 }
 0x3fd   : > { %3115 = vrot.lane.b32.xlu1 %v7450_v55, %s8029_s0  ;;  %4851 = vmatpush.bf16.msra.mxu3 %v4810_v59  ;;  %3459 = vst.msk [vmem:[#allocation5 + $0x1f8] sm:$0xff] %vm544_vm7, %v3443_v49  ;;  %v4836_v49 = vld [vmem:[%s7975_s10 + $0xf0] sm:$0xff] }
 0x3fe   : > { %4029 = vmatpush.bf16.msrb.mxu1 %v4810_v59  ;;  %3198 = vst.msk [vmem:[#allocation5 + $0x148] sm:$0xff] %vm544_vm7, %v3182_v41  ;;  %v4827_v59 = vld [vmem:[%s7975_s10 + $0xa8] sm:$0xff] }
 0x3ff   : > { %3332 = vst.msk [vmem:[#allocation5 + $0x240] sm:$0xff] %vm544_vm7, %v3316_v40  ;;  %v4835_v41 = vld [vmem:[%s7975_s10 + $0xe8] sm:$0xff] }
 0x400   : > { %3113 = vrot.lane.b32.xlu0 %v7441_v3, %s8029_s0  ;;  %3333 = vst.msk [vmem:[#allocation5 + $0x268] sm:$0xff] %vm544_vm7, %v7542_v8 }
 0x401   : > { %4852 = vmatpush.bf16.msra.mxu3 %v4809_v54  ;;  %3581 = vst.msk [vmem:[#allocation5 + $0x110] sm:$0xff] %vm544_vm7, %v3341_v6 }
 0x402   : > { %4030 = vmatpush.bf16.msrb.mxu1 %v4809_v54  ;;  %3582 = vst.msk [vmem:[#allocation5 + $0x138] sm:$0xff] %vm544_vm7, %v3566_v35  ;;  %v4824_v35 = vld [vmem:[%s7975_s10 + $0x90] sm:$0xff] }
 0x403   : > { %3583 = vst.msk [vmem:[#allocation5 + $0x160] sm:$0xff] %vm544_vm7, %v7395_v2 }
 0x404   : > { %3497 = vrot.lane.b32.xlu2 %v7450_v55, %s8029_s0  ;;  %3584 = vst.msk [vmem:[#allocation5 + $0x188] sm:$0xff] %vm544_vm7, %v7392_v63  ;;  %v3053_v55 = vld [vmem:[#allocation3 + $0xa0] sm:$0xff] }
 0x405   : > { %3495 = vrot.lane.b32.xlu1 %v7441_v3, %s8029_s0  ;;  %4853 = vmatpush.bf16.msra.mxu3 %v4808_v37  ;;  %3585 = vst.msk [vmem:[#allocation5 + $0x1b0] sm:$0xff] %vm544_vm7, %v7401_v5 }
 0x406   : > { %v3243_v16 = vpop.permute.xlu2 %3242  ;;  %4031 = vmatpush.bf16.msrb.mxu1 %v4808_v37  ;;  %3586 = vst.msk [vmem:[#allocation5 + $0x1d8] sm:$0xff] %vm544_vm7, %v7397_v27  ;;  %v3478_v37 = vld [vmem:[#allocation3 + $0x131] sm:$0xff] }
 0x407   : > { %3288 = vst.msk [vmem:[#allocation5 + $0x58] sm:$0xff] %vm3157_vm8, %v3243_v16 }
 0x408   : > { %3368 = vrot.lane.b32.xlu0 %v7265_v36, %s8029_s0  ;;  %v4843_v36 = vld [vmem:[%s7977_s12 + $0x8] sm:$0xff]  ;;  %3587 = vst.msk [vmem:[#allocation5 + $0x200] sm:$0xff] %vm544_vm7, %v7424_v52 }
 0x409   : > { %4329 = vmatpush.bf16.msra.mxu2 %v4843_v36  ;;  %4854 = vmatpush.bf16.msra.mxu3 %v4807_v14  ;;  %3588 = vst.msk [vmem:[#allocation5 + $0x228] sm:$0xff] %vm544_vm7, %v7434_v56 }
 0x40a   : > { %4032 = vmatpush.bf16.msrb.mxu1 %v4807_v14  ;;  %3069 = vst.msk [vmem:[#allocation5 + $0x140] sm:$0xff] %vm544_vm7, %v3053_v55  ;;  %v4834_v14 = vld [vmem:[%s7975_s10 + $0xe0] sm:$0xff] }
 0x40c   : > { %3499 = vrot.lane.b32.xlu2 %v7096_v0, %s8029_s0  ;;  %v4806_v0 = vld [vmem:[%s7975_s10] sm:$0xff] }
 0x40d   : > { %3372 = vrot.lane.b32.xlu1 %v7358_v24, %s8029_s0  ;;  %v7573_v24 = vld [vmem:[#allocation3 + $0x122] sm:$0xff]  ;;  %4855 = vmatpush.bf16.msra.mxu3 %v4806_v0 }
 0x40e   : > { %v3120_v3 = vpop.permute.xlu2 %3119  ;;  %4033 = vmatpush.bf16.msrb.mxu1 %v4806_v0  ;;  %3589 = vst.msk [vmem:[#allocation5 + $0x250] sm:$0xff] %vm544_vm7, %v7573_v24  ;;  %v3602_v34 = vld [vmem:[#allocation5 + $0x58] sm:$0xff] }
 0x40f   : > { %3163 = vst.msk [vmem:[#allocation5 + $0xc8] sm:$0xff] %vm3157_vm8, %v3120_v3 }
 0x410   : > { %3370 = vrot.lane.b32.xlu0 %v7293_v19, %s8029_s0  ;;  %v3574_v19 = vld [vmem:[#allocation3 + $0x132] sm:$0xff] }
 0x411   : > { %3590 = vst.msk [vmem:[#allocation5 + $0x278] sm:$0xff] %vm544_vm7, %v3574_v19  ;;  %4226 = vmatpush.bf16.msrb.mxu3 %v4841_v30  ;;  %v4839_v19 = vld [vmem:[%s7975_s10 + $0x108] sm:$0xff] }
 0x412   : > { %4173 = vmatpush.bf16.msra.mxu1 %v4837_v20 }
 0x414   : > { %3376 = vrot.lane.b32.xlu2 %v7360_v62, %s8029_s0 }
 0x415   : > { %3374 = vrot.lane.b32.xlu1 %v7315_v22, %s8029_s0 }
 0x416   : > { %v3122_v21 = vpop.permute.xlu2 %3121  ;;  %v3616_v9 = vld [vmem:[#allocation5 + $0xc8] sm:$0xff]  ;;  %4174 = vmatpush.bf16.msra.mxu1 %v4836_v49 }
 0x417   : > { %3164 = vst.msk [vmem:[#allocation5 + $0xf0] sm:$0xff] %vm3157_vm8, %v3122_v21 }
 0x418   : > { %3501 = vrot.lane.b32.xlu0 %v7082_v28, %s8029_s0 }
 0x41a   : > { %4175 = vmatpush.bf16.msra.mxu1 %v4835_v41 }
 0x41c   : > { %3378 = vrot.lane.b32.xlu2 %v7295_v11, %s8029_s0 }
 0x41d   : > { %3505 = vrot.lane.b32.xlu1 %v7251_v60, %s8029_s0 }
 0x41e   : > { %v3253_v62 = vpop.permute.xlu2 %3252  ;;  %v3621_v44 = vld [vmem:[#allocation5 + $0xf0] sm:$0xff]  ;;  %4176 = vmatpush.bf16.msra.mxu1 %v4834_v14 }
 0x41f   : > { %3293 = vst.msk [vmem:[#allocation5 + $0x120] sm:$0xff] %vm3157_vm8, %v3253_v62  ;;  %v3241_v22 = vpop.permute.xlu1 %3240  ;;  %v4823_v62 = vld [vmem:[%s7975_s10 + $0x88] sm:$0xff] }
 0x420   : > { %3503 = vrot.lane.b32.xlu0 %v7157_v33, %s8029_s0  ;;  %3287 = vst.msk [vmem:[#allocation5 + $0x30] sm:$0xff] %vm3157_vm8, %v3241_v22  ;;  %v4833_v22 = vld [vmem:[%s7975_s10 + $0xd8] sm:$0xff] }
 0x422   : > { %v3239_v28 = vpop.permute.xlu0 %3238  ;;  %4177 = vmatpush.bf16.msra.mxu1 %v4833_v22 }
 0x423   : > { %3286 = vst.msk [vmem:[#allocation5 + $0x8] sm:$0xff] %vm3157_vm8, %v3239_v28 }
 0x424   : > { %3509 = vrot.lane.b32.xlu2 %v3470_v48, %s8029_s0  ;;  %v3438_v48 = vld [vmem:[#allocation3 + $0x90] sm:$0xff] }
 0x425   : > { %3507 = vrot.lane.b32.xlu1 %v7476_v46, %s8029_s0  ;;  %3454 = vst.msk [vmem:[#allocation5 + $0x130] sm:$0xff] %vm544_vm7, %v3438_v48 }
 0x426   : > { %v3255_v60 = vpop.permute.xlu2 %3254  ;;  %v3627_v0 = vld [vmem:[#allocation5 + $0x120] sm:$0xff] }
 0x427   : > { %3294 = vst.msk [vmem:[#allocation5 + $0x148] sm:$0xff] %vm3157_vm8, %v3255_v60  ;;  %v3118_v11 = vpop.permute.xlu1 %3117  ;;  %v3597_v33 = vld [vmem:[#allocation5 + $0x30] sm:$0xff]  ;;  %v4822_v60 = vld [vmem:[%s7975_s10 + $0x80] sm:$0xff] }
 0x428   : > { %3380 = vrot.lane.b32.xlu0 %v3341_v6, %s8029_s0  ;;  %3162 = vst.msk [vmem:[#allocation5 + $0xa0] sm:$0xff] %vm3157_vm8, %v3118_v11  ;;  %v4832_v11 = vld [vmem:[%s7975_s10 + $0xd0] sm:$0xff] }
 0x429   : > { %4178 = vmatpush.bf16.msra.mxu1 %v4832_v11 }
 0x42a   : > { %v3245_v15 = vpop.permute.xlu0 %3244  ;;  %v3592_v39 = vld [vmem:[#allocation5 + $0x8] sm:$0xff] }
 0x42b   : > { %3289 = vst.msk [vmem:[#allocation5 + $0x80] sm:$0xff] %vm3157_vm8, %v3245_v15  ;;  %v3672_v26 = vpack.c.bf16 %v3597_v33, %v3592_v39 }
 0x42c   : > { %3511 = vrot.lane.b32.xlu2 %v7373_v10, %s8029_s0 }
 0x42d   : > { %4083 = vmatmul.bf16.vlgmr.msrb.gmra.mxu2 %v3672_v26  ;;  %3384 = vrot.lane.b32.xlu1 %v7395_v2, %s8029_s0  ;;  %v4831_v26 = vld [vmem:[%s7975_s10 + $0xc8] sm:$0xff] }
 0x42e   : > { %v3132_v13 = vpop.permute.xlu2 %3131  ;;  %4179 = vmatpush.bf16.msra.mxu1 %v4831_v26 }
 0x42f   : > { %3169 = vst.msk [vmem:[#allocation5 + $0x1b8] sm:$0xff] %vm3157_vm8, %v3132_v13  ;;  %v3249_v25 = vpop.permute.xlu1 %3248  ;;  %v3611_v23 = vld [vmem:[#allocation5 + $0xa0] sm:$0xff] }
 0x430   : > { %3382 = vrot.lane.b32.xlu0 %v7384_v31, %s8029_s0  ;;  %3291 = vst.msk [vmem:[#allocation5 + $0xd0] sm:$0xff] %vm3157_vm8, %v3249_v25  ;;  %v3681_v10 = vpack.c.bf16 %v3616_v9, %v3611_v23  ;;  %v4830_v9 = vld [vmem:[%s7975_s10 + $0xc0] sm:$0xff] }
 0x432   : > { %v3247_v32 = vpop.permute.xlu0 %3246  ;;  %4044 = vmatmul.bf16.vlgmr.msra.gmra.mxu3 %v3681_v10  ;;  %v3607_v31 = vld [vmem:[#allocation5 + $0x80] sm:$0xff]  ;;  %4180 = vmatpush.bf16.msra.mxu1 %v4830_v9 }
 0x433   : > { %3290 = vst.msk [vmem:[#allocation5 + $0xa8] sm:$0xff] %vm3157_vm8, %v3247_v32  ;;  %v3677_v47 = vpack.c.bf16 %v3607_v31, %v3602_v34 }
 0x434   : > { %3388 = vrot.lane.b32.xlu2 %v7401_v5, %s8029_s0 }
 0x435   : > { %3386 = vrot.lane.b32.xlu1 %v7392_v63, %s8029_s0 }
 0x436   : > { %v3134_v2 = vpop.permute.xlu2 %3133  ;;  %v3646_v15 = vld [vmem:[#allocation5 + $0x1b8] sm:$0xff] }
 0x437   : > { %3170 = vst.msk [vmem:[#allocation5 + $0x1e0] sm:$0xff] %vm3157_vm8, %v3134_v2  ;;  %v3251_v57 = vpop.permute.xlu1 %3250  ;;  %v3617_v61 = vld [vmem:[#allocation5 + $0xd0] sm:$0xff]  ;;  %v3632_v2 = vld [vmem:[#allocation5 + $0x148] sm:$0xff] }
 0x438   : > { %3513 = vrot.lane.b32.xlu0 %v7367_v43, %s8029_s0  ;;  %3292 = vst.msk [vmem:[#allocation5 + $0xf8] sm:$0xff] %vm3157_vm8, %v3251_v57  ;;  %v3045_v43 = vld [vmem:[#allocation3] sm:$0xff] }
 0x439   : > { %3061 = vst.msk [vmem:[#allocation5] sm:$0xff] %vm544_vm7, %v3045_v43 }
 0x43a   : > { %v3124_v46 = vpop.permute.xlu0 %3123 }
 0x43b   : > { %3165 = vst.msk [vmem:[#allocation5 + $0x118] sm:$0xff] %vm3157_vm8, %v3124_v46  ;;  %v4838_v46 = vld [vmem:[%s7975_s10 + $0x100] sm:$0xff] }
 0x43c   : > { %3390 = vrot.lane.b32.xlu2 %v7397_v27, %s8029_s0 }
 0x43d   : > { %4088 = vmatmul.bf16.gmra.mxu2 %v3677_v47  ;;  %3517 = vrot.lane.b32.xlu1 %v7439_v58, %s8029_s0  ;;  %v4829_v58 = vld [vmem:[%s7975_s10 + $0xb8] sm:$0xff] }
 0x43e   : > { %v3265_v63 = vpop.permute.xlu2 %3264  ;;  %4124 = vmatpush.bf16.msra.mxu0 %v4829_v58  ;;  %v3651_v43 = vld [vmem:[#allocation5 + $0x1e0] sm:$0xff] }
 0x43f   : > { %3299 = vst.msk [vmem:[#allocation5 + $0x210] sm:$0xff] %vm3157_vm8, %v3265_v63  ;;  %v3128_v5 = vpop.permute.xlu1 %3127  ;;  %v3622_v36 = vld [vmem:[#allocation5 + $0xf8] sm:$0xff] }
 0x440   : > { %3515 = vrot.lane.b32.xlu0 %v7405_v50, %s8029_s0  ;;  %3167 = vst.msk [vmem:[#allocation5 + $0x168] sm:$0xff] %vm3157_vm8, %v3128_v5  ;;  %v4840_v50 = vld [vmem:[%s7975_s10 + $0x110] sm:$0xff] }
 0x441   : > { %4227 = vmatpush.bf16.msrb.mxu3 %v4840_v50 }
 0x442   : > { %v3126_v18 = vpop.permute.xlu0 %3125  ;;  %v3626_v4 = vld [vmem:[#allocation5 + $0x118] sm:$0xff] }
 0x443   : > { %3166 = vst.msk [vmem:[#allocation5 + $0x140] sm:$0xff] %vm3157_vm8, %v3126_v18  ;;  %v3686_v27 = vpack.c.bf16 %v3626_v4, %v3621_v44 }
 0x444   : > { %3521 = vrot.lane.b32.xlu2 %v7484_v29, %s8029_s0  ;;  %v4828_v29 = vld [vmem:[%s7975_s10 + $0xb0] sm:$0xff] }
 0x445   : > { %4049 = vmatmul.bf16.gmra.mxu3 %v3686_v27  ;;  %3519 = vrot.lane.b32.xlu1 %v7455_v12, %s8029_s0  ;;  %v3612_v12 = vld [vmem:[#allocation5 + $0xa8] sm:$0xff] }
 0x446   : > { %v3138_v51 = vpop.permute.xlu2 %3137  ;;  %v3682_v38 = vpack.c.bf16 %v3617_v61, %v3612_v12  ;;  %4125 = vmatpush.bf16.msra.mxu0 %v4828_v29  ;;  %4228 = vmatpush.bf16.msrb.mxu3 %v4839_v19 }
 0x447   : > { %3172 = vst.msk [vmem:[#allocation5 + $0x230] sm:$0xff] %vm3157_vm8, %v3138_v51  ;;  %v3130_v7 = vpop.permute.xlu1 %3129  ;;  %v3636_v17 = vld [vmem:[#allocation5 + $0x168] sm:$0xff] }
 0x448   : > { %3392 = vrot.lane.b32.xlu0 %v7424_v52, %s8029_s0  ;;  %3168 = vst.msk [vmem:[#allocation5 + $0x190] sm:$0xff] %vm3157_vm8, %v3130_v7  ;;  %v4842_v52 = vld [vmem:[%s7977_s12] sm:$0xff] }
 0x449   : > { %4330 = vmatpush.bf16.msra.mxu2 %v4842_v52 }
 0x44a   : > { %v3257_v53 = vpop.permute.xlu0 %3256  ;;  %4126 = vmatpush.bf16.msra.mxu0 %v4827_v59  ;;  %v3631_v54 = vld [vmem:[#allocation5 + $0x140] sm:$0xff]  ;;  %4229 = vmatpush.bf16.msrb.mxu3 %v4838_v46 }
 0x44b   : > { %3295 = vst.msk [vmem:[#allocation5 + $0x170] sm:$0xff] %vm3157_vm8, %v3257_v53  ;;  %v3691_v40 = vpack.c.bf16 %v3636_v17, %v3631_v54 }
 0x44c   : > { %3523 = vrot.lane.b32.xlu2 %v7542_v8, %s8029_s0 }
 0x44d   : > { %4093 = vmatmul.bf16.gmra.mxu2 %v3682_v38  ;;  %3396 = vrot.lane.b32.xlu1 %v7573_v24, %s8029_s0  ;;  %v3687_v24 = vpack.c.bf16 %v3627_v0, %v3622_v36  ;;  %v3595_v36 = vld [vmem:[#allocation5 + $0x20] sm:$0xff]  ;;  %v3600_v0 = vld [vmem:[#allocation5 + $0x48] sm:$0xff] }
 0x44e   : > { %v3269_v42 = vpop.permute.xlu2 %3268  ;;  %4127 = vmatpush.bf16.msra.mxu0 %v4826_v45  ;;  %v3661_v59 = vld [vmem:[#allocation5 + $0x230] sm:$0xff] }
 0x44f   : > { %3301 = vst.msk [vmem:[#allocation5 + $0x260] sm:$0xff] %vm3157_vm8, %v3269_v42  ;;  %v3261_v1 = vpop.permute.xlu1 %3260  ;;  %v3641_v28 = vld [vmem:[#allocation5 + $0x190] sm:$0xff] }
 0x450   : > { %3394 = vrot.lane.b32.xlu0 %v7434_v56, %s8029_s0  ;;  %3297 = vst.msk [vmem:[#allocation5 + $0x1c0] sm:$0xff] %vm3157_vm8, %v3261_v1  ;;  %v4825_v56 = vld [vmem:[%s7975_s10 + $0x98] sm:$0xff]  ;;  %v3696_v39 = vpack.c.bf16 %v3646_v15, %v3641_v28 }
 0x452   : > { %v3259_v16 = vpop.permute.xlu0 %3258  ;;  %4128 = vmatpush.bf16.msra.mxu0 %v4825_v56  ;;  %v3637_v23 = vld [vmem:[#allocation5 + $0x170] sm:$0xff] }
 0x453   : > { %3296 = vst.msk [vmem:[#allocation5 + $0x198] sm:$0xff] %vm3157_vm8, %v3259_v16  ;;  %v3692_v31 = vpack.c.bf16 %v3637_v23, %v3632_v2 }
 0x455   : > { %4054 = vmatmul.bf16.gmra.mxu3 %v3691_v40 }
 0x456   : > { %v3367_v8 = vpop.permute.xlu2 %3366  ;;  %4129 = vmatpush.bf16.msra.mxu0 %v4824_v35 }
 0x457   : > { %v3263_v6 = vpop.permute.xlu1 %3262  ;;  %3414 = vst.msk [vmem:[#allocation5 + $0x10] sm:$0xff] %vm3157_vm8, %v3367_v8  ;;  %v3647_v58 = vld [vmem:[#allocation5 + $0x1c0] sm:$0xff] }
 0x458   : > { %3525 = vrot.lane.b32.xlu0 %v3478_v37, %s8029_s0  ;;  %3298 = vst.msk [vmem:[#allocation5 + $0x1e8] sm:$0xff] %vm3157_vm8, %v3263_v6  ;;  %v3657_v37 = vld [vmem:[#allocation5 + $0x210] sm:$0xff] }
 0x45a   : > { %v3136_v3 = vpop.permute.xlu0 %3135  ;;  %4130 = vmatpush.bf16.msra.mxu0 %v4823_v62  ;;  %v3642_v50 = vld [vmem:[#allocation5 + $0x198] sm:$0xff] }
 0x45b   : > { %3171 = vst.msk [vmem:[#allocation5 + $0x208] sm:$0xff] %vm3157_vm8, %v3136_v3  ;;  %v3697_v12 = vpack.c.bf16 %v3647_v58, %v3642_v50  ;;  %v3615_v50 = vld [vmem:[#allocation5 + $0xc0] sm:$0xff]  ;;  %v3620_v58 = vld [vmem:[#allocation5 + $0xe8] sm:$0xff] }
 0x45d   : > { %4098 = vmatmul.bf16.gmra.mxu2 %v3687_v24 }
 0x45e   : > { %v3498_v21 = vpop.permute.xlu2 %3497  ;;  %4131 = vmatpush.bf16.msra.mxu0 %v4822_v60  ;;  %v3593_v20 = vld [vmem:[#allocation5 + $0x10] sm:$0xff]  ;;  %v3667_v60 = vld [vmem:[#allocation5 + $0x260] sm:$0xff] }
 0x45f   : > { %3544 = vst.msk [vmem:[#allocation5 + $0x40] sm:$0xff] %vm3157_vm8, %v3498_v21  ;;  %v3112_v55 = vpop.permute.xlu1 %3111  ;;  %v3652_v49 = vld [vmem:[#allocation5 + $0x1e8] sm:$0xff]  ;;  %v3675_v21 = vpack.c.bf16 %v3600_v0, %v3595_v36  ;;  %v5051_v0 = vld [vmem:[%s5277_s27 + $0x20] sm:$0xff] }
 0x460   : > { %3159 = vst.msk [vmem:[#allocation5 + $0x28] sm:$0xff] %vm3157_vm8, %v3112_v55  ;;  %v3702_v41 = vpack.c.bf16 %v3657_v37, %v3652_v49 }
 0x462   : > { %v3110_v33 = vpop.permute.xlu0 %3109  ;;  %v3656_v63 = vld [vmem:[#allocation5 + $0x208] sm:$0xff] }
 0x463   : > { %3158 = vst.msk [vmem:[#allocation5] sm:$0xff] %vm3157_vm8, %v3110_v33  ;;  %v3701_v18 = vpack.c.bf16 %v3656_v63, %v3651_v43 }
 0x465   : > { %4059 = vmatmul.bf16.gmra.mxu3 %v3696_v39 }
 0x466   : > { %v3500_v30 = vpop.permute.xlu2 %3499  ;;  %v3599_v56 = vld [vmem:[#allocation5 + $0x40] sm:$0xff] }
 0x467   : > { %3545 = vst.msk [vmem:[#allocation5 + $0x68] sm:$0xff] %vm3157_vm8, %v3500_v30  ;;  %v3267_v13 = vpop.permute.xlu1 %3266  ;;  %v3596_v25 = vld [vmem:[#allocation5 + $0x28] sm:$0xff] }
 0x468   : > { %3300 = vst.msk [vmem:[#allocation5 + $0x238] sm:$0xff] %vm3157_vm8, %v3267_v13  ;;  %v3605_v13 = vld [vmem:[#allocation5 + $0x70] sm:$0xff] }
 0x46a   : > { %v3140_v10 = vpop.permute.xlu0 %3139  ;;  %v3591_v32 = vld [vmem:[#allocation5] sm:$0xff] }
 0x46b   : > { %3173 = vst.msk [vmem:[#allocation5 + $0x258] sm:$0xff] %vm3157_vm8, %v3140_v10  ;;  %v3671_v57 = vpack.c.bf16 %v3596_v25, %v3591_v32  ;;  %v3610_v25 = vld [vmem:[#allocation5 + $0x98] sm:$0xff] }
 0x46c   : > { %v3680_v32 = vpack.c.bf16 %v3610_v25, %v3605_v13 }
 0x46d   : > { %4034 = vmatmul.bf16.vlgmr.msrb.gmra.mxu1 %v3671_v57  ;;  %4103 = vmatmul.bf16.gmra.mxu2 %v3692_v31 }
 0x46e   : > { %v3377_v34 = vpop.permute.xlu2 %3376  ;;  %v3604_v11 = vld [vmem:[#allocation5 + $0x68] sm:$0xff] }
 0x46f   : > { %3419 = vst.msk [vmem:[#allocation5 + $0xd8] sm:$0xff] %vm3157_vm8, %v3377_v34  ;;  %v3116_v47 = vpop.permute.xlu1 %3115  ;;  %v3662_v55 = vld [vmem:[#allocation5 + $0x238] sm:$0xff] }
 0x470   : > { %3161 = vst.msk [vmem:[#allocation5 + $0x78] sm:$0xff] %vm3157_vm8, %v3116_v47  ;;  %v3707_v33 = vpack.c.bf16 %v3667_v60, %v3662_v55  ;;  %v5047_v34 = vld [vmem:[%s5277_s27] sm:$0xff]  ;;  %v5048_v47 = vld [vmem:[%s5277_s27 + $0x8] sm:$0xff] }
 0x471   : > { %v4271_v63 = vpack.c.bf16 %v5048_v47, %v5047_v34 }
 0x472   : > { %v3114_v5 = vpop.permute.xlu0 %3113  ;;  %v3666_v38 = vld [vmem:[#allocation5 + $0x258] sm:$0xff] }
 0x473   : > { %3160 = vst.msk [vmem:[#allocation5 + $0x50] sm:$0xff] %vm3157_vm8, %v3114_v5  ;;  %v3706_v1 = vpack.c.bf16 %v3666_v38, %v3661_v59  ;;  %v3446_v5 = vld [vmem:[#allocation3 + $0x130] sm:$0xff] }
 0x474   : > { %3462 = vst.msk [vmem:[#allocation5 + $0x270] sm:$0xff] %vm544_vm7, %v3446_v5 }
 0x475   : > { %4064 = vmatmul.bf16.gmra.mxu3 %v3701_v18 }
 0x476   : > { %v3379_v44 = vpop.permute.xlu2 %3378  ;;  %v3618_v9 = vld [vmem:[#allocation5 + $0xd8] sm:$0xff] }
 0x477   : > { %3420 = vst.msk [vmem:[#allocation5 + $0x100] sm:$0xff] %vm3157_vm8, %v3379_v44  ;;  %v3496_v4 = vpop.permute.xlu1 %3495  ;;  %v3606_v27 = vld [vmem:[#allocation5 + $0x78] sm:$0xff] }
 0x478   : > { %3543 = vst.msk [vmem:[#allocation5 + $0x18] sm:$0xff] %vm3157_vm8, %v3496_v4 }
 0x47a   : > { %v3369_v51 = vpop.permute.xlu0 %3368  ;;  %v3601_v7 = vld [vmem:[#allocation5 + $0x50] sm:$0xff] }
 0x47b   : > { %3415 = vst.msk [vmem:[#allocation5 + $0x38] sm:$0xff] %vm3157_vm8, %v3369_v51  ;;  %v3676_v29 = vpack.c.bf16 %v3606_v27, %v3601_v7 }
 0x47d   : > { %4039 = vmatmul.bf16.gmra.mxu1 %v3676_v29  ;;  %4108 = vmatmul.bf16.gmra.mxu2 %v3697_v12  ;;  %v3685_v12 = vpack.c.bf16 %v3620_v58, %v3615_v50 }
 0x47e   : > { %v3510_v61 = vpop.permute.xlu2 %3509  ;;  %v3623_v7 = vld [vmem:[#allocation5 + $0x100] sm:$0xff] }
 0x47f   : > { %3550 = vst.msk [vmem:[#allocation5 + $0x130] sm:$0xff] %vm3157_vm8, %v3510_v61  ;;  %v3373_v53 = vpop.permute.xlu1 %3372  ;;  %v3594_v16 = vld [vmem:[#allocation5 + $0x18] sm:$0xff] }
 0x480   : > { %3417 = vst.msk [vmem:[#allocation5 + $0x88] sm:$0xff] %vm3157_vm8, %v3373_v53  ;;  %v3674_v8 = vpack.c.bf16 %v3599_v56, %v3594_v16  ;;  %v3625_v16 = vld [vmem:[#allocation5 + $0x110] sm:$0xff] }
 0x482   : > { %v3371_v52 = vpop.permute.xlu0 %3370  ;;  %v3598_v42 = vld [vmem:[#allocation5 + $0x38] sm:$0xff] }
 0x483   : > { %3416 = vst.msk [vmem:[#allocation5 + $0x60] sm:$0xff] %vm3157_vm8, %v3371_v52  ;;  %v3673_v45 = vpack.c.bf16 %v3598_v42, %v3593_v20  ;;  %v5049_v20 = vld [vmem:[%s5277_s27 + $0x10] sm:$0xff]  ;;  %v5050_v42 = vld [vmem:[%s5277_s27 + $0x18] sm:$0xff] }
 0x485   : > { %4069 = vmatmul.bf16.gmra.mxu3 %v3706_v1  ;;  %4132 = vmatmul.bf16.vlgmr.msra.gmra.mxu0 %v3673_v45  ;;  %v4272_v1 = vpack.c.bf16 %v5050_v42, %v5049_v20 }
 0x486   : > { %v3512_v54 = vpop.permute.xlu2 %3511  ;;  %v3629_v59 = vld [vmem:[#allocation5 + $0x130] sm:$0xff] }
 0x487   : > { %3551 = vst.msk [vmem:[#allocation5 + $0x158] sm:$0xff] %vm3157_vm8, %v3512_v54  ;;  %v3375_v17 = vpop.permute.xlu1 %3374  ;;  %v3608_v3 = vld [vmem:[#allocation5 + $0x88] sm:$0xff] }
 0x488   : > { %3418 = vst.msk [vmem:[#allocation5 + $0xb0] sm:$0xff] %vm3157_vm8, %v3375_v17 }
 0x48a   : > { %v3502_v40 = vpop.permute.xlu0 %3501  ;;  %v3603_v14 = vld [vmem:[#allocation5 + $0x60] sm:$0xff] }
 0x48b   : > { %3546 = vst.msk [vmem:[#allocation5 + $0x90] sm:$0xff] %vm3157_vm8, %v3502_v40  ;;  %v3678_v19 = vpack.c.bf16 %v3608_v3, %v3603_v14 }
 0x48d   : > { %4113 = vmatmul.bf16.gmra.mxu2 %v3702_v41  ;;  %4181 = vmatmul.bf16.vlgmr.msra.gmra.mxu1 %v3674_v8  ;;  %v3630_v41 = vld [vmem:[#allocation5 + $0x138] sm:$0xff] }
 0x48e   : > { %v3389_v6 = vpop.permute.xlu2 %3388 }
 0x48f   : > { %3425 = vst.msk [vmem:[#allocation5 + $0x1c8] sm:$0xff] %vm3157_vm8, %v3389_v6  ;;  %v3506_v35 = vpop.permute.xlu1 %3505  ;;  %v3613_v30 = vld [vmem:[#allocation5 + $0xb0] sm:$0xff] }
 0x490   : > { %3548 = vst.msk [vmem:[#allocation5 + $0xe0] sm:$0xff] %vm3157_vm8, %v3506_v35  ;;  %v3683_v10 = vpack.c.bf16 %v3618_v9, %v3613_v30  ;;  %v3690_v35 = vpack.c.bf16 %v3630_v41, %v3625_v16  ;;  %v3660_v41 = vld [vmem:[#allocation5 + $0x228] sm:$0xff] }
 0x492   : > { %v3504_v24 = vpop.permute.xlu0 %3503  ;;  %v3609_v48 = vld [vmem:[#allocation5 + $0x90] sm:$0xff] }
 0x493   : > { %3547 = vst.msk [vmem:[#allocation5 + $0xb8] sm:$0xff] %vm3157_vm8, %v3504_v24  ;;  %v3679_v15 = vpack.c.bf16 %v3609_v48, %v3604_v11  ;;  %v5052_v24 = vld [vmem:[%s5277_s27 + $0x28] sm:$0xff] }
 0x495   : > { %4137 = vmatmul.bf16.gmra.mxu0 %v3678_v19  ;;  %4757 = vmatmul.msk.bf16.vlgmr.msrb.gmra.mxu3 %vm544_vm7, %v3675_v21  ;;  %v4273_v19 = vpack.c.bf16 %v5052_v24, %v5051_v0 }
 0x496   : > { %v3391_v62 = vpop.permute.xlu2 %3390 }
 0x497   : > { %3426 = vst.msk [vmem:[#allocation5 + $0x1f0] sm:$0xff] %vm3157_vm8, %v3391_v62  ;;  %v3508_v22 = vpop.permute.xlu1 %3507  ;;  %v3619_v46 = vld [vmem:[#allocation5 + $0xe0] sm:$0xff]  ;;  %v3634_v62 = vld [vmem:[#allocation5 + $0x158] sm:$0xff] }
 0x498   : > { %3549 = vst.msk [vmem:[#allocation5 + $0x108] sm:$0xff] %vm3157_vm8, %v3508_v22  ;;  %v7782_v22 = vld [vmem:[%s7976_s11] ss:$0 sm:$0xff] }
 0x49a   : > { %v3381_v28 = vpop.permute.xlu0 %3380  ;;  %v3614_v31 = vld [vmem:[#allocation5 + $0xb8] sm:$0xff] }
 0x49b   : > { %3421 = vst.msk [vmem:[#allocation5 + $0x128] sm:$0xff] %vm3157_vm8, %v3381_v28  ;;  %v3684_v18 = vpack.c.bf16 %v3619_v46, %v3614_v31  ;;  %v5054_v31 = vld [vmem:[%s5277_s27 + $0x38] sm:$0xff] }
 0x49d   : > { %4118 = vmatmul.bf16.gmra.mxu2 %v3707_v33  ;;  %4186 = vmatmul.bf16.gmra.mxu1 %v3679_v15  ;;  %v3635_v33 = vld [vmem:[#allocation5 + $0x160] sm:$0xff]  ;;  %v3640_v15 = vld [vmem:[#allocation5 + $0x188] sm:$0xff] }
 0x49e   : > { %v3522_v39 = vpop.permute.xlu2 %3521  ;;  %v3695_v13 = vpack.c.bf16 %v3640_v15, %v3635_v33  ;;  %v3653_v50 = vld [vmem:[#allocation5 + $0x1f0] sm:$0xff] }
 0x49f   : > { %3556 = vst.msk [vmem:[#allocation5 + $0x220] sm:$0xff] %vm3157_vm8, %v3522_v39  ;;  %v3385_v26 = vpop.permute.xlu1 %3384  ;;  %v3624_v52 = vld [vmem:[#allocation5 + $0x108] sm:$0xff] }
 0x4a0   : > { %3423 = vst.msk [vmem:[#allocation5 + $0x178] sm:$0xff] %vm3157_vm8, %v3385_v26  ;;  %v3689_v54 = vpack.c.bf16 %v3629_v59, %v3624_v52  ;;  %v3648_v26 = vld [vmem:[#allocation5 + $0x1c8] sm:$0xff]  ;;  %v5055_v52 = vld [vmem:[%s5277_s27 + $0x40] sm:$0xff]  ;;  %v5056_v59 = vld [vmem:[%s5277_s27 + $0x48] sm:$0xff] }
 0x4a1   : > { %v4275_v20 = vpack.c.bf16 %v5056_v59, %v5055_v52  ;;  %v5061_v52 = vld [vmem:[%s5277_s27 + $0x70] sm:$0xff]  ;;  %v5062_v59 = vld [vmem:[%s5277_s27 + $0x78] sm:$0xff] }
 0x4a2   : > { %v3383_v23 = vpop.permute.xlu0 %3382  ;;  %v3628_v27 = vld [vmem:[#allocation5 + $0x128] sm:$0xff] }
 0x4a3   : > { %3422 = vst.msk [vmem:[#allocation5 + $0x150] sm:$0xff] %vm3157_vm8, %v3383_v23  ;;  %v3688_v29 = vpack.c.bf16 %v3628_v27, %v3623_v7 }
 0x4a5   : > { %4142 = vmatmul.bf16.gmra.mxu0 %v3683_v10  ;;  %4758 = vmatmul.msk.bf16.gmra.mxu3 %vm544_vm7, %v3680_v32 }
 0x4a6   : > { %v3524_v2 = vpop.permute.xlu2 %3523 }
 0x4a7   : > { %3557 = vst.msk [vmem:[#allocation5 + $0x248] sm:$0xff] %vm3157_vm8, %v3524_v2  ;;  %v3387_v57 = vpop.permute.xlu1 %3386  ;;  %v3638_v56 = vld [vmem:[#allocation5 + $0x178] sm:$0xff] }
 0x4a8   : > { %3424 = vst.msk [vmem:[#allocation5 + $0x1a0] sm:$0xff] %vm3157_vm8, %v3387_v57  ;;  %v5053_v57 = vld [vmem:[%s5277_s27 + $0x30] sm:$0xff] }
 0x4a9   : > { %v4274_v46 = vpack.c.bf16 %v5054_v31, %v5053_v57 }
 0x4aa   : > { %v3514_v43 = vpop.permute.xlu0 %3513  ;;  %v3633_v37 = vld [vmem:[#allocation5 + $0x150] sm:$0xff] }
 0x4ab   : > { %3552 = vst.msk [vmem:[#allocation5 + $0x180] sm:$0xff] %vm3157_vm8, %v3514_v43  ;;  %v3693_v6 = vpack.c.bf16 %v3638_v56, %v3633_v37 }
 0x4ad   : > { %4191 = vmatmul.bf16.gmra.mxu1 %v3684_v18  ;;  %4773 = vmatmul.msk.bf16.vlgmr.msra.gmra.mxu2 %vm8081_vm10, %v4271_v63  ;;  %v3645_v18 = vld [vmem:[#allocation5 + $0x1b0] sm:$0xff] }
 0x4af   : > { %v3518_v44 = vpop.permute.xlu1 %3517  ;;  %v3643_v11 = vld [vmem:[#allocation5 + $0x1a0] sm:$0xff] }
 0x4b0   : > { %v7758_v4 = vpop.f32.mrf.mxu2  ;;  %3554 = vst.msk [vmem:[#allocation5 + $0x1d0] sm:$0xff] %vm3157_vm8, %v3518_v44  ;;  %v3698_v30 = vpack.c.bf16 %v3648_v26, %v3643_v11  ;;  %v3650_v44 = vld [vmem:[#allocation5 + $0x1d8] sm:$0xff] }
 0x4b2   : > { %v3516_v51 = vpop.permute.xlu0 %3515  ;;  %v3639_v3 = vld [vmem:[#allocation5 + $0x180] sm:$0xff] }
 0x4b3   : > { %3553 = vst.msk [vmem:[#allocation5 + $0x1a8] sm:$0xff] %vm3157_vm8, %v3516_v51  ;;  %v3694_v55 = vpack.c.bf16 %v3639_v3, %v3634_v62  ;;  %v3700_v51 = vpack.c.bf16 %v3650_v44, %v3645_v18  ;;  %v5057_v62 = vld [vmem:[%s5277_s27 + $0x50] sm:$0xff] }
 0x4b5   : > { %4147 = vmatmul.bf16.gmra.mxu0 %v3688_v29  ;;  %4759 = vmatmul.msk.bf16.gmra.mxu3 %vm544_vm7, %v3685_v12  ;;  %v4045_v61 = vpop.f32.mrf.mxu3 }
 0x4b6   : > { %v4046_v48 = vadd.f32 %v7782_v22, %v4045_v61 }
 0x4b7   : > { %v3520_v53 = vpop.permute.xlu1 %3519  ;;  %v3649_v32 = vld [vmem:[#allocation5 + $0x1d0] sm:$0xff] }
 0x4b8   : > { %v7763_v38 = vpop.f32.mrf.mxu2  ;;  %3555 = vst.msk [vmem:[#allocation5 + $0x1f8] sm:$0xff] %vm3157_vm8, %v3520_v53 }
 0x4ba   : > { %v3393_v45 = vpop.permute.xlu0 %3392  ;;  %v3644_v10 = vld [vmem:[#allocation5 + $0x1a8] sm:$0xff] }
 0x4bb   : > { %3427 = vst.msk [vmem:[#allocation5 + $0x218] sm:$0xff] %vm3157_vm8, %v3393_v45  ;;  %v3699_v34 = vpack.c.bf16 %v3649_v32, %v3644_v10 }
 0x4bd   : > { %4196 = vmatmul.bf16.gmra.mxu1 %v3689_v54  ;;  %4774 = vmatmul.msk.bf16.gmra.mxu2 %vm8082_vm4, %v4272_v1  ;;  %v4047_v17 = vpop.f32.mrf.mxu3  ;;  %v3659_v1 = vld [vmem:[#allocation5 + $0x220] sm:$0xff] }
 0x4be   : > { %v4048_v25 = vadd.f32 %v7782_v22, %v4047_v17  ;;  %v3655_v17 = vld [vmem:[#allocation5 + $0x200] sm:$0xff] }
 0x4bf   : > { %v3397_v49 = vpop.permute.xlu1 %3396  ;;  %v3654_v61 = vld [vmem:[#allocation5 + $0x1f8] sm:$0xff] }
 0x4c0   : > { %v7770_v40 = vpop.f32.mrf.mxu2  ;;  %3429 = vst.msk [vmem:[#allocation5 + $0x268] sm:$0xff] %vm3157_vm8, %v3397_v49  ;;  %v3704_v45 = vpack.c.bf16 %v3659_v1, %v3654_v61 }
 0x4c2   : > { %v3395_v8 = vpop.permute.xlu0 %3394  ;;  %v3658_v43 = vld [vmem:[#allocation5 + $0x218] sm:$0xff] }
 0x4c3   : > { %3428 = vst.msk [vmem:[#allocation5 + $0x240] sm:$0xff] %vm3157_vm8, %v3395_v8  ;;  %v3703_v58 = vpack.c.bf16 %v3658_v43, %v3653_v50 }
 0x4c5   : > { %4152 = vmatmul.bf16.gmra.mxu0 %v3693_v6  ;;  %4760 = vmatmul.msk.bf16.gmra.mxu3 %vm544_vm7, %v3690_v35 }
 0x4c7   : > { %v3668_v56 = vld [vmem:[#allocation5 + $0x268] sm:$0xff] }
 0x4c8   : > { %v4050_v36 = vpop.f32.mrf.mxu3  ;;  %v7775_v14 = vpop.f32.mrf.mxu2 }
 0x4c9   : > { %v4051_v47 = vadd.f32 %v7782_v22, %v4050_v36  ;;  %v3705_v36 = vpack.c.bf16 %v3660_v41, %v3655_v17 }
 0x4ca   : > { %v3526_v21 = vpop.permute.xlu0 %3525  ;;  %v3663_v37 = vld [vmem:[#allocation5 + $0x240] sm:$0xff] }
 0x4cb   : > { %3558 = vst.msk [vmem:[#allocation5 + $0x270] sm:$0xff] %vm3157_vm8, %v3526_v21  ;;  %v3708_v35 = vpack.c.bf16 %v3668_v56, %v3663_v37 }
 0x4cd   : > { %4201 = vmatmul.bf16.gmra.mxu1 %v3694_v55  ;;  %4775 = vmatmul.msk.bf16.gmra.mxu2 %vm8083_vm6, %v4273_v19  ;;  %v5058_v55 = vld [vmem:[%s5277_s27 + $0x58] sm:$0xff] }
 0x4d0   : > { %v4052_v28 = vpop.f32.mrf.mxu3  ;;  %v4094_v60 = vpop.f32.mrf.mxu2 }
 0x4d1   : > { %v7787_v39 = vadd.f32 %v4094_v60, %v4046_v48  ;;  %v4053_v7 = vadd.f32 %v7782_v22, %v4052_v28  ;;  %v4276_v48 = vpack.c.bf16 %v5058_v55, %v5057_v62  ;;  %v3664_v60 = vld [vmem:[#allocation5 + $0x248] sm:$0xff]  ;;  %v7856_v62 = vld [vmem:[%s7978_s13] ss:$0 sm:$0xff] }
 0x4d2   : > { %v3669_v19 = vld [vmem:[#allocation5 + $0x270] sm:$0xff] }
 0x4d3   : > { %v3709_v11 = vpack.c.bf16 %v3669_v19, %v3664_v60 }
 0x4d5   : > { %4157 = vmatmul.bf16.gmra.mxu0 %v3698_v30  ;;  %4761 = vmatmul.msk.bf16.gmra.mxu3 %vm544_vm7, %v3695_v13  ;;  %v3665_v30 = vld [vmem:[#allocation5 + $0x250] sm:$0xff]  ;;  %v3670_v13 = vld [vmem:[#allocation5 + $0x278] sm:$0xff] }
 0x4d8   : > { %v4055_v23 = vpop.f32.mrf.mxu3  ;;  %v4096_v9 = vpop.f32.mrf.mxu2 }
 0x4d9   : > { %v7791_v2 = vadd.f32 %v4096_v9, %v4048_v25  ;;  %v4056_v54 = vadd.f32 %v7782_v22, %v4055_v23  ;;  %v3710_v9 = vpack.c.bf16 %v3670_v13, %v3665_v30 }
 0x4dd   : > { %4206 = vmatmul.bf16.gmra.mxu1 %v3699_v34  ;;  %4776 = vmatmul.msk.bf16.gmra.mxu2 %vm8084_vm12, %v4274_v46  ;;  %v5059_v46 = vld [vmem:[%s5277_s27 + $0x60] sm:$0xff]  ;;  %v5060_v34 = vld [vmem:[%s5277_s27 + $0x68] sm:$0xff]  ;;  %s475_s27 = sand.u32 1, %s5117_s29  }
 0x4de   : > { %s4496_s0 = sshll.u32 %s475_s27, 7  ;;  %s4405_s16 = scalar_lea.sflag [#allocation7], %s475_s27 }
 0x4df   : > { %s7864_s25 = scalar_lea.vmem [#allocation6], %s4496_s0  ;;  %s5079_s0 = scalar_lea.hbm %s5078_s20, 128 }
 0x4e0   : > { %v4057_v63 = vpop.f32.mrf.mxu3  ;;  %v4099_v5 = vpop.f32.mrf.mxu2  ;;  %s4418_s17 = sshll.u32 %s7864_s25, 4  ;;  %p5080_p11 = scmp.ne.s32.totalorder %s5078_s20, %s5079_s0  ;;  %s4419_s17 = int_to_ptr.vmem [resolvable:$true] %s4418_s17 }
 0x4e1   : > { %v7797_v27 = vadd.f32 %v4099_v5, %v4051_v47  ;;  %v4058_v3 = vadd.f32 %v7782_v22, %v4057_v63  ;;  %v4277_v47 = vpack.c.bf16 %v5060_v34, %v5059_v46  ;;  %p5085_p1 = scmp.lt.s32.totalorder %s5083_s23, %s5079_s0 }
 0x4e2   : > { %p5081_p12 = pnand %p5080_p11, %p5246_p5 }
 0x4e3   : > { %p5086_p2 = por %p5085_p1, %p5084_p0 }
 0x4e4   : > { %p5082_p13 = pneg %p5081_p12 }
 0x4e5   : > { %4162 = vmatmul.bf16.gmra.mxu0 %v3703_v58  ;;  %4762 = vmatmul.msk.bf16.gmra.mxu3 %vm544_vm7, %v3700_v51 }
 0x4e6   : > { %p5087_p3 = pnand %p5086_p2, %p5082_p13 }
 0x4e8   : > { %v4060_v29 = vpop.f32.mrf.mxu3  ;;  %v4101_v12 = vpop.f32.mrf.mxu2 }
 0x4e9   : > { %v7801_v53 = vadd.f32 %v4101_v12, %v4053_v7  ;;  %v4061_v33 = vadd.f32 %v7782_v22, %v4060_v29 }
 0x4ea   : > { %v7805_v42 = vpop.f32.mrf.mxu1 }
 0x4eb   : > { %v4036_v37 = vadd.f32 %v7782_v22, %v7805_v42 }
 0x4ed   : > { %4211 = vmatmul.bf16.gmra.mxu1 %v3704_v45  ;;  %4777 = vmatmul.msk.bf16.gmra.mxu2 %vm8085_vm9, %v4275_v20  ;;  %v4278_v20 = vpack.c.bf16 %v5062_v59, %v5061_v52 }
 0x4f0   : > { %v4062_v49 = vpop.f32.mrf.mxu3  ;;  %v4104_v16 = vpop.f32.mrf.mxu2 }
 0x4f1   : > { %v7809_v8 = vadd.f32 %v4104_v16, %v4056_v54  ;;  %v4063_v10 = vadd.f32 %v7782_v22, %v4062_v49 }
 0x4f2   : > { %v7811_v6 = vpop.f32.mrf.mxu1 }
 0x4f3   : > { %v4038_v42 = vadd.f32 %v7782_v22, %v7811_v6 }
 0x4f5   : > { %4167 = vmatmul.bf16.gmra.mxu0 %v3708_v35  ;;  %4763 = vmatmul.msk.bf16.gmra.mxu3 %vm544_vm7, %v3705_v36 }
 0x4f8   : > { %v4065_v0 = vpop.f32.mrf.mxu3  ;;  %v4106_v24 = vpop.f32.mrf.mxu2 }
 0x4f9   : > { %v7815_v21 = vadd.f32 %v4106_v24, %v4058_v3  ;;  %v4066_v43 = vadd.f32 %v7782_v22, %v4065_v0  ;;  %v4085_v0 = vadd.f32 %v7758_v4, %v4036_v37  ;;  %v4087_v4 = vadd.f32 %v7763_v38, %v4038_v42 }
 0x4fa   : > { %v7819_v28 = vpop.f32.mrf.mxu1 }
 0x4fb   : > { %v4041_v13 = vadd.f32 %v7782_v22, %v7819_v28 }
 0x4fd   : > { %4216 = vmatmul.bf16.gmra.mxu1 %v3709_v11  ;;  %4778 = vmatmul.msk.bf16.gmra.mxu2 %vm8086_vm11, %v4276_v48  ;;  %v4090_v38 = vadd.f32 %v7770_v40, %v4041_v13 }
 0x500   : > { %v4067_v15 = vpop.f32.mrf.mxu3  ;;  %v4109_v26 = vpop.f32.mrf.mxu2 }
 0x501   : > { %v7823_v25 = vadd.f32 %v4109_v26, %v4061_v33  ;;  %v4068_v51 = vadd.f32 %v7782_v22, %v4067_v15 }
 0x502   : > { %v7825_v23 = vpop.f32.mrf.mxu1  ;;  %v4133_v63 = vpop.f32.mrf.mxu0 }
 0x503   : > { %v4134_v19 = vadd.f32 %v4133_v63, %v4085_v0 }
 0x505   : > { %4764 = vmatmul.msk.bf16.gmra.mxu3 %vm544_vm7, %v3710_v9 }
 0x508   : > { %v4070_v32 = vpop.f32.mrf.mxu3  ;;  %v4111_v57 = vpop.f32.mrf.mxu2 }
 0x509   : > { %v7829_v31 = vadd.f32 %v4111_v57, %v4063_v10  ;;  %v4071_v1 = vadd.f32 %v7782_v22, %v4070_v32 }
 0x50a   : > { %v4182_v5 = vpop.f32.mrf.mxu1  ;;  %v4135_v58 = vpop.f32.mrf.mxu0 }
 0x50b   : > { %v4183_v55 = vadd.f32 %v4182_v5, %v4134_v19  ;;  %v4136_v30 = vadd.f32 %v4135_v58, %v4087_v4  ;;  %v4043_v5 = vadd.f32 %v7782_v22, %v7825_v23 }
 0x50d   : > { %4779 = vmatmul.msk.bf16.gmra.mxu2 %vm8087_vm13, %v4277_v47 }
 0x510   : > { %v4072_v18 = vpop.f32.mrf.mxu3  ;;  %v4114_v44 = vpop.f32.mrf.mxu2 }
 0x511   : > { %v7835_v50 = vadd.f32 %v4114_v44, %v4066_v43  ;;  %v4073_v56 = vadd.f32 %v7782_v22, %v4072_v18 }
 0x512   : > { %v4184_v7 = vpop.f32.mrf.mxu1  ;;  %v4138_v45 = vpop.f32.mrf.mxu0 }
 0x513   : > { %v4185_v9 = vadd.f32 %v4184_v7, %v4136_v30  ;;  %v4139_v47 = vadd.f32 %v4138_v45, %v4090_v38  ;;  %v4092_v7 = vadd.f32 %v7775_v14, %v4043_v5 }
 0x518   : > { %v4116_v29 = vpop.f32.mrf.mxu2  ;;  %v4231_v12 = vpop.f32.mrf.mxu3 }
 0x519   : > { %v7838_v61 = vadd.f32 %v4116_v29, %v4068_v51  ;;  %v4232_v11 = vadd.f32 %v4231_v12, %v4183_v55 }
 0x51a   : > { %v4187_v16 = vpop.f32.mrf.mxu1  ;;  %v4140_v3 = vpop.f32.mrf.mxu0 }
 0x51b   : > { %v4188_v43 = vadd.f32 %v4187_v16, %v4139_v47  ;;  %v4141_v40 = vadd.f32 %v4140_v3, %v4092_v7 }
 0x51d   : > { %4780 = vmatmul.msk.bf16.gmra.mxu2 %vm8088_vm14, %v4278_v20 }
 0x520   : > { %v4119_v54 = vpop.f32.mrf.mxu2  ;;  %v4233_v17 = vpop.f32.mrf.mxu3 }
 0x521   : > { %v7844_v49 = vadd.f32 %v4119_v54, %v4071_v1  ;;  %v4234_v57 = vadd.f32 %v4233_v17, %v4185_v9 }
 0x522   : > { %v4189_v24 = vpop.f32.mrf.mxu1  ;;  %v4143_v26 = vpop.f32.mrf.mxu0 }
 0x523   : > { %v4190_v12 = vadd.f32 %v4189_v24, %v4141_v40  ;;  %v4144_v54 = vadd.f32 %v4143_v26, %v7787_v39 }
 0x528   : > { %v4121_v41 = vpop.f32.mrf.mxu2  ;;  %v4236_v35 = vpop.f32.mrf.mxu3 }
 0x529   : > { %v7849_v36 = vadd.f32 %v4121_v41, %v4073_v56  ;;  %v4237_v44 = vadd.f32 %v4236_v35, %v4188_v43 }
 0x52a   : > { %v4192_v6 = vpop.f32.mrf.mxu1  ;;  %v4145_v63 = vpop.f32.mrf.mxu0 }
 0x52b   : > { %v4193_v17 = vadd.f32 %v4192_v6, %v4144_v54  ;;  %v4146_v3 = vadd.f32 %v4145_v63, %v7791_v2 }
 0x530   : > { %v4238_v48 = vpop.f32.mrf.mxu3  ;;  %v4332_v60 = vpop.f32.mrf.mxu2 }
 0x531   : > { %v4333_v33 = vadd.f32 %v7856_v62, %v4332_v60  ;;  %v4239_v20 = vadd.f32 %v4238_v48, %v4190_v12 }
 0x532   : > { %v4194_v18 = vpop.f32.mrf.mxu1  ;;  %v4148_v52 = vpop.f32.mrf.mxu0 }
 0x533   : > { %v4372_v15 = vadd.f32 %v4333_v33, %v4232_v11  ;;  %v4195_v24 = vadd.f32 %v4194_v18, %v4146_v3  ;;  %v4149_v60 = vadd.f32 %v4148_v52, %v7797_v27 }
 0x535   : > { %4388 = vst.msk [vmem:[%s7864_s25] sm:$0xff] %vm544_vm7, %v4372_v15 }
 0x538   : > { %v4241_v10 = vpop.f32.mrf.mxu3  ;;  %v4334_v32 = vpop.f32.mrf.mxu2 }
 0x539   : > { %v4335_v46 = vadd.f32 %v7856_v62, %v4334_v32  ;;  %v4242_v16 = vadd.f32 %v4241_v10, %v4193_v17 }
 0x53a   : > { %v4197_v23 = vpop.f32.mrf.mxu1  ;;  %v4150_v56 = vpop.f32.mrf.mxu0 }
 0x53b   : > { %v4373_v34 = vadd.f32 %v4335_v46, %v4234_v57  ;;  %v4198_v33 = vadd.f32 %v4197_v23, %v4149_v60  ;;  %v4151_v6 = vadd.f32 %v4150_v56, %v7801_v53 }
 0x53d   : > { %4389 = vst.msk [vmem:[%s7864_s25 + $0x8] sm:$0xff] %vm544_vm7, %v4373_v34 }
 0x540   : > { %v4337_v28 = vpop.f32.mrf.mxu2  ;;  %v4243_v51 = vpop.f32.mrf.mxu3 }
 0x541   : > { %v4338_v58 = vadd.f32 %v7856_v62, %v4337_v28  ;;  %v4244_v39 = vadd.f32 %v4243_v51, %v4195_v24 }
 0x542   : > { %v4199_v35 = vpop.f32.mrf.mxu1  ;;  %v4153_v48 = vpop.f32.mrf.mxu0 }
 0x543   : > { %v4374_v29 = vadd.f32 %v4338_v58, %v4237_v44  ;;  %v4200_v9 = vadd.f32 %v4199_v35, %v4151_v6  ;;  %v4154_v34 = vadd.f32 %v4153_v48, %v7809_v8 }
 0x545   : > { %4390 = vst.msk [vmem:[%s7864_s25 + $0x10] sm:$0xff] %vm544_vm7, %v4374_v29 }
 0x548   : > { %v4339_v59 = vpop.f32.mrf.mxu2  ;;  %v4246_v45 = vpop.f32.mrf.mxu3 }
 0x549   : > { %v4340_v22 = vadd.f32 %v7856_v62, %v4339_v59  ;;  %v4247_v15 = vadd.f32 %v4246_v45, %v4198_v33 }
 0x54a   : > { %v4202_v11 = vpop.f32.mrf.mxu1  ;;  %v4155_v13 = vpop.f32.mrf.mxu0 }
 0x54b   : > { %v4375_v1 = vadd.f32 %v4340_v22, %v4239_v20  ;;  %v4203_v47 = vadd.f32 %v4202_v11, %v4154_v34  ;;  %v4156_v58 = vadd.f32 %v4155_v13, %v7815_v21 }
 0x54d   : > { %4391 = vst.msk [vmem:[%s7864_s25 + $0x18] sm:$0xff] %vm544_vm7, %v4375_v1 }
 0x550   : > { %v4342_v14 = vpop.f32.mrf.mxu2  ;;  %v4248_v0 = vpop.f32.mrf.mxu3 }
 0x551   : > { %v4343_v37 = vadd.f32 %v7856_v62, %v4342_v14  ;;  %v4249_v27 = vadd.f32 %v4248_v0, %v4200_v9 }
 0x552   : > { %v4204_v10 = vpop.f32.mrf.mxu1  ;;  %v4158_v63 = vpop.f32.mrf.mxu0 }
 0x553   : > { %v4376_v41 = vadd.f32 %v4343_v37, %v4242_v16  ;;  %v4205_v51 = vadd.f32 %v4204_v10, %v4156_v58  ;;  %v4159_v59 = vadd.f32 %v4158_v63, %v7823_v25 }
 0x555   : > { %4392 = vst.msk [vmem:[%s7864_s25 + $0x20] sm:$0xff] %vm544_vm7, %v4376_v41 }
 0x558   : > { %v4344_v19 = vpop.f32.mrf.mxu2  ;;  %v4251_v4 = vpop.f32.mrf.mxu3 }
 0x559   : > { %v4345_v42 = vadd.f32 %v7856_v62, %v4344_v19  ;;  %v4252_v53 = vadd.f32 %v4251_v4, %v4203_v47 }
 0x55a   : > { %v4207_v18 = vpop.f32.mrf.mxu1  ;;  %v4160_v40 = vpop.f32.mrf.mxu0 }
 0x55b   : > { %v4377_v55 = vadd.f32 %v4345_v42, %v4244_v39  ;;  %v4208_v22 = vadd.f32 %v4207_v18, %v4159_v59  ;;  %v4161_v17 = vadd.f32 %v4160_v40, %v7829_v31 }
 0x55d   : > { %4393 = vst.msk [vmem:[%s7864_s25 + $0x28] sm:$0xff] %vm544_vm7, %v4377_v55 }
 0x560   : > { %v4347_v2 = vpop.f32.mrf.mxu2  ;;  %v4253_v46 = vpop.f32.mrf.mxu3 }
 0x561   : > { %v4348_v26 = vadd.f32 %v7856_v62, %v4347_v2  ;;  %v4254_v8 = vadd.f32 %v4253_v46, %v4205_v51 }
 0x562   : > { %v4209_v52 = vpop.f32.mrf.mxu1  ;;  %v4163_v54 = vpop.f32.mrf.mxu0 }
 0x563   : > { %v4378_v30 = vadd.f32 %v4348_v26, %v4247_v15  ;;  %v4210_v16 = vadd.f32 %v4209_v52, %v4161_v17  ;;  %v4164_v3 = vadd.f32 %v4163_v54, %v7835_v50 }
 0x565   : > { %4394 = vst.msk [vmem:[%s7864_s25 + $0x30] sm:$0xff] %vm544_vm7, %v4378_v30 }
 0x568   : > { %v4349_v32 = vpop.f32.mrf.mxu2  ;;  %v4256_v44 = vpop.f32.mrf.mxu3 }
 0x569   : > { %v4350_v57 = vadd.f32 %v7856_v62, %v4349_v32  ;;  %v4257_v21 = vadd.f32 %v4256_v44, %v4208_v22 }
 0x56a   : > { %v4212_v14 = vpop.f32.mrf.mxu1  ;;  %v4165_v0 = vpop.f32.mrf.mxu0 }
 0x56b   : > { %v4379_v38 = vadd.f32 %v4350_v57, %v4249_v27  ;;  %v4213_v24 = vadd.f32 %v4212_v14, %v4164_v3  ;;  %v4166_v60 = vadd.f32 %v4165_v0, %v7838_v61 }
 0x56d   : > { %4395 = vst.msk [vmem:[%s7864_s25 + $0x38] sm:$0xff] %vm544_vm7, %v4379_v38 }
 0x570   : > { %v4352_v5 = vpop.f32.mrf.mxu2  ;;  %v4258_v20 = vpop.f32.mrf.mxu3 }
 0x571   : > { %v4353_v43 = vadd.f32 %v7856_v62, %v4352_v5  ;;  %v4259_v56 = vadd.f32 %v4258_v20, %v4210_v16 }
 0x572   : > { %v4214_v19 = vpop.f32.mrf.mxu1  ;;  %v4168_v33 = vpop.f32.mrf.mxu0 }
 0x573   : > { %v4380_v28 = vadd.f32 %v4353_v43, %v4252_v53  ;;  %v4215_v11 = vadd.f32 %v4214_v19, %v4166_v60  ;;  %v4169_v6 = vadd.f32 %v4168_v33, %v7844_v49 }
 0x575   : > { %4396 = vst.msk [vmem:[%s7864_s25 + $0x40] sm:$0xff] %vm544_vm7, %v4380_v28 }
 0x578   : > { %v4354_v7 = vpop.f32.mrf.mxu2  ;;  %v4261_v37 = vpop.f32.mrf.mxu3 }
 0x579   : > { %v4355_v29 = vadd.f32 %v7856_v62, %v4354_v7  ;;  %v4262_v31 = vadd.f32 %v4261_v37, %v4213_v24 }
 0x57a   : > { %v4217_v15 = vpop.f32.mrf.mxu1  ;;  %v4170_v32 = vpop.f32.mrf.mxu0 }
 0x57b   : > { %v4381_v12 = vadd.f32 %v4355_v29, %v4254_v8  ;;  %v4218_v13 = vadd.f32 %v4217_v15, %v4169_v6  ;;  %v4171_v46 = vadd.f32 %v4170_v32, %v7849_v36 }
 0x57d   : > { %4397 = vst.msk [vmem:[%s7864_s25 + $0x48] sm:$0xff] %vm544_vm7, %v4381_v12 }
 0x580   : > { %v4357_v23 = vpop.f32.mrf.mxu2  ;;  %v4263_v55 = vpop.f32.mrf.mxu3 }
 0x581   : > { %v4358_v1 = vadd.f32 %v7856_v62, %v4357_v23  ;;  %v4264_v4 = vadd.f32 %v4263_v55, %v4215_v11 }
 0x582   : > { %v4219_v57 = vpop.f32.mrf.mxu1 }
 0x583   : > { %v4382_v45 = vadd.f32 %v4358_v1, %v4257_v21  ;;  %v4220_v38 = vadd.f32 %v4219_v57, %v4171_v46 }
 0x585   : > { %4398 = vst.msk [vmem:[%s7864_s25 + $0x50] sm:$0xff] %vm544_vm7, %v4382_v45 }
 0x588   : > { %v4359_v25 = vpop.f32.mrf.mxu2  ;;  %v4266_v30 = vpop.f32.mrf.mxu3 }
 0x589   : > { %v4360_v41 = vadd.f32 %v7856_v62, %v4359_v25  ;;  %v4267_v9 = vadd.f32 %v4266_v30, %v4218_v13 }
 0x58b   : > { %v4383_v35 = vadd.f32 %v4360_v41, %v4259_v56 }
 0x58d   : > { %4399 = vst.msk [vmem:[%s7864_s25 + $0x58] sm:$0xff] %vm544_vm7, %v4383_v35 }
 0x590   : > { %v4362_v39 = vpop.f32.mrf.mxu2  ;;  %v4268_v49 = vpop.f32.mrf.mxu3 }
 0x591   : > { %v4363_v42 = vadd.f32 %v7856_v62, %v4362_v39  ;;  %v4269_v47 = vadd.f32 %v4268_v49, %v4220_v38 }
 0x593   : > { %v4384_v48 = vadd.f32 %v4363_v42, %v4262_v31 }
 0x595   : > { %4400 = vst.msk [vmem:[%s7864_s25 + $0x60] sm:$0xff] %vm544_vm7, %v4384_v48 }
 0x598   : > { %v4364_v50 = vpop.f32.mrf.mxu2 }
 0x599   : > { %v4365_v2 = vadd.f32 %v7856_v62, %v4364_v50 }
 0x59b   : > { %v4385_v26 = vadd.f32 %v4365_v2, %v4264_v4 }
 0x59d   : > { %4401 = vst.msk [vmem:[%s7864_s25 + $0x68] sm:$0xff] %vm544_vm7, %v4385_v26 }
 0x5a0   : > { %v4367_v61 = vpop.f32.mrf.mxu2 }
 0x5a1   : > { %v4368_v10 = vadd.f32 %v7856_v62, %v4367_v61 }
 0x5a3   : > { %v4386_v27 = vadd.f32 %v4368_v10, %v4267_v9 }
 0x5a5   : > { %4402 = vst.msk [vmem:[%s7864_s25 + $0x70] sm:$0xff] %vm544_vm7, %v4386_v27 }
 0x5a8   : > { %v4369_v34 = vpop.f32.mrf.mxu2 }
 0x5a9   : > { %v4370_v63 = vadd.f32 %v7856_v62, %v4369_v34 }
 0x5ab   : > { %v4387_v5 = vadd.f32 %v4370_v63, %v4269_v47 }
 0x5ad   : > { %4403 = vst.msk [vmem:[%s7864_s25 + $0x78] sm:$0xff] %vm544_vm7, %v4387_v5 }
 0x5ae   : > { %5090 = shalt.err (!%p5087_p3)
}
 0x5af   : > { %s5131_s27 = smov 128   ;;  %s5132_s25 = smov 8  }
 0x5b0   : > { %4856 = dma.vmem_to_hbm [thread:$0]  (%p5246_p5), %s4419_s17, 2048, %s4421_s1, %s4405_s16, %s5131_s27, %s5131_s27, %s5132_s25  }
 0x5b1 PF: > { %p4862_p4 = scmp.ge.s32.totalorder %s5125_s15, 2  ;;  %s4435_s26 = sand.u32 1, %s5113_s28  }
 0x5b2   : > { %s4436_s2 = scalar_lea.sflag [#allocation7], %s4435_s26 }
 0x5b3   : > { %p4859_p7 = pnand %p4862_p4, %p5250_p6 }
 0x5b5   : > { %p4860_p8 = pneg %p4859_p7 }
 0x5b7   : > { %5108 = dma.done.wait (%p4860_p8), %s4436_s2, 2048  }
 0x5b8   : > { %5110 = vsyncadd (%p4860_p8), %s4436_s2, 4294965248  ;;  %p24_p9 = scmp.ge.s32.totalorder %s5233_s18, 4   ;;  %s8089_s28 = smov %s5117_s29 }
 0x5b9   : > { %s8090_s29 = smov %s5121_s30  ;;  %s8091_s30 = smov %s5244_s21 }
 0x5ba   : > { %s8092_s15 = smov %s5233_s18  ;;  %26 = sbr.rel (!%p24_p9) target bundleno = 7 (0x7), region = 122 }
 0x5bf   :  { %4442 = vsyncpa [#allocation7], 1 }
 0x5c0   :  { %4444 = vsyncpa [#allocation7 + $0x1], 1 }

</bundles_post_ra>
